<compile_context>
chip_gen: v7x
topology: tpu7x:2x2x1
jax: 0.10.0
libtpu: 0.0.40
codegen_flags: <defaults>
</compile_context>

<pallas_src>
import jax
import jax.numpy as jnp
from jax.experimental import pallas as pl
from jax.experimental.pallas import tpu as pltpu

# ----------------------------- model config -----------------------------
VOCAB      = 64
BLOCK_SIZE = 8          # T
N_EMBD     = 32         # C
N_HEADS    = 4
N_LAYER    = 2
HEAD_SIZE  = N_EMBD // N_HEADS
LN_EPS     = 1e-5
NEG_INF    = -1e30      # finite mask value (robust vs -inf propagation)


# ============================ fused Pallas kernel ============================

def _gpt_fused_kernel(tok_ref, pos_ref,
                      sa_wqkv_ref, sa_wp_ref, sa_bp_ref,
                      ln1g_ref, ln1b_ref, bwqkv_ref, bwp_ref, bbp_ref,
                      ln2g_ref, ln2b_ref, w1_ref, b1_ref, w2_ref, b2_ref,
                      lnfg_ref, lnfb_ref, lmw_ref, lmb_ref,
                      o_ref, attn_buf):
    B, T, C = tok_ref.shape
    N = B * T
    V = lmw_ref.shape[1]
    scale = 1.0 / (C ** 0.5)       # matches PyTorch reference: C ** (-0.5), C = n_embd

    # --- embeddings: token gather done outside, fuse the `tok + pos` add here ---
    x = (tok_ref[...].astype(jnp.float32) + pos_ref[...]).reshape(N, C)

    def layer_norm(h, g, b):
        mu = jnp.mean(h, axis=-1, keepdims=True)
        var = jnp.mean((h - mu) ** 2, axis=-1, keepdims=True)
        return (h - mu) * jax.lax.rsqrt(var + LN_EPS) * g + b

    row = jax.lax.broadcasted_iota(jnp.int32, (T, T), 0)
    col = jax.lax.broadcasted_iota(jnp.int32, (T, T), 1)
    causal = (row >= col)[None, :, :]                            # (1, T, T)

    def attention(h, wqkv, wp, bp):
        # One fused QKV matmul: (N, C) @ (C, 3C)
        qkv = jnp.dot(h, wqkv, preferred_element_type=jnp.float32)     # (N, 3C)
        for hd in range(N_HEADS):                                      # static unroll
            lo = hd * HEAD_SIZE
            q = qkv[:, lo:lo + HEAD_SIZE].reshape(B, T, HEAD_SIZE)
            k = qkv[:, C + lo:C + lo + HEAD_SIZE].reshape(B, T, HEAD_SIZE)
            v = qkv[:, 2 * C + lo:2 * C + lo + HEAD_SIZE].reshape(B, T, HEAD_SIZE)
            s = jnp.einsum('btd,bsd->bts', q, k,
                           preferred_element_type=jnp.float32) * scale      # (B,T,T)
            s = jnp.where(causal, s, NEG_INF)
            s = s - jnp.max(s, axis=-1, keepdims=True)
            e = jnp.exp(s)
            p = e * pl.reciprocal(jnp.sum(e, axis=-1, keepdims=True), approx=True)
            oh = jnp.einsum('bts,bsd->btd', p, v,
                            preferred_element_type=jnp.float32)             # (B,T,hs)
            # write lane-dense into the (N, C) accumulator; no concatenate relayout
            attn_buf[:, lo:lo + HEAD_SIZE] = oh.reshape(N, HEAD_SIZE)
        cat = attn_buf[...]
        return jnp.dot(cat, wp, preferred_element_type=jnp.float32) + bp

    # --- top-level sa_heads: NO layernorm, NO residual (matches reference) ---
    x = attention(x, sa_wqkv_ref[...], sa_wp_ref[...], sa_bp_ref[...])

    # --- transformer blocks (static unroll; all weights resident in VMEM) ---
    for l in range(N_LAYER):
        h1 = layer_norm(x, ln1g_ref[l], ln1b_ref[l])
        x = x + attention(h1, bwqkv_ref[l], bwp_ref[l], bbp_ref[l])
        h2 = layer_norm(x, ln2g_ref[l], ln2b_ref[l])
        ff = jnp.dot(h2, w1_ref[l], preferred_element_type=jnp.float32) + b1_ref[l]
        ff = jnp.maximum(ff, 0.0)                                    # ReLU
        ff = jnp.dot(ff, w2_ref[l], preferred_element_type=jnp.float32) + b2_ref[l]
        x = x + ff                                                   # dropout = identity

    # --- final LN + lm_head ---
    x = layer_norm(x, lnfg_ref[...], lnfb_ref[...])
    logits = jnp.dot(x, lmw_ref[...], preferred_element_type=jnp.float32) + lmb_ref[...]
    o_ref[...] = logits.reshape(B, T, V).astype(o_ref.dtype)


def gpt_fused(tok, pos, p):
    B, T, C = tok.shape
    V = p["lm_w"].shape[1]
    return pl.pallas_call(
        _gpt_fused_kernel,
        out_shape=jax.ShapeDtypeStruct((B, T, V), jnp.float32),
        scratch_shapes=[pltpu.VMEM((B * T, C), jnp.float32)],
    )(tok, pos,
      p["sa_wqkv"], p["sa_wp"], p["sa_bp"],
      p["ln1_g"], p["ln1_b"], p["wqkv"], p["wp"], p["bp"],
      p["ln2_g"], p["ln2_b"], p["w1"], p["b1"], p["w2"], p["b2"],
      p["lnf_g"], p["lnf_b"], p["lm_w"], p["lm_b"])


# ================================ model API ================================

def init_params(key):
    keys = iter(jax.random.split(key, 32))

    def nrm(shape, scale=0.02):
        return (scale * jax.random.normal(next(keys), shape)).astype(jnp.float32)

    z = lambda *s: jnp.zeros(s, jnp.float32)
    o = lambda *s: jnp.ones(s, jnp.float32)

    return {
        "tok_emb": nrm((VOCAB, N_EMBD)),
        "pos_emb": nrm((BLOCK_SIZE, N_EMBD)),
        # top-level sa_heads (MultiHeadAttention)
        "sa_wqkv": nrm((N_EMBD, 3 * N_EMBD)),
        "sa_wp":   nrm((N_EMBD, N_EMBD)),
        "sa_bp":   z(1, N_EMBD),
        # per-layer weights, stacked along leading N_LAYER axis
        "ln1_g": o(N_LAYER, 1, N_EMBD), "ln1_b": z(N_LAYER, 1, N_EMBD),
        "wqkv":  nrm((N_LAYER, N_EMBD, 3 * N_EMBD)),
        "wp":    nrm((N_LAYER, N_EMBD, N_EMBD)),
        "bp":    z(N_LAYER, 1, N_EMBD),
        "ln2_g": o(N_LAYER, 1, N_EMBD), "ln2_b": z(N_LAYER, 1, N_EMBD),
        "w1":    nrm((N_LAYER, N_EMBD, 4 * N_EMBD)),
        "b1":    z(N_LAYER, 1, 4 * N_EMBD),
        "w2":    nrm((N_LAYER, 4 * N_EMBD, N_EMBD)),
        "b2":    z(N_LAYER, 1, N_EMBD),
        # final LN + lm_head
        "lnf_g": o(1, N_EMBD), "lnf_b": z(1, N_EMBD),
        "lm_w":  nrm((N_EMBD, VOCAB)),
        "lm_b":  z(1, VOCAB),
    }


@jax.jit
def gpt_forward(params, idx):
    T = idx.shape[1]
    tok = jnp.take(params["tok_emb"], idx, axis=0)      # (B, T, C) gather glue in XLA
    pos = params["pos_emb"][:T]                         # (T, C)
    logits = gpt_fused(tok, pos, params)                # single fused Pallas call
    # TODO(synk): cross-entropy loss path only runs when targets is provided; here targets=None.
    return logits, None


# ----------------------- pure-JAX reference (for checking) -----------------------

def gpt_reference(params, idx):
    B, T = idx.shape
    C = N_EMBD
    x = jnp.take(params["tok_emb"], idx, axis=0) + params["pos_emb"][:T][None]

    def ln(h, g, b):
        mu = h.mean(-1, keepdims=True)
        var = ((h - mu) ** 2).mean(-1, keepdims=True)
        return (h - mu) / jnp.sqrt(var + LN_EPS) * g + b

    def attn(h, wqkv, wp, bp):
        qkv = h @ wqkv
        q, k, v = qkv[..., :C], qkv[..., C:2 * C], qkv[..., 2 * C:]

        def split(a):
            return a.reshape(B, T, N_HEADS, HEAD_SIZE).transpose(0, 2, 1, 3)

        q, k, v = split(q), split(k), split(v)
        s = (q @ jnp.swapaxes(k, -1, -2)) * (C ** -0.5)
        mask = jnp.tril(jnp.ones((T, T), dtype=bool))
        s = jnp.where(mask, s, -jnp.inf)
        p = jax.nn.softmax(s, axis=-1)
        o = (p @ v).transpose(0, 2, 1, 3).reshape(B, T, C)
        return o @ wp + bp

    x = attn(x, params["sa_wqkv"], params["sa_wp"], params["sa_bp"])
    for l in range(N_LAYER):
        x = x + attn(ln(x, params["ln1_g"][l], params["ln1_b"][l]),
                     params["wqkv"][l], params["wp"][l], params["bp"][l])
        h = ln(x, params["ln2_g"][l], params["ln2_b"][l])
        h = jnp.maximum(h @ params["w1"][l] + params["b1"][l], 0.0)
        x = x + h @ params["w2"][l] + params["b2"][l]
    x = ln(x, params["lnf_g"], params["lnf_b"])
    return x @ params["lm_w"] + params["lm_b"]


if __name__ == "__main__":
    key = jax.random.PRNGKey(0)
    pkey, ikey = jax.random.split(key)
    params = init_params(pkey)
    idx = jax.random.randint(ikey, (2, BLOCK_SIZE), 0, VOCAB, dtype=jnp.int32)  # (B, T)

    logits, loss = gpt_forward(params, idx)
    logits = jax.block_until_ready(logits)

    assert logits.shape == (2, BLOCK_SIZE, VOCAB)
    assert loss is None
    assert bool(jnp.all(jnp.isfinite(logits)))

    ref = gpt_reference(params, idx)
    max_err = float(jnp.max(jnp.abs(logits - ref)))
    assert max_err < 5e-2, f"mismatch vs reference: {max_err}"

    print("KERNEL_OK")
</pallas_src>

<mosaic_0001>
module attributes {stable_mosaic.version = 11 : i64} {
  func.func @_gpt_fused_kernel(%arg0: memref<2x8x32xf32, #tpu.memory_space<vmem>>, %arg1: memref<8x32xf32, #tpu.memory_space<vmem>>, %arg2: memref<32x96xf32, #tpu.memory_space<vmem>>, %arg3: memref<32x32xf32, #tpu.memory_space<vmem>>, %arg4: memref<1x32xf32, #tpu.memory_space<vmem>>, %arg5: memref<2x1x32xf32, #tpu.memory_space<vmem>>, %arg6: memref<2x1x32xf32, #tpu.memory_space<vmem>>, %arg7: memref<2x32x96xf32, #tpu.memory_space<vmem>>, %arg8: memref<2x32x32xf32, #tpu.memory_space<vmem>>, %arg9: memref<2x1x32xf32, #tpu.memory_space<vmem>>, %arg10: memref<2x1x32xf32, #tpu.memory_space<vmem>>, %arg11: memref<2x1x32xf32, #tpu.memory_space<vmem>>, %arg12: memref<2x32x128xf32, #tpu.memory_space<vmem>>, %arg13: memref<2x1x128xf32, #tpu.memory_space<vmem>>, %arg14: memref<2x128x32xf32, #tpu.memory_space<vmem>>, %arg15: memref<2x1x32xf32, #tpu.memory_space<vmem>>, %arg16: memref<1x32xf32, #tpu.memory_space<vmem>>, %arg17: memref<1x32xf32, #tpu.memory_space<vmem>>, %arg18: memref<32x64xf32, #tpu.memory_space<vmem>>, %arg19: memref<1x64xf32, #tpu.memory_space<vmem>>, %arg20: memref<2x8x64xf32, #tpu.memory_space<vmem>>, %arg21: memref<16x32xf32, #tpu.memory_space<vmem>>) attributes {dimension_semantics = [], scalar_prefetch = 0 : i64, scratch_operands = 1 : i64, tpu.core_type = #tpu.core_type<tc>} {
    %c0 = arith.constant 0 : index
    %c0_0 = arith.constant 0 : index
    %c0_1 = arith.constant 0 : index
    %0 = vector.load %arg0[%c0, %c0_0, %c0_1] : memref<2x8x32xf32, #tpu.memory_space<vmem>>, vector<2x8x32xf32>
    %c0_2 = arith.constant 0 : index
    %c0_3 = arith.constant 0 : index
    %1 = vector.load %arg1[%c0_2, %c0_3] : memref<8x32xf32, #tpu.memory_space<vmem>>, vector<8x32xf32>
    %2 = vector.shape_cast %1 : vector<8x32xf32> to vector<1x8x32xf32>
    %3 = vector.broadcast %2 : vector<1x8x32xf32> to vector<2x8x32xf32>
    %4 = arith.addf %0, %3 : vector<2x8x32xf32>
    %5 = vector.shape_cast %4 : vector<2x8x32xf32> to vector<16x32xf32>
    %6 = tpu.iota {dimensions = array<i32: 0>} : vector<8x8xi32>
    %7 = tpu.iota {dimensions = array<i32: 1>} : vector<8x8xi32>
    %8 = arith.cmpi sge, %6, %7 : vector<8x8xi32>
    %9 = vector.shape_cast %8 : vector<8x8xi1> to vector<1x8x8xi1>
    %c0_4 = arith.constant 0 : index
    %c0_5 = arith.constant 0 : index
    %10 = vector.load %arg2[%c0_4, %c0_5] : memref<32x96xf32, #tpu.memory_space<vmem>>, vector<32x96xf32>
    %c0_6 = arith.constant 0 : index
    %c0_7 = arith.constant 0 : index
    %11 = vector.load %arg3[%c0_6, %c0_7] : memref<32x32xf32, #tpu.memory_space<vmem>>, vector<32x32xf32>
    %c0_8 = arith.constant 0 : index
    %c0_9 = arith.constant 0 : index
    %12 = vector.load %arg4[%c0_8, %c0_9] : memref<1x32xf32, #tpu.memory_space<vmem>>, vector<1x32xf32>
    %cst = arith.constant dense<0.000000e+00> : vector<16x96xf32>
    %13 = tpu.matmul %5, %10, %cst {dimension_numbers = #tpu.dot_dimension_numbers<[1], [0], [0], [1], [0, 0, 1, 1], [], []>} : vector<16x32xf32>, vector<32x96xf32>, vector<16x96xf32> -> vector<16x96xf32>
    %14 = vector.extract_strided_slice %13 {offsets = [0, 0], sizes = [16, 8], strides = [1, 1]} : vector<16x96xf32> to vector<16x8xf32>
    %15 = vector.shape_cast %14 : vector<16x8xf32> to vector<2x8x8xf32>
    %16 = vector.extract_strided_slice %13 {offsets = [0, 32], sizes = [16, 8], strides = [1, 1]} : vector<16x96xf32> to vector<16x8xf32>
    %17 = vector.shape_cast %16 : vector<16x8xf32> to vector<2x8x8xf32>
    %18 = vector.extract_strided_slice %13 {offsets = [0, 64], sizes = [16, 8], strides = [1, 1]} : vector<16x96xf32> to vector<16x8xf32>
    %19 = vector.shape_cast %18 : vector<16x8xf32> to vector<2x8x8xf32>
    "tpu.trace_start"() <{level = 10 : i32, message = "btd,bsd->bts"}> : () -> ()
    %cst_10 = arith.constant dense<0.000000e+00> : vector<2x8x8xf32>
    %20 = tpu.matmul %15, %17, %cst_10 {dimension_numbers = #tpu.dot_dimension_numbers<[2], [2], [1], [1], [0, 0, 0, 1, 1, 1], [0], [0]>} : vector<2x8x8xf32>, vector<2x8x8xf32>, vector<2x8x8xf32> -> vector<2x8x8xf32>
    "tpu.trace_stop"() : () -> ()
    %cst_11 = arith.constant 0.176776692 : f32
    %21 = vector.broadcast %cst_11 : f32 to vector<2x8x8xf32>
    %22 = arith.mulf %20, %21 : vector<2x8x8xf32>
    %cst_12 = arith.constant -1.000000e+30 : f32
    %23 = vector.shape_cast %9 : vector<1x8x8xi1> to vector<1x8x8xi1>
    %24 = vector.broadcast %23 : vector<1x8x8xi1> to vector<2x8x8xi1>
    %25 = vector.broadcast %cst_12 : f32 to vector<2x8x8xf32>
    %26 = arith.select %24, %22, %25 : vector<2x8x8xi1>, vector<2x8x8xf32>
    %cst_13 = arith.constant dense<0xFF800000> : vector<2x8xf32>
    %27 = vector.multi_reduction <maximumf>, %26, %cst_13 [2] : vector<2x8x8xf32> to vector<2x8xf32>
    %28 = vector.shape_cast %27 : vector<2x8xf32> to vector<2x8x1xf32>
    %29 = vector.broadcast %28 : vector<2x8x1xf32> to vector<2x8x8xf32>
    %30 = arith.subf %26, %29 : vector<2x8x8xf32>
    %31 = math.exp %30 : vector<2x8x8xf32>
    %cst_14 = arith.constant dense<0.000000e+00> : vector<2x8xf32>
    %32 = vector.multi_reduction <add>, %31, %cst_14 [2] : vector<2x8x8xf32> to vector<2x8xf32>
    %33 = vector.shape_cast %32 : vector<2x8xf32> to vector<2x8x1xf32>
    %34 = tpu.reciprocal %33 {approx = true} : vector<2x8x1xf32> -> vector<2x8x1xf32>
    %35 = vector.broadcast %34 : vector<2x8x1xf32> to vector<2x8x8xf32>
    %36 = arith.mulf %31, %35 : vector<2x8x8xf32>
    "tpu.trace_start"() <{level = 10 : i32, message = "bts,bsd->btd"}> : () -> ()
    %cst_15 = arith.constant dense<0.000000e+00> : vector<2x8x8xf32>
    %37 = tpu.matmul %36, %19, %cst_15 {dimension_numbers = #tpu.dot_dimension_numbers<[2], [1], [1], [2], [0, 0, 0, 1, 1, 2], [0], [0]>} : vector<2x8x8xf32>, vector<2x8x8xf32>, vector<2x8x8xf32> -> vector<2x8x8xf32>
    "tpu.trace_stop"() : () -> ()
    %38 = vector.shape_cast %37 : vector<2x8x8xf32> to vector<16x8xf32>
    %c0_16 = arith.constant 0 : index
    %c0_17 = arith.constant 0 : index
    %39 = vector.load %arg21[%c0_16, %c0_17] : memref<16x32xf32, #tpu.memory_space<vmem>>, vector<16x8xf32>
    tpu.vector_store %arg21[%c0_16, %c0_17], %38 {strides = array<i32>} : memref<16x32xf32, #tpu.memory_space<vmem>>, vector<16x8xf32>,
    %40 = vector.extract_strided_slice %13 {offsets = [0, 8], sizes = [16, 8], strides = [1, 1]} : vector<16x96xf32> to vector<16x8xf32>
    %41 = vector.shape_cast %40 : vector<16x8xf32> to vector<2x8x8xf32>
    %42 = vector.extract_strided_slice %13 {offsets = [0, 40], sizes = [16, 8], strides = [1, 1]} : vector<16x96xf32> to vector<16x8xf32>
    %43 = vector.shape_cast %42 : vector<16x8xf32> to vector<2x8x8xf32>
    %44 = vector.extract_strided_slice %13 {offsets = [0, 72], sizes = [16, 8], strides = [1, 1]} : vector<16x96xf32> to vector<16x8xf32>
    %45 = vector.shape_cast %44 : vector<16x8xf32> to vector<2x8x8xf32>
    "tpu.trace_start"() <{level = 10 : i32, message = "btd,bsd->bts"}> : () -> ()
    %cst_18 = arith.constant dense<0.000000e+00> : vector<2x8x8xf32>
    %46 = tpu.matmul %41, %43, %cst_18 {dimension_numbers = #tpu.dot_dimension_numbers<[2], [2], [1], [1], [0, 0, 0, 1, 1, 1], [0], [0]>} : vector<2x8x8xf32>, vector<2x8x8xf32>, vector<2x8x8xf32> -> vector<2x8x8xf32>
    "tpu.trace_stop"() : () -> ()
    %cst_19 = arith.constant 0.176776692 : f32
    %47 = vector.broadcast %cst_19 : f32 to vector<2x8x8xf32>
    %48 = arith.mulf %46, %47 : vector<2x8x8xf32>
    %cst_20 = arith.constant -1.000000e+30 : f32
    %49 = vector.shape_cast %9 : vector<1x8x8xi1> to vector<1x8x8xi1>
    %50 = vector.broadcast %49 : vector<1x8x8xi1> to vector<2x8x8xi1>
    %51 = vector.broadcast %cst_20 : f32 to vector<2x8x8xf32>
    %52 = arith.select %50, %48, %51 : vector<2x8x8xi1>, vector<2x8x8xf32>
    %cst_21 = arith.constant dense<0xFF800000> : vector<2x8xf32>
    %53 = vector.multi_reduction <maximumf>, %52, %cst_21 [2] : vector<2x8x8xf32> to vector<2x8xf32>
    %54 = vector.shape_cast %53 : vector<2x8xf32> to vector<2x8x1xf32>
    %55 = vector.broadcast %54 : vector<2x8x1xf32> to vector<2x8x8xf32>
    %56 = arith.subf %52, %55 : vector<2x8x8xf32>
    %57 = math.exp %56 : vector<2x8x8xf32>
    %cst_22 = arith.constant dense<0.000000e+00> : vector<2x8xf32>
    %58 = vector.multi_reduction <add>, %57, %cst_22 [2] : vector<2x8x8xf32> to vector<2x8xf32>
    %59 = vector.shape_cast %58 : vector<2x8xf32> to vector<2x8x1xf32>
    %60 = tpu.reciprocal %59 {approx = true} : vector<2x8x1xf32> -> vector<2x8x1xf32>
    %61 = vector.broadcast %60 : vector<2x8x1xf32> to vector<2x8x8xf32>
    %62 = arith.mulf %57, %61 : vector<2x8x8xf32>
    "tpu.trace_start"() <{level = 10 : i32, message = "bts,bsd->btd"}> : () -> ()
    %cst_23 = arith.constant dense<0.000000e+00> : vector<2x8x8xf32>
    %63 = tpu.matmul %62, %45, %cst_23 {dimension_numbers = #tpu.dot_dimension_numbers<[2], [1], [1], [2], [0, 0, 0, 1, 1, 2], [0], [0]>} : vector<2x8x8xf32>, vector<2x8x8xf32>, vector<2x8x8xf32> -> vector<2x8x8xf32>
    "tpu.trace_stop"() : () -> ()
    %64 = vector.shape_cast %63 : vector<2x8x8xf32> to vector<16x8xf32>
    %c0_24 = arith.constant 0 : index
    %c8 = arith.constant 8 : index
    %65 = vector.load %arg21[%c0_24, %c8] : memref<16x32xf32, #tpu.memory_space<vmem>>, vector<16x8xf32>
    tpu.vector_store %arg21[%c0_24, %c8], %64 {strides = array<i32>} : memref<16x32xf32, #tpu.memory_space<vmem>>, vector<16x8xf32>,
    %66 = vector.extract_strided_slice %13 {offsets = [0, 16], sizes = [16, 8], strides = [1, 1]} : vector<16x96xf32> to vector<16x8xf32>
    %67 = vector.shape_cast %66 : vector<16x8xf32> to vector<2x8x8xf32>
    %68 = vector.extract_strided_slice %13 {offsets = [0, 48], sizes = [16, 8], strides = [1, 1]} : vector<16x96xf32> to vector<16x8xf32>
    %69 = vector.shape_cast %68 : vector<16x8xf32> to vector<2x8x8xf32>
    %70 = vector.extract_strided_slice %13 {offsets = [0, 80], sizes = [16, 8], strides = [1, 1]} : vector<16x96xf32> to vector<16x8xf32>
    %71 = vector.shape_cast %70 : vector<16x8xf32> to vector<2x8x8xf32>
    "tpu.trace_start"() <{level = 10 : i32, message = "btd,bsd->bts"}> : () -> ()
    %cst_25 = arith.constant dense<0.000000e+00> : vector<2x8x8xf32>
    %72 = tpu.matmul %67, %69, %cst_25 {dimension_numbers = #tpu.dot_dimension_numbers<[2], [2], [1], [1], [0, 0, 0, 1, 1, 1], [0], [0]>} : vector<2x8x8xf32>, vector<2x8x8xf32>, vector<2x8x8xf32> -> vector<2x8x8xf32>
    "tpu.trace_stop"() : () -> ()
    %cst_26 = arith.constant 0.176776692 : f32
    %73 = vector.broadcast %cst_26 : f32 to vector<2x8x8xf32>
    %74 = arith.mulf %72, %73 : vector<2x8x8xf32>
    %cst_27 = arith.constant -1.000000e+30 : f32
    %75 = vector.shape_cast %9 : vector<1x8x8xi1> to vector<1x8x8xi1>
    %76 = vector.broadcast %75 : vector<1x8x8xi1> to vector<2x8x8xi1>
    %77 = vector.broadcast %cst_27 : f32 to vector<2x8x8xf32>
    %78 = arith.select %76, %74, %77 : vector<2x8x8xi1>, vector<2x8x8xf32>
    %cst_28 = arith.constant dense<0xFF800000> : vector<2x8xf32>
    %79 = vector.multi_reduction <maximumf>, %78, %cst_28 [2] : vector<2x8x8xf32> to vector<2x8xf32>
    %80 = vector.shape_cast %79 : vector<2x8xf32> to vector<2x8x1xf32>
    %81 = vector.broadcast %80 : vector<2x8x1xf32> to vector<2x8x8xf32>
    %82 = arith.subf %78, %81 : vector<2x8x8xf32>
    %83 = math.exp %82 : vector<2x8x8xf32>
    %cst_29 = arith.constant dense<0.000000e+00> : vector<2x8xf32>
    %84 = vector.multi_reduction <add>, %83, %cst_29 [2] : vector<2x8x8xf32> to vector<2x8xf32>
    %85 = vector.shape_cast %84 : vector<2x8xf32> to vector<2x8x1xf32>
    %86 = tpu.reciprocal %85 {approx = true} : vector<2x8x1xf32> -> vector<2x8x1xf32>
    %87 = vector.broadcast %86 : vector<2x8x1xf32> to vector<2x8x8xf32>
    %88 = arith.mulf %83, %87 : vector<2x8x8xf32>
    "tpu.trace_start"() <{level = 10 : i32, message = "bts,bsd->btd"}> : () -> ()
    %cst_30 = arith.constant dense<0.000000e+00> : vector<2x8x8xf32>
    %89 = tpu.matmul %88, %71, %cst_30 {dimension_numbers = #tpu.dot_dimension_numbers<[2], [1], [1], [2], [0, 0, 0, 1, 1, 2], [0], [0]>} : vector<2x8x8xf32>, vector<2x8x8xf32>, vector<2x8x8xf32> -> vector<2x8x8xf32>
    "tpu.trace_stop"() : () -> ()
    %90 = vector.shape_cast %89 : vector<2x8x8xf32> to vector<16x8xf32>
    %c0_31 = arith.constant 0 : index
    %c16 = arith.constant 16 : index
    %91 = vector.load %arg21[%c0_31, %c16] : memref<16x32xf32, #tpu.memory_space<vmem>>, vector<16x8xf32>
    tpu.vector_store %arg21[%c0_31, %c16], %90 {strides = array<i32>} : memref<16x32xf32, #tpu.memory_space<vmem>>, vector<16x8xf32>,
    %92 = vector.extract_strided_slice %13 {offsets = [0, 24], sizes = [16, 8], strides = [1, 1]} : vector<16x96xf32> to vector<16x8xf32>
    %93 = vector.shape_cast %92 : vector<16x8xf32> to vector<2x8x8xf32>
    %94 = vector.extract_strided_slice %13 {offsets = [0, 56], sizes = [16, 8], strides = [1, 1]} : vector<16x96xf32> to vector<16x8xf32>
    %95 = vector.shape_cast %94 : vector<16x8xf32> to vector<2x8x8xf32>
    %96 = vector.extract_strided_slice %13 {offsets = [0, 88], sizes = [16, 8], strides = [1, 1]} : vector<16x96xf32> to vector<16x8xf32>
    %97 = vector.shape_cast %96 : vector<16x8xf32> to vector<2x8x8xf32>
    "tpu.trace_start"() <{level = 10 : i32, message = "btd,bsd->bts"}> : () -> ()
    %cst_32 = arith.constant dense<0.000000e+00> : vector<2x8x8xf32>
    %98 = tpu.matmul %93, %95, %cst_32 {dimension_numbers = #tpu.dot_dimension_numbers<[2], [2], [1], [1], [0, 0, 0, 1, 1, 1], [0], [0]>} : vector<2x8x8xf32>, vector<2x8x8xf32>, vector<2x8x8xf32> -> vector<2x8x8xf32>
    "tpu.trace_stop"() : () -> ()
    %cst_33 = arith.constant 0.176776692 : f32
    %99 = vector.broadcast %cst_33 : f32 to vector<2x8x8xf32>
    %100 = arith.mulf %98, %99 : vector<2x8x8xf32>
    %cst_34 = arith.constant -1.000000e+30 : f32
    %101 = vector.shape_cast %9 : vector<1x8x8xi1> to vector<1x8x8xi1>
    %102 = vector.broadcast %101 : vector<1x8x8xi1> to vector<2x8x8xi1>
    %103 = vector.broadcast %cst_34 : f32 to vector<2x8x8xf32>
    %104 = arith.select %102, %100, %103 : vector<2x8x8xi1>, vector<2x8x8xf32>
    %cst_35 = arith.constant dense<0xFF800000> : vector<2x8xf32>
    %105 = vector.multi_reduction <maximumf>, %104, %cst_35 [2] : vector<2x8x8xf32> to vector<2x8xf32>
    %106 = vector.shape_cast %105 : vector<2x8xf32> to vector<2x8x1xf32>
    %107 = vector.broadcast %106 : vector<2x8x1xf32> to vector<2x8x8xf32>
    %108 = arith.subf %104, %107 : vector<2x8x8xf32>
    %109 = math.exp %108 : vector<2x8x8xf32>
    %cst_36 = arith.constant dense<0.000000e+00> : vector<2x8xf32>
    %110 = vector.multi_reduction <add>, %109, %cst_36 [2] : vector<2x8x8xf32> to vector<2x8xf32>
    %111 = vector.shape_cast %110 : vector<2x8xf32> to vector<2x8x1xf32>
    %112 = tpu.reciprocal %111 {approx = true} : vector<2x8x1xf32> -> vector<2x8x1xf32>
    %113 = vector.broadcast %112 : vector<2x8x1xf32> to vector<2x8x8xf32>
    %114 = arith.mulf %109, %113 : vector<2x8x8xf32>
    "tpu.trace_start"() <{level = 10 : i32, message = "bts,bsd->btd"}> : () -> ()
    %cst_37 = arith.constant dense<0.000000e+00> : vector<2x8x8xf32>
    %115 = tpu.matmul %114, %97, %cst_37 {dimension_numbers = #tpu.dot_dimension_numbers<[2], [1], [1], [2], [0, 0, 0, 1, 1, 2], [0], [0]>} : vector<2x8x8xf32>, vector<2x8x8xf32>, vector<2x8x8xf32> -> vector<2x8x8xf32>
    "tpu.trace_stop"() : () -> ()
    %116 = vector.shape_cast %115 : vector<2x8x8xf32> to vector<16x8xf32>
    %c0_38 = arith.constant 0 : index
    %c24 = arith.constant 24 : index
    %117 = vector.load %arg21[%c0_38, %c24] : memref<16x32xf32, #tpu.memory_space<vmem>>, vector<16x8xf32>
    tpu.vector_store %arg21[%c0_38, %c24], %116 {strides = array<i32>} : memref<16x32xf32, #tpu.memory_space<vmem>>, vector<16x8xf32>,
    %c0_39 = arith.constant 0 : index
    %c0_40 = arith.constant 0 : index
    %118 = vector.load %arg21[%c0_39, %c0_40] : memref<16x32xf32, #tpu.memory_space<vmem>>, vector<16x32xf32>
    %cst_41 = arith.constant dense<0.000000e+00> : vector<16x32xf32>
    %119 = tpu.matmul %118, %11, %cst_41 {dimension_numbers = #tpu.dot_dimension_numbers<[1], [0], [0], [1], [0, 0, 1, 1], [], []>} : vector<16x32xf32>, vector<32x32xf32>, vector<16x32xf32> -> vector<16x32xf32>
    %120 = vector.broadcast %12 : vector<1x32xf32> to vector<16x32xf32>
    %121 = arith.addf %119, %120 : vector<16x32xf32>
    %c0_42 = arith.constant 0 : index
    %c0_43 = arith.constant 0 : index
    %c0_44 = arith.constant 0 : index
    %122 = vector.load %arg5[%c0_42, %c0_43, %c0_44] : memref<2x1x32xf32, #tpu.memory_space<vmem>>, vector<1x1x32xf32>
    %123 = vector.shape_cast %122 : vector<1x1x32xf32> to vector<1x32xf32>
    %c0_45 = arith.constant 0 : index
    %c0_46 = arith.constant 0 : index
    %c0_47 = arith.constant 0 : index
    %124 = vector.load %arg6[%c0_45, %c0_46, %c0_47] : memref<2x1x32xf32, #tpu.memory_space<vmem>>, vector<1x1x32xf32>
    %125 = vector.shape_cast %124 : vector<1x1x32xf32> to vector<1x32xf32>
    %cst_48 = arith.constant dense<0.000000e+00> : vector<16xf32>
    %126 = vector.multi_reduction <add>, %121, %cst_48 [1] : vector<16x32xf32> to vector<16xf32>
    %127 = vector.shape_cast %126 : vector<16xf32> to vector<16x1xf32>
    %cst_49 = arith.constant 3.200000e+01 : f32
    %128 = vector.broadcast %cst_49 : f32 to vector<16x1xf32>
    %129 = arith.divf %127, %128 : vector<16x1xf32>
    %130 = vector.broadcast %129 : vector<16x1xf32> to vector<16x32xf32>
    %131 = arith.subf %121, %130 : vector<16x32xf32>
    %132 = arith.mulf %131, %131 : vector<16x32xf32>
    %cst_50 = arith.constant dense<0.000000e+00> : vector<16xf32>
    %133 = vector.multi_reduction <add>, %132, %cst_50 [1] : vector<16x32xf32> to vector<16xf32>
    %134 = vector.shape_cast %133 : vector<16xf32> to vector<16x1xf32>
    %cst_51 = arith.constant 3.200000e+01 : f32
    %135 = vector.broadcast %cst_51 : f32 to vector<16x1xf32>
    %136 = arith.divf %134, %135 : vector<16x1xf32>
    %137 = vector.broadcast %129 : vector<16x1xf32> to vector<16x32xf32>
    %138 = arith.subf %121, %137 : vector<16x32xf32>
    %cst_52 = arith.constant 9.99999974E-6 : f32
    %139 = vector.broadcast %cst_52 : f32 to vector<16x1xf32>
    %140 = arith.addf %136, %139 : vector<16x1xf32>
    %141 = math.rsqrt %140 : vector<16x1xf32>
    %142 = vector.broadcast %141 : vector<16x1xf32> to vector<16x32xf32>
    %143 = arith.mulf %138, %142 : vector<16x32xf32>
    %144 = vector.broadcast %123 : vector<1x32xf32> to vector<16x32xf32>
    %145 = arith.mulf %143, %144 : vector<16x32xf32>
    %146 = vector.broadcast %125 : vector<1x32xf32> to vector<16x32xf32>
    %147 = arith.addf %145, %146 : vector<16x32xf32>
    %c0_53 = arith.constant 0 : index
    %c0_54 = arith.constant 0 : index
    %c0_55 = arith.constant 0 : index
    %148 = vector.load %arg7[%c0_53, %c0_54, %c0_55] : memref<2x32x96xf32, #tpu.memory_space<vmem>>, vector<1x32x96xf32>
    %149 = vector.shape_cast %148 : vector<1x32x96xf32> to vector<32x96xf32>
    %c0_56 = arith.constant 0 : index
    %c0_57 = arith.constant 0 : index
    %c0_58 = arith.constant 0 : index
    %150 = vector.load %arg8[%c0_56, %c0_57, %c0_58] : memref<2x32x32xf32, #tpu.memory_space<vmem>>, vector<1x32x32xf32>
    %151 = vector.shape_cast %150 : vector<1x32x32xf32> to vector<32x32xf32>
    %c0_59 = arith.constant 0 : index
    %c0_60 = arith.constant 0 : index
    %c0_61 = arith.constant 0 : index
    %152 = vector.load %arg9[%c0_59, %c0_60, %c0_61] : memref<2x1x32xf32, #tpu.memory_space<vmem>>, vector<1x1x32xf32>
    %153 = vector.shape_cast %152 : vector<1x1x32xf32> to vector<1x32xf32>
    %cst_62 = arith.constant dense<0.000000e+00> : vector<16x96xf32>
    %154 = tpu.matmul %147, %149, %cst_62 {dimension_numbers = #tpu.dot_dimension_numbers<[1], [0], [0], [1], [0, 0, 1, 1], [], []>} : vector<16x32xf32>, vector<32x96xf32>, vector<16x96xf32> -> vector<16x96xf32>
    %155 = vector.extract_strided_slice %154 {offsets = [0, 0], sizes = [16, 8], strides = [1, 1]} : vector<16x96xf32> to vector<16x8xf32>
    %156 = vector.shape_cast %155 : vector<16x8xf32> to vector<2x8x8xf32>
    %157 = vector.extract_strided_slice %154 {offsets = [0, 32], sizes = [16, 8], strides = [1, 1]} : vector<16x96xf32> to vector<16x8xf32>
    %158 = vector.shape_cast %157 : vector<16x8xf32> to vector<2x8x8xf32>
    %159 = vector.extract_strided_slice %154 {offsets = [0, 64], sizes = [16, 8], strides = [1, 1]} : vector<16x96xf32> to vector<16x8xf32>
    %160 = vector.shape_cast %159 : vector<16x8xf32> to vector<2x8x8xf32>
    "tpu.trace_start"() <{level = 10 : i32, message = "btd,bsd->bts"}> : () -> ()
    %cst_63 = arith.constant dense<0.000000e+00> : vector<2x8x8xf32>
    %161 = tpu.matmul %156, %158, %cst_63 {dimension_numbers = #tpu.dot_dimension_numbers<[2], [2], [1], [1], [0, 0, 0, 1, 1, 1], [0], [0]>} : vector<2x8x8xf32>, vector<2x8x8xf32>, vector<2x8x8xf32> -> vector<2x8x8xf32>
    "tpu.trace_stop"() : () -> ()
    %cst_64 = arith.constant 0.176776692 : f32
    %162 = vector.broadcast %cst_64 : f32 to vector<2x8x8xf32>
    %163 = arith.mulf %161, %162 : vector<2x8x8xf32>
    %cst_65 = arith.constant -1.000000e+30 : f32
    %164 = vector.shape_cast %9 : vector<1x8x8xi1> to vector<1x8x8xi1>
    %165 = vector.broadcast %164 : vector<1x8x8xi1> to vector<2x8x8xi1>
    %166 = vector.broadcast %cst_65 : f32 to vector<2x8x8xf32>
    %167 = arith.select %165, %163, %166 : vector<2x8x8xi1>, vector<2x8x8xf32>
    %cst_66 = arith.constant dense<0xFF800000> : vector<2x8xf32>
    %168 = vector.multi_reduction <maximumf>, %167, %cst_66 [2] : vector<2x8x8xf32> to vector<2x8xf32>
    %169 = vector.shape_cast %168 : vector<2x8xf32> to vector<2x8x1xf32>
    %170 = vector.broadcast %169 : vector<2x8x1xf32> to vector<2x8x8xf32>
    %171 = arith.subf %167, %170 : vector<2x8x8xf32>
    %172 = math.exp %171 : vector<2x8x8xf32>
    %cst_67 = arith.constant dense<0.000000e+00> : vector<2x8xf32>
    %173 = vector.multi_reduction <add>, %172, %cst_67 [2] : vector<2x8x8xf32> to vector<2x8xf32>
    %174 = vector.shape_cast %173 : vector<2x8xf32> to vector<2x8x1xf32>
    %175 = tpu.reciprocal %174 {approx = true} : vector<2x8x1xf32> -> vector<2x8x1xf32>
    %176 = vector.broadcast %175 : vector<2x8x1xf32> to vector<2x8x8xf32>
    %177 = arith.mulf %172, %176 : vector<2x8x8xf32>
    "tpu.trace_start"() <{level = 10 : i32, message = "bts,bsd->btd"}> : () -> ()
    %cst_68 = arith.constant dense<0.000000e+00> : vector<2x8x8xf32>
    %178 = tpu.matmul %177, %160, %cst_68 {dimension_numbers = #tpu.dot_dimension_numbers<[2], [1], [1], [2], [0, 0, 0, 1, 1, 2], [0], [0]>} : vector<2x8x8xf32>, vector<2x8x8xf32>, vector<2x8x8xf32> -> vector<2x8x8xf32>
    "tpu.trace_stop"() : () -> ()
    %179 = vector.shape_cast %178 : vector<2x8x8xf32> to vector<16x8xf32>
    %c0_69 = arith.constant 0 : index
    %c0_70 = arith.constant 0 : index
    %180 = vector.load %arg21[%c0_69, %c0_70] : memref<16x32xf32, #tpu.memory_space<vmem>>, vector<16x8xf32>
    tpu.vector_store %arg21[%c0_69, %c0_70], %179 {strides = array<i32>} : memref<16x32xf32, #tpu.memory_space<vmem>>, vector<16x8xf32>,
    %181 = vector.extract_strided_slice %154 {offsets = [0, 8], sizes = [16, 8], strides = [1, 1]} : vector<16x96xf32> to vector<16x8xf32>
    %182 = vector.shape_cast %181 : vector<16x8xf32> to vector<2x8x8xf32>
    %183 = vector.extract_strided_slice %154 {offsets = [0, 40], sizes = [16, 8], strides = [1, 1]} : vector<16x96xf32> to vector<16x8xf32>
    %184 = vector.shape_cast %183 : vector<16x8xf32> to vector<2x8x8xf32>
    %185 = vector.extract_strided_slice %154 {offsets = [0, 72], sizes = [16, 8], strides = [1, 1]} : vector<16x96xf32> to vector<16x8xf32>
    %186 = vector.shape_cast %185 : vector<16x8xf32> to vector<2x8x8xf32>
    "tpu.trace_start"() <{level = 10 : i32, message = "btd,bsd->bts"}> : () -> ()
    %cst_71 = arith.constant dense<0.000000e+00> : vector<2x8x8xf32>
    %187 = tpu.matmul %182, %184, %cst_71 {dimension_numbers = #tpu.dot_dimension_numbers<[2], [2], [1], [1], [0, 0, 0, 1, 1, 1], [0], [0]>} : vector<2x8x8xf32>, vector<2x8x8xf32>, vector<2x8x8xf32> -> vector<2x8x8xf32>
    "tpu.trace_stop"() : () -> ()
    %cst_72 = arith.constant 0.176776692 : f32
    %188 = vector.broadcast %cst_72 : f32 to vector<2x8x8xf32>
    %189 = arith.mulf %187, %188 : vector<2x8x8xf32>
    %cst_73 = arith.constant -1.000000e+30 : f32
    %190 = vector.shape_cast %9 : vector<1x8x8xi1> to vector<1x8x8xi1>
    %191 = vector.broadcast %190 : vector<1x8x8xi1> to vector<2x8x8xi1>
    %192 = vector.broadcast %cst_73 : f32 to vector<2x8x8xf32>
    %193 = arith.select %191, %189, %192 : vector<2x8x8xi1>, vector<2x8x8xf32>
    %cst_74 = arith.constant dense<0xFF800000> : vector<2x8xf32>
    %194 = vector.multi_reduction <maximumf>, %193, %cst_74 [2] : vector<2x8x8xf32> to vector<2x8xf32>
    %195 = vector.shape_cast %194 : vector<2x8xf32> to vector<2x8x1xf32>
    %196 = vector.broadcast %195 : vector<2x8x1xf32> to vector<2x8x8xf32>
    %197 = arith.subf %193, %196 : vector<2x8x8xf32>
    %198 = math.exp %197 : vector<2x8x8xf32>
    %cst_75 = arith.constant dense<0.000000e+00> : vector<2x8xf32>
    %199 = vector.multi_reduction <add>, %198, %cst_75 [2] : vector<2x8x8xf32> to vector<2x8xf32>
    %200 = vector.shape_cast %199 : vector<2x8xf32> to vector<2x8x1xf32>
    %201 = tpu.reciprocal %200 {approx = true} : vector<2x8x1xf32> -> vector<2x8x1xf32>
    %202 = vector.broadcast %201 : vector<2x8x1xf32> to vector<2x8x8xf32>
    %203 = arith.mulf %198, %202 : vector<2x8x8xf32>
    "tpu.trace_start"() <{level = 10 : i32, message = "bts,bsd->btd"}> : () -> ()
    %cst_76 = arith.constant dense<0.000000e+00> : vector<2x8x8xf32>
    %204 = tpu.matmul %203, %186, %cst_76 {dimension_numbers = #tpu.dot_dimension_numbers<[2], [1], [1], [2], [0, 0, 0, 1, 1, 2], [0], [0]>} : vector<2x8x8xf32>, vector<2x8x8xf32>, vector<2x8x8xf32> -> vector<2x8x8xf32>
    "tpu.trace_stop"() : () -> ()
    %205 = vector.shape_cast %204 : vector<2x8x8xf32> to vector<16x8xf32>
    %c0_77 = arith.constant 0 : index
    %c8_78 = arith.constant 8 : index
    %206 = vector.load %arg21[%c0_77, %c8_78] : memref<16x32xf32, #tpu.memory_space<vmem>>, vector<16x8xf32>
    tpu.vector_store %arg21[%c0_77, %c8_78], %205 {strides = array<i32>} : memref<16x32xf32, #tpu.memory_space<vmem>>, vector<16x8xf32>,
    %207 = vector.extract_strided_slice %154 {offsets = [0, 16], sizes = [16, 8], strides = [1, 1]} : vector<16x96xf32> to vector<16x8xf32>
    %208 = vector.shape_cast %207 : vector<16x8xf32> to vector<2x8x8xf32>
    %209 = vector.extract_strided_slice %154 {offsets = [0, 48], sizes = [16, 8], strides = [1, 1]} : vector<16x96xf32> to vector<16x8xf32>
    %210 = vector.shape_cast %209 : vector<16x8xf32> to vector<2x8x8xf32>
    %211 = vector.extract_strided_slice %154 {offsets = [0, 80], sizes = [16, 8], strides = [1, 1]} : vector<16x96xf32> to vector<16x8xf32>
    %212 = vector.shape_cast %211 : vector<16x8xf32> to vector<2x8x8xf32>
    "tpu.trace_start"() <{level = 10 : i32, message = "btd,bsd->bts"}> : () -> ()
    %cst_79 = arith.constant dense<0.000000e+00> : vector<2x8x8xf32>
    %213 = tpu.matmul %208, %210, %cst_79 {dimension_numbers = #tpu.dot_dimension_numbers<[2], [2], [1], [1], [0, 0, 0, 1, 1, 1], [0], [0]>} : vector<2x8x8xf32>, vector<2x8x8xf32>, vector<2x8x8xf32> -> vector<2x8x8xf32>
    "tpu.trace_stop"() : () -> ()
    %cst_80 = arith.constant 0.176776692 : f32
    %214 = vector.broadcast %cst_80 : f32 to vector<2x8x8xf32>
    %215 = arith.mulf %213, %214 : vector<2x8x8xf32>
    %cst_81 = arith.constant -1.000000e+30 : f32
    %216 = vector.shape_cast %9 : vector<1x8x8xi1> to vector<1x8x8xi1>
    %217 = vector.broadcast %216 : vector<1x8x8xi1> to vector<2x8x8xi1>
    %218 = vector.broadcast %cst_81 : f32 to vector<2x8x8xf32>
    %219 = arith.select %217, %215, %218 : vector<2x8x8xi1>, vector<2x8x8xf32>
    %cst_82 = arith.constant dense<0xFF800000> : vector<2x8xf32>
    %220 = vector.multi_reduction <maximumf>, %219, %cst_82 [2] : vector<2x8x8xf32> to vector<2x8xf32>
    %221 = vector.shape_cast %220 : vector<2x8xf32> to vector<2x8x1xf32>
    %222 = vector.broadcast %221 : vector<2x8x1xf32> to vector<2x8x8xf32>
    %223 = arith.subf %219, %222 : vector<2x8x8xf32>
    %224 = math.exp %223 : vector<2x8x8xf32>
    %cst_83 = arith.constant dense<0.000000e+00> : vector<2x8xf32>
    %225 = vector.multi_reduction <add>, %224, %cst_83 [2] : vector<2x8x8xf32> to vector<2x8xf32>
    %226 = vector.shape_cast %225 : vector<2x8xf32> to vector<2x8x1xf32>
    %227 = tpu.reciprocal %226 {approx = true} : vector<2x8x1xf32> -> vector<2x8x1xf32>
    %228 = vector.broadcast %227 : vector<2x8x1xf32> to vector<2x8x8xf32>
    %229 = arith.mulf %224, %228 : vector<2x8x8xf32>
    "tpu.trace_start"() <{level = 10 : i32, message = "bts,bsd->btd"}> : () -> ()
    %cst_84 = arith.constant dense<0.000000e+00> : vector<2x8x8xf32>
    %230 = tpu.matmul %229, %212, %cst_84 {dimension_numbers = #tpu.dot_dimension_numbers<[2], [1], [1], [2], [0, 0, 0, 1, 1, 2], [0], [0]>} : vector<2x8x8xf32>, vector<2x8x8xf32>, vector<2x8x8xf32> -> vector<2x8x8xf32>
    "tpu.trace_stop"() : () -> ()
    %231 = vector.shape_cast %230 : vector<2x8x8xf32> to vector<16x8xf32>
    %c0_85 = arith.constant 0 : index
    %c16_86 = arith.constant 16 : index
    %232 = vector.load %arg21[%c0_85, %c16_86] : memref<16x32xf32, #tpu.memory_space<vmem>>, vector<16x8xf32>
    tpu.vector_store %arg21[%c0_85, %c16_86], %231 {strides = array<i32>} : memref<16x32xf32, #tpu.memory_space<vmem>>, vector<16x8xf32>,
    %233 = vector.extract_strided_slice %154 {offsets = [0, 24], sizes = [16, 8], strides = [1, 1]} : vector<16x96xf32> to vector<16x8xf32>
    %234 = vector.shape_cast %233 : vector<16x8xf32> to vector<2x8x8xf32>
    %235 = vector.extract_strided_slice %154 {offsets = [0, 56], sizes = [16, 8], strides = [1, 1]} : vector<16x96xf32> to vector<16x8xf32>
    %236 = vector.shape_cast %235 : vector<16x8xf32> to vector<2x8x8xf32>
    %237 = vector.extract_strided_slice %154 {offsets = [0, 88], sizes = [16, 8], strides = [1, 1]} : vector<16x96xf32> to vector<16x8xf32>
    %238 = vector.shape_cast %237 : vector<16x8xf32> to vector<2x8x8xf32>
    "tpu.trace_start"() <{level = 10 : i32, message = "btd,bsd->bts"}> : () -> ()
    %cst_87 = arith.constant dense<0.000000e+00> : vector<2x8x8xf32>
    %239 = tpu.matmul %234, %236, %cst_87 {dimension_numbers = #tpu.dot_dimension_numbers<[2], [2], [1], [1], [0, 0, 0, 1, 1, 1], [0], [0]>} : vector<2x8x8xf32>, vector<2x8x8xf32>, vector<2x8x8xf32> -> vector<2x8x8xf32>
    "tpu.trace_stop"() : () -> ()
    %cst_88 = arith.constant 0.176776692 : f32
    %240 = vector.broadcast %cst_88 : f32 to vector<2x8x8xf32>
    %241 = arith.mulf %239, %240 : vector<2x8x8xf32>
    %cst_89 = arith.constant -1.000000e+30 : f32
    %242 = vector.shape_cast %9 : vector<1x8x8xi1> to vector<1x8x8xi1>
    %243 = vector.broadcast %242 : vector<1x8x8xi1> to vector<2x8x8xi1>
    %244 = vector.broadcast %cst_89 : f32 to vector<2x8x8xf32>
    %245 = arith.select %243, %241, %244 : vector<2x8x8xi1>, vector<2x8x8xf32>
    %cst_90 = arith.constant dense<0xFF800000> : vector<2x8xf32>
    %246 = vector.multi_reduction <maximumf>, %245, %cst_90 [2] : vector<2x8x8xf32> to vector<2x8xf32>
    %247 = vector.shape_cast %246 : vector<2x8xf32> to vector<2x8x1xf32>
    %248 = vector.broadcast %247 : vector<2x8x1xf32> to vector<2x8x8xf32>
    %249 = arith.subf %245, %248 : vector<2x8x8xf32>
    %250 = math.exp %249 : vector<2x8x8xf32>
    %cst_91 = arith.constant dense<0.000000e+00> : vector<2x8xf32>
    %251 = vector.multi_reduction <add>, %250, %cst_91 [2] : vector<2x8x8xf32> to vector<2x8xf32>
    %252 = vector.shape_cast %251 : vector<2x8xf32> to vector<2x8x1xf32>
    %253 = tpu.reciprocal %252 {approx = true} : vector<2x8x1xf32> -> vector<2x8x1xf32>
    %254 = vector.broadcast %253 : vector<2x8x1xf32> to vector<2x8x8xf32>
    %255 = arith.mulf %250, %254 : vector<2x8x8xf32>
    "tpu.trace_start"() <{level = 10 : i32, message = "bts,bsd->btd"}> : () -> ()
    %cst_92 = arith.constant dense<0.000000e+00> : vector<2x8x8xf32>
    %256 = tpu.matmul %255, %238, %cst_92 {dimension_numbers = #tpu.dot_dimension_numbers<[2], [1], [1], [2], [0, 0, 0, 1, 1, 2], [0], [0]>} : vector<2x8x8xf32>, vector<2x8x8xf32>, vector<2x8x8xf32> -> vector<2x8x8xf32>
    "tpu.trace_stop"() : () -> ()
    %257 = vector.shape_cast %256 : vector<2x8x8xf32> to vector<16x8xf32>
    %c0_93 = arith.constant 0 : index
    %c24_94 = arith.constant 24 : index
    %258 = vector.load %arg21[%c0_93, %c24_94] : memref<16x32xf32, #tpu.memory_space<vmem>>, vector<16x8xf32>
    tpu.vector_store %arg21[%c0_93, %c24_94], %257 {strides = array<i32>} : memref<16x32xf32, #tpu.memory_space<vmem>>, vector<16x8xf32>,
    %c0_95 = arith.constant 0 : index
    %c0_96 = arith.constant 0 : index
    %259 = vector.load %arg21[%c0_95, %c0_96] : memref<16x32xf32, #tpu.memory_space<vmem>>, vector<16x32xf32>
    %cst_97 = arith.constant dense<0.000000e+00> : vector<16x32xf32>
    %260 = tpu.matmul %259, %151, %cst_97 {dimension_numbers = #tpu.dot_dimension_numbers<[1], [0], [0], [1], [0, 0, 1, 1], [], []>} : vector<16x32xf32>, vector<32x32xf32>, vector<16x32xf32> -> vector<16x32xf32>
    %261 = vector.broadcast %153 : vector<1x32xf32> to vector<16x32xf32>
    %262 = arith.addf %260, %261 : vector<16x32xf32>
    %263 = arith.addf %121, %262 : vector<16x32xf32>
    %c0_98 = arith.constant 0 : index
    %c0_99 = arith.constant 0 : index
    %c0_100 = arith.constant 0 : index
    %264 = vector.load %arg10[%c0_98, %c0_99, %c0_100] : memref<2x1x32xf32, #tpu.memory_space<vmem>>, vector<1x1x32xf32>
    %265 = vector.shape_cast %264 : vector<1x1x32xf32> to vector<1x32xf32>
    %c0_101 = arith.constant 0 : index
    %c0_102 = arith.constant 0 : index
    %c0_103 = arith.constant 0 : index
    %266 = vector.load %arg11[%c0_101, %c0_102, %c0_103] : memref<2x1x32xf32, #tpu.memory_space<vmem>>, vector<1x1x32xf32>
    %267 = vector.shape_cast %266 : vector<1x1x32xf32> to vector<1x32xf32>
    %cst_104 = arith.constant dense<0.000000e+00> : vector<16xf32>
    %268 = vector.multi_reduction <add>, %263, %cst_104 [1] : vector<16x32xf32> to vector<16xf32>
    %269 = vector.shape_cast %268 : vector<16xf32> to vector<16x1xf32>
    %cst_105 = arith.constant 3.200000e+01 : f32
    %270 = vector.broadcast %cst_105 : f32 to vector<16x1xf32>
    %271 = arith.divf %269, %270 : vector<16x1xf32>
    %272 = vector.broadcast %271 : vector<16x1xf32> to vector<16x32xf32>
    %273 = arith.subf %263, %272 : vector<16x32xf32>
    %274 = arith.mulf %273, %273 : vector<16x32xf32>
    %cst_106 = arith.constant dense<0.000000e+00> : vector<16xf32>
    %275 = vector.multi_reduction <add>, %274, %cst_106 [1] : vector<16x32xf32> to vector<16xf32>
    %276 = vector.shape_cast %275 : vector<16xf32> to vector<16x1xf32>
    %cst_107 = arith.constant 3.200000e+01 : f32
    %277 = vector.broadcast %cst_107 : f32 to vector<16x1xf32>
    %278 = arith.divf %276, %277 : vector<16x1xf32>
    %279 = vector.broadcast %271 : vector<16x1xf32> to vector<16x32xf32>
    %280 = arith.subf %263, %279 : vector<16x32xf32>
    %cst_108 = arith.constant 9.99999974E-6 : f32
    %281 = vector.broadcast %cst_108 : f32 to vector<16x1xf32>
    %282 = arith.addf %278, %281 : vector<16x1xf32>
    %283 = math.rsqrt %282 : vector<16x1xf32>
    %284 = vector.broadcast %283 : vector<16x1xf32> to vector<16x32xf32>
    %285 = arith.mulf %280, %284 : vector<16x32xf32>
    %286 = vector.broadcast %265 : vector<1x32xf32> to vector<16x32xf32>
    %287 = arith.mulf %285, %286 : vector<16x32xf32>
    %288 = vector.broadcast %267 : vector<1x32xf32> to vector<16x32xf32>
    %289 = arith.addf %287, %288 : vector<16x32xf32>
    %c0_109 = arith.constant 0 : index
    %c0_110 = arith.constant 0 : index
    %c0_111 = arith.constant 0 : index
    %290 = vector.load %arg12[%c0_109, %c0_110, %c0_111] : memref<2x32x128xf32, #tpu.memory_space<vmem>>, vector<1x32x128xf32>
    %291 = vector.shape_cast %290 : vector<1x32x128xf32> to vector<32x128xf32>
    %cst_112 = arith.constant dense<0.000000e+00> : vector<16x128xf32>
    %292 = tpu.matmul %289, %291, %cst_112 {dimension_numbers = #tpu.dot_dimension_numbers<[1], [0], [0], [1], [0, 0, 1, 1], [], []>} : vector<16x32xf32>, vector<32x128xf32>, vector<16x128xf32> -> vector<16x128xf32>
    %c0_113 = arith.constant 0 : index
    %c0_114 = arith.constant 0 : index
    %c0_115 = arith.constant 0 : index
    %293 = vector.load %arg13[%c0_113, %c0_114, %c0_115] : memref<2x1x128xf32, #tpu.memory_space<vmem>>, vector<1x1x128xf32>
    %294 = vector.shape_cast %293 : vector<1x1x128xf32> to vector<1x128xf32>
    %295 = vector.broadcast %294 : vector<1x128xf32> to vector<16x128xf32>
    %296 = arith.addf %292, %295 : vector<16x128xf32>
    %cst_116 = arith.constant 0.000000e+00 : f32
    %297 = vector.broadcast %cst_116 : f32 to vector<16x128xf32>
    %298 = arith.maximumf %296, %297 : vector<16x128xf32>
    %c0_117 = arith.constant 0 : index
    %c0_118 = arith.constant 0 : index
    %c0_119 = arith.constant 0 : index
    %299 = vector.load %arg14[%c0_117, %c0_118, %c0_119] : memref<2x128x32xf32, #tpu.memory_space<vmem>>, vector<1x128x32xf32>
    %300 = vector.shape_cast %299 : vector<1x128x32xf32> to vector<128x32xf32>
    %cst_120 = arith.constant dense<0.000000e+00> : vector<16x32xf32>
    %301 = tpu.matmul %298, %300, %cst_120 {dimension_numbers = #tpu.dot_dimension_numbers<[1], [0], [0], [1], [0, 0, 1, 1], [], []>} : vector<16x128xf32>, vector<128x32xf32>, vector<16x32xf32> -> vector<16x32xf32>
    %c0_121 = arith.constant 0 : index
    %c0_122 = arith.constant 0 : index
    %c0_123 = arith.constant 0 : index
    %302 = vector.load %arg15[%c0_121, %c0_122, %c0_123] : memref<2x1x32xf32, #tpu.memory_space<vmem>>, vector<1x1x32xf32>
    %303 = vector.shape_cast %302 : vector<1x1x32xf32> to vector<1x32xf32>
    %304 = vector.broadcast %303 : vector<1x32xf32> to vector<16x32xf32>
    %305 = arith.addf %301, %304 : vector<16x32xf32>
    %306 = arith.addf %263, %305 : vector<16x32xf32>
    %c1 = arith.constant 1 : index
    %c0_124 = arith.constant 0 : index
    %c0_125 = arith.constant 0 : index
    %307 = vector.load %arg5[%c1, %c0_124, %c0_125] : memref<2x1x32xf32, #tpu.memory_space<vmem>>, vector<1x1x32xf32>
    %308 = vector.shape_cast %307 : vector<1x1x32xf32> to vector<1x32xf32>
    %c1_126 = arith.constant 1 : index
    %c0_127 = arith.constant 0 : index
    %c0_128 = arith.constant 0 : index
    %309 = vector.load %arg6[%c1_126, %c0_127, %c0_128] : memref<2x1x32xf32, #tpu.memory_space<vmem>>, vector<1x1x32xf32>
    %310 = vector.shape_cast %309 : vector<1x1x32xf32> to vector<1x32xf32>
    %cst_129 = arith.constant dense<0.000000e+00> : vector<16xf32>
    %311 = vector.multi_reduction <add>, %306, %cst_129 [1] : vector<16x32xf32> to vector<16xf32>
    %312 = vector.shape_cast %311 : vector<16xf32> to vector<16x1xf32>
    %cst_130 = arith.constant 3.200000e+01 : f32
    %313 = vector.broadcast %cst_130 : f32 to vector<16x1xf32>
    %314 = arith.divf %312, %313 : vector<16x1xf32>
    %315 = vector.broadcast %314 : vector<16x1xf32> to vector<16x32xf32>
    %316 = arith.subf %306, %315 : vector<16x32xf32>
    %317 = arith.mulf %316, %316 : vector<16x32xf32>
    %cst_131 = arith.constant dense<0.000000e+00> : vector<16xf32>
    %318 = vector.multi_reduction <add>, %317, %cst_131 [1] : vector<16x32xf32> to vector<16xf32>
    %319 = vector.shape_cast %318 : vector<16xf32> to vector<16x1xf32>
    %cst_132 = arith.constant 3.200000e+01 : f32
    %320 = vector.broadcast %cst_132 : f32 to vector<16x1xf32>
    %321 = arith.divf %319, %320 : vector<16x1xf32>
    %322 = vector.broadcast %314 : vector<16x1xf32> to vector<16x32xf32>
    %323 = arith.subf %306, %322 : vector<16x32xf32>
    %cst_133 = arith.constant 9.99999974E-6 : f32
    %324 = vector.broadcast %cst_133 : f32 to vector<16x1xf32>
    %325 = arith.addf %321, %324 : vector<16x1xf32>
    %326 = math.rsqrt %325 : vector<16x1xf32>
    %327 = vector.broadcast %326 : vector<16x1xf32> to vector<16x32xf32>
    %328 = arith.mulf %323, %327 : vector<16x32xf32>
    %329 = vector.broadcast %308 : vector<1x32xf32> to vector<16x32xf32>
    %330 = arith.mulf %328, %329 : vector<16x32xf32>
    %331 = vector.broadcast %310 : vector<1x32xf32> to vector<16x32xf32>
    %332 = arith.addf %330, %331 : vector<16x32xf32>
    %c1_134 = arith.constant 1 : index
    %c0_135 = arith.constant 0 : index
    %c0_136 = arith.constant 0 : index
    %333 = vector.load %arg7[%c1_134, %c0_135, %c0_136] : memref<2x32x96xf32, #tpu.memory_space<vmem>>, vector<1x32x96xf32>
    %334 = vector.shape_cast %333 : vector<1x32x96xf32> to vector<32x96xf32>
    %c1_137 = arith.constant 1 : index
    %c0_138 = arith.constant 0 : index
    %c0_139 = arith.constant 0 : index
    %335 = vector.load %arg8[%c1_137, %c0_138, %c0_139] : memref<2x32x32xf32, #tpu.memory_space<vmem>>, vector<1x32x32xf32>
    %336 = vector.shape_cast %335 : vector<1x32x32xf32> to vector<32x32xf32>
    %c1_140 = arith.constant 1 : index
    %c0_141 = arith.constant 0 : index
    %c0_142 = arith.constant 0 : index
    %337 = vector.load %arg9[%c1_140, %c0_141, %c0_142] : memref<2x1x32xf32, #tpu.memory_space<vmem>>, vector<1x1x32xf32>
    %338 = vector.shape_cast %337 : vector<1x1x32xf32> to vector<1x32xf32>
    %cst_143 = arith.constant dense<0.000000e+00> : vector<16x96xf32>
    %339 = tpu.matmul %332, %334, %cst_143 {dimension_numbers = #tpu.dot_dimension_numbers<[1], [0], [0], [1], [0, 0, 1, 1], [], []>} : vector<16x32xf32>, vector<32x96xf32>, vector<16x96xf32> -> vector<16x96xf32>
    %340 = vector.extract_strided_slice %339 {offsets = [0, 0], sizes = [16, 8], strides = [1, 1]} : vector<16x96xf32> to vector<16x8xf32>
    %341 = vector.shape_cast %340 : vector<16x8xf32> to vector<2x8x8xf32>
    %342 = vector.extract_strided_slice %339 {offsets = [0, 32], sizes = [16, 8], strides = [1, 1]} : vector<16x96xf32> to vector<16x8xf32>
    %343 = vector.shape_cast %342 : vector<16x8xf32> to vector<2x8x8xf32>
    %344 = vector.extract_strided_slice %339 {offsets = [0, 64], sizes = [16, 8], strides = [1, 1]} : vector<16x96xf32> to vector<16x8xf32>
    %345 = vector.shape_cast %344 : vector<16x8xf32> to vector<2x8x8xf32>
    "tpu.trace_start"() <{level = 10 : i32, message = "btd,bsd->bts"}> : () -> ()
    %cst_144 = arith.constant dense<0.000000e+00> : vector<2x8x8xf32>
    %346 = tpu.matmul %341, %343, %cst_144 {dimension_numbers = #tpu.dot_dimension_numbers<[2], [2], [1], [1], [0, 0, 0, 1, 1, 1], [0], [0]>} : vector<2x8x8xf32>, vector<2x8x8xf32>, vector<2x8x8xf32> -> vector<2x8x8xf32>
    "tpu.trace_stop"() : () -> ()
    %cst_145 = arith.constant 0.176776692 : f32
    %347 = vector.broadcast %cst_145 : f32 to vector<2x8x8xf32>
    %348 = arith.mulf %346, %347 : vector<2x8x8xf32>
    %cst_146 = arith.constant -1.000000e+30 : f32
    %349 = vector.shape_cast %9 : vector<1x8x8xi1> to vector<1x8x8xi1>
    %350 = vector.broadcast %349 : vector<1x8x8xi1> to vector<2x8x8xi1>
    %351 = vector.broadcast %cst_146 : f32 to vector<2x8x8xf32>
    %352 = arith.select %350, %348, %351 : vector<2x8x8xi1>, vector<2x8x8xf32>
    %cst_147 = arith.constant dense<0xFF800000> : vector<2x8xf32>
    %353 = vector.multi_reduction <maximumf>, %352, %cst_147 [2] : vector<2x8x8xf32> to vector<2x8xf32>
    %354 = vector.shape_cast %353 : vector<2x8xf32> to vector<2x8x1xf32>
    %355 = vector.broadcast %354 : vector<2x8x1xf32> to vector<2x8x8xf32>
    %356 = arith.subf %352, %355 : vector<2x8x8xf32>
    %357 = math.exp %356 : vector<2x8x8xf32>
    %cst_148 = arith.constant dense<0.000000e+00> : vector<2x8xf32>
    %358 = vector.multi_reduction <add>, %357, %cst_148 [2] : vector<2x8x8xf32> to vector<2x8xf32>
    %359 = vector.shape_cast %358 : vector<2x8xf32> to vector<2x8x1xf32>
    %360 = tpu.reciprocal %359 {approx = true} : vector<2x8x1xf32> -> vector<2x8x1xf32>
    %361 = vector.broadcast %360 : vector<2x8x1xf32> to vector<2x8x8xf32>
    %362 = arith.mulf %357, %361 : vector<2x8x8xf32>
    "tpu.trace_start"() <{level = 10 : i32, message = "bts,bsd->btd"}> : () -> ()
    %cst_149 = arith.constant dense<0.000000e+00> : vector<2x8x8xf32>
    %363 = tpu.matmul %362, %345, %cst_149 {dimension_numbers = #tpu.dot_dimension_numbers<[2], [1], [1], [2], [0, 0, 0, 1, 1, 2], [0], [0]>} : vector<2x8x8xf32>, vector<2x8x8xf32>, vector<2x8x8xf32> -> vector<2x8x8xf32>
    "tpu.trace_stop"() : () -> ()
    %364 = vector.shape_cast %363 : vector<2x8x8xf32> to vector<16x8xf32>
    %c0_150 = arith.constant 0 : index
    %c0_151 = arith.constant 0 : index
    %365 = vector.load %arg21[%c0_150, %c0_151] : memref<16x32xf32, #tpu.memory_space<vmem>>, vector<16x8xf32>
    tpu.vector_store %arg21[%c0_150, %c0_151], %364 {strides = array<i32>} : memref<16x32xf32, #tpu.memory_space<vmem>>, vector<16x8xf32>,
    %366 = vector.extract_strided_slice %339 {offsets = [0, 8], sizes = [16, 8], strides = [1, 1]} : vector<16x96xf32> to vector<16x8xf32>
    %367 = vector.shape_cast %366 : vector<16x8xf32> to vector<2x8x8xf32>
    %368 = vector.extract_strided_slice %339 {offsets = [0, 40], sizes = [16, 8], strides = [1, 1]} : vector<16x96xf32> to vector<16x8xf32>
    %369 = vector.shape_cast %368 : vector<16x8xf32> to vector<2x8x8xf32>
    %370 = vector.extract_strided_slice %339 {offsets = [0, 72], sizes = [16, 8], strides = [1, 1]} : vector<16x96xf32> to vector<16x8xf32>
    %371 = vector.shape_cast %370 : vector<16x8xf32> to vector<2x8x8xf32>
    "tpu.trace_start"() <{level = 10 : i32, message = "btd,bsd->bts"}> : () -> ()
    %cst_152 = arith.constant dense<0.000000e+00> : vector<2x8x8xf32>
    %372 = tpu.matmul %367, %369, %cst_152 {dimension_numbers = #tpu.dot_dimension_numbers<[2], [2], [1], [1], [0, 0, 0, 1, 1, 1], [0], [0]>} : vector<2x8x8xf32>, vector<2x8x8xf32>, vector<2x8x8xf32> -> vector<2x8x8xf32>
    "tpu.trace_stop"() : () -> ()
    %cst_153 = arith.constant 0.176776692 : f32
    %373 = vector.broadcast %cst_153 : f32 to vector<2x8x8xf32>
    %374 = arith.mulf %372, %373 : vector<2x8x8xf32>
    %cst_154 = arith.constant -1.000000e+30 : f32
    %375 = vector.shape_cast %9 : vector<1x8x8xi1> to vector<1x8x8xi1>
    %376 = vector.broadcast %375 : vector<1x8x8xi1> to vector<2x8x8xi1>
    %377 = vector.broadcast %cst_154 : f32 to vector<2x8x8xf32>
    %378 = arith.select %376, %374, %377 : vector<2x8x8xi1>, vector<2x8x8xf32>
    %cst_155 = arith.constant dense<0xFF800000> : vector<2x8xf32>
    %379 = vector.multi_reduction <maximumf>, %378, %cst_155 [2] : vector<2x8x8xf32> to vector<2x8xf32>
    %380 = vector.shape_cast %379 : vector<2x8xf32> to vector<2x8x1xf32>
    %381 = vector.broadcast %380 : vector<2x8x1xf32> to vector<2x8x8xf32>
    %382 = arith.subf %378, %381 : vector<2x8x8xf32>
    %383 = math.exp %382 : vector<2x8x8xf32>
    %cst_156 = arith.constant dense<0.000000e+00> : vector<2x8xf32>
    %384 = vector.multi_reduction <add>, %383, %cst_156 [2] : vector<2x8x8xf32> to vector<2x8xf32>
    %385 = vector.shape_cast %384 : vector<2x8xf32> to vector<2x8x1xf32>
    %386 = tpu.reciprocal %385 {approx = true} : vector<2x8x1xf32> -> vector<2x8x1xf32>
    %387 = vector.broadcast %386 : vector<2x8x1xf32> to vector<2x8x8xf32>
    %388 = arith.mulf %383, %387 : vector<2x8x8xf32>
    "tpu.trace_start"() <{level = 10 : i32, message = "bts,bsd->btd"}> : () -> ()
    %cst_157 = arith.constant dense<0.000000e+00> : vector<2x8x8xf32>
    %389 = tpu.matmul %388, %371, %cst_157 {dimension_numbers = #tpu.dot_dimension_numbers<[2], [1], [1], [2], [0, 0, 0, 1, 1, 2], [0], [0]>} : vector<2x8x8xf32>, vector<2x8x8xf32>, vector<2x8x8xf32> -> vector<2x8x8xf32>
    "tpu.trace_stop"() : () -> ()
    %390 = vector.shape_cast %389 : vector<2x8x8xf32> to vector<16x8xf32>
    %c0_158 = arith.constant 0 : index
    %c8_159 = arith.constant 8 : index
    %391 = vector.load %arg21[%c0_158, %c8_159] : memref<16x32xf32, #tpu.memory_space<vmem>>, vector<16x8xf32>
    tpu.vector_store %arg21[%c0_158, %c8_159], %390 {strides = array<i32>} : memref<16x32xf32, #tpu.memory_space<vmem>>, vector<16x8xf32>,
    %392 = vector.extract_strided_slice %339 {offsets = [0, 16], sizes = [16, 8], strides = [1, 1]} : vector<16x96xf32> to vector<16x8xf32>
    %393 = vector.shape_cast %392 : vector<16x8xf32> to vector<2x8x8xf32>
    %394 = vector.extract_strided_slice %339 {offsets = [0, 48], sizes = [16, 8], strides = [1, 1]} : vector<16x96xf32> to vector<16x8xf32>
    %395 = vector.shape_cast %394 : vector<16x8xf32> to vector<2x8x8xf32>
    %396 = vector.extract_strided_slice %339 {offsets = [0, 80], sizes = [16, 8], strides = [1, 1]} : vector<16x96xf32> to vector<16x8xf32>
    %397 = vector.shape_cast %396 : vector<16x8xf32> to vector<2x8x8xf32>
    "tpu.trace_start"() <{level = 10 : i32, message = "btd,bsd->bts"}> : () -> ()
    %cst_160 = arith.constant dense<0.000000e+00> : vector<2x8x8xf32>
    %398 = tpu.matmul %393, %395, %cst_160 {dimension_numbers = #tpu.dot_dimension_numbers<[2], [2], [1], [1], [0, 0, 0, 1, 1, 1], [0], [0]>} : vector<2x8x8xf32>, vector<2x8x8xf32>, vector<2x8x8xf32> -> vector<2x8x8xf32>
    "tpu.trace_stop"() : () -> ()
    %cst_161 = arith.constant 0.176776692 : f32
    %399 = vector.broadcast %cst_161 : f32 to vector<2x8x8xf32>
    %400 = arith.mulf %398, %399 : vector<2x8x8xf32>
    %cst_162 = arith.constant -1.000000e+30 : f32
    %401 = vector.shape_cast %9 : vector<1x8x8xi1> to vector<1x8x8xi1>
    %402 = vector.broadcast %401 : vector<1x8x8xi1> to vector<2x8x8xi1>
    %403 = vector.broadcast %cst_162 : f32 to vector<2x8x8xf32>
    %404 = arith.select %402, %400, %403 : vector<2x8x8xi1>, vector<2x8x8xf32>
    %cst_163 = arith.constant dense<0xFF800000> : vector<2x8xf32>
    %405 = vector.multi_reduction <maximumf>, %404, %cst_163 [2] : vector<2x8x8xf32> to vector<2x8xf32>
    %406 = vector.shape_cast %405 : vector<2x8xf32> to vector<2x8x1xf32>
    %407 = vector.broadcast %406 : vector<2x8x1xf32> to vector<2x8x8xf32>
    %408 = arith.subf %404, %407 : vector<2x8x8xf32>
    %409 = math.exp %408 : vector<2x8x8xf32>
    %cst_164 = arith.constant dense<0.000000e+00> : vector<2x8xf32>
    %410 = vector.multi_reduction <add>, %409, %cst_164 [2] : vector<2x8x8xf32> to vector<2x8xf32>
    %411 = vector.shape_cast %410 : vector<2x8xf32> to vector<2x8x1xf32>
    %412 = tpu.reciprocal %411 {approx = true} : vector<2x8x1xf32> -> vector<2x8x1xf32>
    %413 = vector.broadcast %412 : vector<2x8x1xf32> to vector<2x8x8xf32>
    %414 = arith.mulf %409, %413 : vector<2x8x8xf32>
    "tpu.trace_start"() <{level = 10 : i32, message = "bts,bsd->btd"}> : () -> ()
    %cst_165 = arith.constant dense<0.000000e+00> : vector<2x8x8xf32>
    %415 = tpu.matmul %414, %397, %cst_165 {dimension_numbers = #tpu.dot_dimension_numbers<[2], [1], [1], [2], [0, 0, 0, 1, 1, 2], [0], [0]>} : vector<2x8x8xf32>, vector<2x8x8xf32>, vector<2x8x8xf32> -> vector<2x8x8xf32>
    "tpu.trace_stop"() : () -> ()
    %416 = vector.shape_cast %415 : vector<2x8x8xf32> to vector<16x8xf32>
    %c0_166 = arith.constant 0 : index
    %c16_167 = arith.constant 16 : index
    %417 = vector.load %arg21[%c0_166, %c16_167] : memref<16x32xf32, #tpu.memory_space<vmem>>, vector<16x8xf32>
    tpu.vector_store %arg21[%c0_166, %c16_167], %416 {strides = array<i32>} : memref<16x32xf32, #tpu.memory_space<vmem>>, vector<16x8xf32>,
    %418 = vector.extract_strided_slice %339 {offsets = [0, 24], sizes = [16, 8], strides = [1, 1]} : vector<16x96xf32> to vector<16x8xf32>
    %419 = vector.shape_cast %418 : vector<16x8xf32> to vector<2x8x8xf32>
    %420 = vector.extract_strided_slice %339 {offsets = [0, 56], sizes = [16, 8], strides = [1, 1]} : vector<16x96xf32> to vector<16x8xf32>
    %421 = vector.shape_cast %420 : vector<16x8xf32> to vector<2x8x8xf32>
    %422 = vector.extract_strided_slice %339 {offsets = [0, 88], sizes = [16, 8], strides = [1, 1]} : vector<16x96xf32> to vector<16x8xf32>
    %423 = vector.shape_cast %422 : vector<16x8xf32> to vector<2x8x8xf32>
    "tpu.trace_start"() <{level = 10 : i32, message = "btd,bsd->bts"}> : () -> ()
    %cst_168 = arith.constant dense<0.000000e+00> : vector<2x8x8xf32>
    %424 = tpu.matmul %419, %421, %cst_168 {dimension_numbers = #tpu.dot_dimension_numbers<[2], [2], [1], [1], [0, 0, 0, 1, 1, 1], [0], [0]>} : vector<2x8x8xf32>, vector<2x8x8xf32>, vector<2x8x8xf32> -> vector<2x8x8xf32>
    "tpu.trace_stop"() : () -> ()
    %cst_169 = arith.constant 0.176776692 : f32
    %425 = vector.broadcast %cst_169 : f32 to vector<2x8x8xf32>
    %426 = arith.mulf %424, %425 : vector<2x8x8xf32>
    %cst_170 = arith.constant -1.000000e+30 : f32
    %427 = vector.shape_cast %9 : vector<1x8x8xi1> to vector<1x8x8xi1>
    %428 = vector.broadcast %427 : vector<1x8x8xi1> to vector<2x8x8xi1>
    %429 = vector.broadcast %cst_170 : f32 to vector<2x8x8xf32>
    %430 = arith.select %428, %426, %429 : vector<2x8x8xi1>, vector<2x8x8xf32>
    %cst_171 = arith.constant dense<0xFF800000> : vector<2x8xf32>
    %431 = vector.multi_reduction <maximumf>, %430, %cst_171 [2] : vector<2x8x8xf32> to vector<2x8xf32>
    %432 = vector.shape_cast %431 : vector<2x8xf32> to vector<2x8x1xf32>
    %433 = vector.broadcast %432 : vector<2x8x1xf32> to vector<2x8x8xf32>
    %434 = arith.subf %430, %433 : vector<2x8x8xf32>
    %435 = math.exp %434 : vector<2x8x8xf32>
    %cst_172 = arith.constant dense<0.000000e+00> : vector<2x8xf32>
    %436 = vector.multi_reduction <add>, %435, %cst_172 [2] : vector<2x8x8xf32> to vector<2x8xf32>
    %437 = vector.shape_cast %436 : vector<2x8xf32> to vector<2x8x1xf32>
    %438 = tpu.reciprocal %437 {approx = true} : vector<2x8x1xf32> -> vector<2x8x1xf32>
    %439 = vector.broadcast %438 : vector<2x8x1xf32> to vector<2x8x8xf32>
    %440 = arith.mulf %435, %439 : vector<2x8x8xf32>
    "tpu.trace_start"() <{level = 10 : i32, message = "bts,bsd->btd"}> : () -> ()
    %cst_173 = arith.constant dense<0.000000e+00> : vector<2x8x8xf32>
    %441 = tpu.matmul %440, %423, %cst_173 {dimension_numbers = #tpu.dot_dimension_numbers<[2], [1], [1], [2], [0, 0, 0, 1, 1, 2], [0], [0]>} : vector<2x8x8xf32>, vector<2x8x8xf32>, vector<2x8x8xf32> -> vector<2x8x8xf32>
    "tpu.trace_stop"() : () -> ()
    %442 = vector.shape_cast %441 : vector<2x8x8xf32> to vector<16x8xf32>
    %c0_174 = arith.constant 0 : index
    %c24_175 = arith.constant 24 : index
    %443 = vector.load %arg21[%c0_174, %c24_175] : memref<16x32xf32, #tpu.memory_space<vmem>>, vector<16x8xf32>
    tpu.vector_store %arg21[%c0_174, %c24_175], %442 {strides = array<i32>} : memref<16x32xf32, #tpu.memory_space<vmem>>, vector<16x8xf32>,
    %c0_176 = arith.constant 0 : index
    %c0_177 = arith.constant 0 : index
    %444 = vector.load %arg21[%c0_176, %c0_177] : memref<16x32xf32, #tpu.memory_space<vmem>>, vector<16x32xf32>
    %cst_178 = arith.constant dense<0.000000e+00> : vector<16x32xf32>
    %445 = tpu.matmul %444, %336, %cst_178 {dimension_numbers = #tpu.dot_dimension_numbers<[1], [0], [0], [1], [0, 0, 1, 1], [], []>} : vector<16x32xf32>, vector<32x32xf32>, vector<16x32xf32> -> vector<16x32xf32>
    %446 = vector.broadcast %338 : vector<1x32xf32> to vector<16x32xf32>
    %447 = arith.addf %445, %446 : vector<16x32xf32>
    %448 = arith.addf %306, %447 : vector<16x32xf32>
    %c1_179 = arith.constant 1 : index
    %c0_180 = arith.constant 0 : index
    %c0_181 = arith.constant 0 : index
    %449 = vector.load %arg10[%c1_179, %c0_180, %c0_181] : memref<2x1x32xf32, #tpu.memory_space<vmem>>, vector<1x1x32xf32>
    %450 = vector.shape_cast %449 : vector<1x1x32xf32> to vector<1x32xf32>
    %c1_182 = arith.constant 1 : index
    %c0_183 = arith.constant 0 : index
    %c0_184 = arith.constant 0 : index
    %451 = vector.load %arg11[%c1_182, %c0_183, %c0_184] : memref<2x1x32xf32, #tpu.memory_space<vmem>>, vector<1x1x32xf32>
    %452 = vector.shape_cast %451 : vector<1x1x32xf32> to vector<1x32xf32>
    %cst_185 = arith.constant dense<0.000000e+00> : vector<16xf32>
    %453 = vector.multi_reduction <add>, %448, %cst_185 [1] : vector<16x32xf32> to vector<16xf32>
    %454 = vector.shape_cast %453 : vector<16xf32> to vector<16x1xf32>
    %cst_186 = arith.constant 3.200000e+01 : f32
    %455 = vector.broadcast %cst_186 : f32 to vector<16x1xf32>
    %456 = arith.divf %454, %455 : vector<16x1xf32>
    %457 = vector.broadcast %456 : vector<16x1xf32> to vector<16x32xf32>
    %458 = arith.subf %448, %457 : vector<16x32xf32>
    %459 = arith.mulf %458, %458 : vector<16x32xf32>
    %cst_187 = arith.constant dense<0.000000e+00> : vector<16xf32>
    %460 = vector.multi_reduction <add>, %459, %cst_187 [1] : vector<16x32xf32> to vector<16xf32>
    %461 = vector.shape_cast %460 : vector<16xf32> to vector<16x1xf32>
    %cst_188 = arith.constant 3.200000e+01 : f32
    %462 = vector.broadcast %cst_188 : f32 to vector<16x1xf32>
    %463 = arith.divf %461, %462 : vector<16x1xf32>
    %464 = vector.broadcast %456 : vector<16x1xf32> to vector<16x32xf32>
    %465 = arith.subf %448, %464 : vector<16x32xf32>
    %cst_189 = arith.constant 9.99999974E-6 : f32
    %466 = vector.broadcast %cst_189 : f32 to vector<16x1xf32>
    %467 = arith.addf %463, %466 : vector<16x1xf32>
    %468 = math.rsqrt %467 : vector<16x1xf32>
    %469 = vector.broadcast %468 : vector<16x1xf32> to vector<16x32xf32>
    %470 = arith.mulf %465, %469 : vector<16x32xf32>
    %471 = vector.broadcast %450 : vector<1x32xf32> to vector<16x32xf32>
    %472 = arith.mulf %470, %471 : vector<16x32xf32>
    %473 = vector.broadcast %452 : vector<1x32xf32> to vector<16x32xf32>
    %474 = arith.addf %472, %473 : vector<16x32xf32>
    %c1_190 = arith.constant 1 : index
    %c0_191 = arith.constant 0 : index
    %c0_192 = arith.constant 0 : index
    %475 = vector.load %arg12[%c1_190, %c0_191, %c0_192] : memref<2x32x128xf32, #tpu.memory_space<vmem>>, vector<1x32x128xf32>
    %476 = vector.shape_cast %475 : vector<1x32x128xf32> to vector<32x128xf32>
    %cst_193 = arith.constant dense<0.000000e+00> : vector<16x128xf32>
    %477 = tpu.matmul %474, %476, %cst_193 {dimension_numbers = #tpu.dot_dimension_numbers<[1], [0], [0], [1], [0, 0, 1, 1], [], []>} : vector<16x32xf32>, vector<32x128xf32>, vector<16x128xf32> -> vector<16x128xf32>
    %c1_194 = arith.constant 1 : index
    %c0_195 = arith.constant 0 : index
    %c0_196 = arith.constant 0 : index
    %478 = vector.load %arg13[%c1_194, %c0_195, %c0_196] : memref<2x1x128xf32, #tpu.memory_space<vmem>>, vector<1x1x128xf32>
    %479 = vector.shape_cast %478 : vector<1x1x128xf32> to vector<1x128xf32>
    %480 = vector.broadcast %479 : vector<1x128xf32> to vector<16x128xf32>
    %481 = arith.addf %477, %480 : vector<16x128xf32>
    %cst_197 = arith.constant 0.000000e+00 : f32
    %482 = vector.broadcast %cst_197 : f32 to vector<16x128xf32>
    %483 = arith.maximumf %481, %482 : vector<16x128xf32>
    %c1_198 = arith.constant 1 : index
    %c0_199 = arith.constant 0 : index
    %c0_200 = arith.constant 0 : index
    %484 = vector.load %arg14[%c1_198, %c0_199, %c0_200] : memref<2x128x32xf32, #tpu.memory_space<vmem>>, vector<1x128x32xf32>
    %485 = vector.shape_cast %484 : vector<1x128x32xf32> to vector<128x32xf32>
    %cst_201 = arith.constant dense<0.000000e+00> : vector<16x32xf32>
    %486 = tpu.matmul %483, %485, %cst_201 {dimension_numbers = #tpu.dot_dimension_numbers<[1], [0], [0], [1], [0, 0, 1, 1], [], []>} : vector<16x128xf32>, vector<128x32xf32>, vector<16x32xf32> -> vector<16x32xf32>
    %c1_202 = arith.constant 1 : index
    %c0_203 = arith.constant 0 : index
    %c0_204 = arith.constant 0 : index
    %487 = vector.load %arg15[%c1_202, %c0_203, %c0_204] : memref<2x1x32xf32, #tpu.memory_space<vmem>>, vector<1x1x32xf32>
    %488 = vector.shape_cast %487 : vector<1x1x32xf32> to vector<1x32xf32>
    %489 = vector.broadcast %488 : vector<1x32xf32> to vector<16x32xf32>
    %490 = arith.addf %486, %489 : vector<16x32xf32>
    %491 = arith.addf %448, %490 : vector<16x32xf32>
    %c0_205 = arith.constant 0 : index
    %c0_206 = arith.constant 0 : index
    %492 = vector.load %arg16[%c0_205, %c0_206] : memref<1x32xf32, #tpu.memory_space<vmem>>, vector<1x32xf32>
    %c0_207 = arith.constant 0 : index
    %c0_208 = arith.constant 0 : index
    %493 = vector.load %arg17[%c0_207, %c0_208] : memref<1x32xf32, #tpu.memory_space<vmem>>, vector<1x32xf32>
    %cst_209 = arith.constant dense<0.000000e+00> : vector<16xf32>
    %494 = vector.multi_reduction <add>, %491, %cst_209 [1] : vector<16x32xf32> to vector<16xf32>
    %495 = vector.shape_cast %494 : vector<16xf32> to vector<16x1xf32>
    %cst_210 = arith.constant 3.200000e+01 : f32
    %496 = vector.broadcast %cst_210 : f32 to vector<16x1xf32>
    %497 = arith.divf %495, %496 : vector<16x1xf32>
    %498 = vector.broadcast %497 : vector<16x1xf32> to vector<16x32xf32>
    %499 = arith.subf %491, %498 : vector<16x32xf32>
    %500 = arith.mulf %499, %499 : vector<16x32xf32>
    %cst_211 = arith.constant dense<0.000000e+00> : vector<16xf32>
    %501 = vector.multi_reduction <add>, %500, %cst_211 [1] : vector<16x32xf32> to vector<16xf32>
    %502 = vector.shape_cast %501 : vector<16xf32> to vector<16x1xf32>
    %cst_212 = arith.constant 3.200000e+01 : f32
    %503 = vector.broadcast %cst_212 : f32 to vector<16x1xf32>
    %504 = arith.divf %502, %503 : vector<16x1xf32>
    %505 = vector.broadcast %497 : vector<16x1xf32> to vector<16x32xf32>
    %506 = arith.subf %491, %505 : vector<16x32xf32>
    %cst_213 = arith.constant 9.99999974E-6 : f32
    %507 = vector.broadcast %cst_213 : f32 to vector<16x1xf32>
    %508 = arith.addf %504, %507 : vector<16x1xf32>
    %509 = math.rsqrt %508 : vector<16x1xf32>
    %510 = vector.broadcast %509 : vector<16x1xf32> to vector<16x32xf32>
    %511 = arith.mulf %506, %510 : vector<16x32xf32>
    %512 = vector.broadcast %492 : vector<1x32xf32> to vector<16x32xf32>
    %513 = arith.mulf %511, %512 : vector<16x32xf32>
    %514 = vector.broadcast %493 : vector<1x32xf32> to vector<16x32xf32>
    %515 = arith.addf %513, %514 : vector<16x32xf32>
    %c0_214 = arith.constant 0 : index
    %c0_215 = arith.constant 0 : index
    %516 = vector.load %arg18[%c0_214, %c0_215] : memref<32x64xf32, #tpu.memory_space<vmem>>, vector<32x64xf32>
    %cst_216 = arith.constant dense<0.000000e+00> : vector<16x64xf32>
    %517 = tpu.matmul %515, %516, %cst_216 {dimension_numbers = #tpu.dot_dimension_numbers<[1], [0], [0], [1], [0, 0, 1, 1], [], []>} : vector<16x32xf32>, vector<32x64xf32>, vector<16x64xf32> -> vector<16x64xf32>
    %c0_217 = arith.constant 0 : index
    %c0_218 = arith.constant 0 : index
    %518 = vector.load %arg19[%c0_217, %c0_218] : memref<1x64xf32, #tpu.memory_space<vmem>>, vector<1x64xf32>
    %519 = vector.broadcast %518 : vector<1x64xf32> to vector<16x64xf32>
    %520 = arith.addf %517, %519 : vector<16x64xf32>
    %521 = vector.shape_cast %520 : vector<16x64xf32> to vector<2x8x64xf32>
    %c0_219 = arith.constant 0 : index
    %c0_220 = arith.constant 0 : index
    %c0_221 = arith.constant 0 : index
    %522 = vector.load %arg20[%c0_219, %c0_220, %c0_221] : memref<2x8x64xf32, #tpu.memory_space<vmem>>, vector<2x8x64xf32>
    tpu.vector_store %arg20[%c0_219, %c0_220, %c0_221], %521 {strides = array<i32>} : memref<2x8x64xf32, #tpu.memory_space<vmem>>, vector<2x8x64xf32>,
    return
  }
}

</mosaic_0001>

<bundles_post_ra>
// kernel: gpt_forward.1
= control target key start
LH: loop header
LB: loop body
LE: loop exit
PB: predicated region body
PF: predicated region fallthrough
CT: control target
= control target key end

     0   :  { %s7502_s0 = inlined_call_operand.vmem [shape: f32[2,8,32], index: 0, kind: input, shape index: {}]   ;;  %s7503_s1 = inlined_call_operand.vmem [shape: f32[8,32], index: 1, kind: input, shape index: {}]   ;;  %s7504_s2 = inlined_call_operand.vmem [shape: f32[32,96], index: 2, kind: input, shape index: {}]   ;;  %s7505_s3 = inlined_call_operand.vmem [shape: f32[32,32], index: 3, kind: input, shape index: {}]   ;;  %s7506_s4 = inlined_call_operand.vmem [shape: f32[1,32], index: 4, kind: input, shape index: {}]   ;;  %s7507_s5 = inlined_call_operand.vmem [shape: f32[2,1,32], index: 5, kind: input, shape index: {}]   ;;  %s7508_s6 = inlined_call_operand.vmem [shape: f32[2,1,32], index: 6, kind: input, shape index: {}]   ;;  %s7509_s7 = inlined_call_operand.vmem [shape: f32[2,32,96], index: 7, kind: input, shape index: {}]   ;;  %s7510_s8 = inlined_call_operand.vmem [shape: f32[2,32,32], index: 8, kind: input, shape index: {}]   ;;  %s7511_s9 = inlined_call_operand.vmem [shape: f32[2,1,32], index: 9, kind: input, shape index: {}]   ;;  %s7512_s10 = inlined_call_operand.vmem [shape: f32[2,1,32], index: 10, kind: input, shape index: {}]   ;;  %s7513_s11 = inlined_call_operand.vmem [shape: f32[2,1,32], index: 11, kind: input, shape index: {}]   ;;  %s7514_s12 = inlined_call_operand.vmem [shape: f32[2,32,128], index: 12, kind: input, shape index: {}]   ;;  %s7515_s13 = inlined_call_operand.vmem [shape: f32[2,1,128], index: 13, kind: input, shape index: {}]   ;;  %s7516_s14 = inlined_call_operand.vmem [shape: f32[2,128,32], index: 14, kind: input, shape index: {}]   ;;  %s7517_s15 = inlined_call_operand.vmem [shape: f32[2,1,32], index: 15, kind: input, shape index: {}]   ;;  %s7518_s16 = inlined_call_operand.vmem [shape: f32[1,32], index: 16, kind: input, shape index: {}]   ;;  %s7519_s17 = inlined_call_operand.vmem [shape: f32[1,32], index: 17, kind: input, shape index: {}]   ;;  %s7520_s18 = inlined_call_operand.vmem [shape: f32[32,64], index: 18, kind: input, shape index: {}]   ;;  %s7521_s19 = inlined_call_operand.vmem [shape: f32[1,64], index: 19, kind: input, shape index: {}]   ;;  %s7522_s20 = inlined_call_operand.hbm [shape: f32[2,8,64], index: 20, kind: output, shape index: {}]  }
   0x1   :  { %7555 = sst [smem:[#allocation6_spill]] %s7502_s0 }
   0x2   :  { %7556 = sst [smem:[#allocation7_spill]] %s7503_s1 }
   0x3   :  { %7557 = sst [smem:[#allocation8_spill]] %s7504_s2 }
   0x4   :  { %7558 = sst [smem:[#allocation9_spill]] %s7505_s3 }
   0x5   :  { %7559 = sst [smem:[#allocation10_spill]] %s7506_s4 }
   0x6   :  { %7560 = sst [smem:[#allocation11_spill]] %s7518_s16 }
   0x7   :  { %7561 = sst [smem:[#allocation12_spill]] %s7519_s17 }
   0x8   :  { %7562 = sst [smem:[#allocation13_spill]] %s7521_s19 }
   0x9   :  { %7563 = sst [smem:[#allocation14_spill]] %s7522_s20 }
   0xa   :  { %s7564_s23 = sld [smem:[#allocation8_spill]]  ;;  %s7565_s29 = sld [smem:[#allocation6_spill]]  ;;  %vm85_vm0 = vcmask 261120  }
   0xb   :  { %s7566_s21 = sld [smem:[#allocation7_spill]] }
  0x10   :  { %v76_v0 = vld [vmem:[%s7564_s23] sm:$0xff]  ;;  %v77_v1 = vld [vmem:[%s7564_s23 + $0x8] sm:$0xff]  ;;  %v78_v2 = vld [vmem:[%s7564_s23 + $0x10] sm:$0xff] }
  0x11   :  { %v6191_v3 = vpack.c.bf16 %v77_v1, %v76_v0  ;;  %v79_v4 = vld [vmem:[%s7564_s23 + $0x18] sm:$0xff]  ;;  %v66_v5 = vld [vmem:[%s7565_s29] sm:$0xff] }
  0x12   :  { %v6195_v6 = vpack.c.bf16 %v79_v4, %v78_v2  ;;  %v68_v7 = vld [vmem:[%s7566_s21] sm:$0xff] }
  0x13   :  { %25 = vsyncpa [#allocation4], 0  ;;  %6192 = vmatprep.subr.bf16.mxu1 %v6191_v3  ;;  %v69_v8 = vadd.f32 %v68_v7, %v66_v5  ;;  %v67_v9 = vld [vmem:[%s7565_s29 + $0x8] sm:$0xff]  ;;  %v6485_v11 = vmov 0.0   ;;  %vm6486_vm1 = vmmov 0   ;;  %s7550_s23 = smov 96   ;;  %v71_v16 = vlaneseq }
  0x14   :  { %6194 = vmatpush3.bf16.msra.mxu1 %v6191_v3  ;;  %v70_v10 = vadd.f32 %v68_v7, %v67_v9  ;;  %5813 = vmatprep.subr.mxu0 %v6485_v11  ;;  %vm170_vm2 = vcmask 64512   ;;  %s7548_s24 = smov 64   ;;  %s7546_s2 = smov 88   ;;  %vm846_vm4 = vcmask 130112   ;;  %vm1191_vm5 = vcmask 195712  }
  0x15   :  { %6196 = vmatprep.subr.bf16.mxu1 %v6195_v6  ;;  %5790 = vmatprep.mubr.msk.f32.mxu1 %vm85_vm0, %v69_v8  ;;  %v72_v17 = vshrl.u32 %v71_v16, 7  ;;  %v74_v18 = vand.u32 127, %v71_v16  ;;  %s7544_s25 = smov 120   ;;  %s7542_s3 = smov 56   ;;  %vm1536_vm6 = vcmask 261312   ;;  %vm5434_vm7 = vcmask 523264  }
  0x16   :  { %5815 = vmatprep.mubr.msk.f32.mxu0 %vm6486_vm1, %v6485_v11  ;;  %s7538_s26 = smov 112   ;;  %s7540_s27 = smov 80  }
  0x17   :  { %vm6657_vm3 = vcmp.ge.s32.totalorder %v72_v17, %v74_v18  ;;  %s7536_s28 = smov 48   ;;  %s7534_s4 = smov 72  }
  0x18   :  { %6198 = vmatpush3.bf16.msra.mxu1 %v6195_v6  ;;  %s7532_s29 = smov 104   ;;  %s7530_s30 = smov 40  }
  0x19   :  { %5793 = vmatprep.subr.mxu1 %v6485_v11  ;;  %s7528_s0 = smov 8   ;;  %s7526_s21 = smov 16  }
  0x1a   :  { %s7572_s1 = smov 112   ;;  %s7573_s22 = smov 48  }
  0x1b   :  { %5791 = vmatmul.mubr.msk.f32.vlgmr.msra.gmra.mrb[0].mxu1 %vm85_vm0, %v70_v10  ;;  %s7583_s16 = smov 120   ;;  %s7584_s17 = smov 56  }
  0x1c   :  { %5795 = vmatprep.mubr.msk.f32.mxu1 %vm6486_vm1, %v6485_v11 }
  0xee   :  { %v6637_v12 = vpop.f32.mrb[0].mxu1 }
  0xef   :  { %v6639_v13 = vpop.f32.mrb[1].mxu1 }
  0xf0   :  { %168 = vrot.lane.b32.xlu0 %v6639_v13, %s7550_s23 }
  0xf4   :  { %246 = vrot.lane.b32.xlu0 %v6637_v12, %s7550_s23 }
 0x162   :  { %v169_v14 = vpop.permute.xlu0 %168 }
 0x163   :  { %5794 = vmatpush3.xpose.msk.msra.mxu1 %vm170_vm2, %v169_v14 }
 0x164   :  { %5798 = vmatprep.subr.mxu1 %v6485_v11 }
 0x166   :  { %5796 = vmatmul.mubr.msk.f32.vlgmr.msra.gmra.mrb[2].mxu1 %vm170_vm2, %v6639_v13  ;;  %v247_v15 = vpop.permute.xlu0 %246 }
 0x167   :  { %5799 = vmatpush3.xpose.msk.msra.mxu1 %vm170_vm2, %v247_v15  ;;  %5800 = vmatprep.mubr.msk.f32.mxu1 %vm6486_vm1, %v6485_v11 }
 0x168   :  { %5803 = vmatprep.subr.mxu1 %v6485_v11 }
 0x16a   :  { %5801 = vmatmul.mubr.msk.f32.vlgmr.msra.gmra.mrb[4].mxu1 %vm170_vm2, %v6637_v12 }
 0x16b   :  { %5805 = vmatprep.mubr.msk.f32.mxu1 %vm6486_vm1, %v6485_v11 }
 0x239   :  { %v241_v19 = vpop.f32.mrb[2].mxu1 }
 0x23a   :  { %v322_v21 = vmul.f32 0.17677669, %v241_v19  ;;  %v5797_v22 = vpop.f32.mrb[3].mxu1 }
 0x23c   :  { %v326_v23 = vsel %vm6657_vm3, %v322_v21, -1e+30 }
 0x23d   :  { %v318_v24 = vpop.f32.mrb[4].mxu1  ;;  %v328_v25 = vsel %vm170_vm2, %v326_v23, -inf }
 0x23e   :  { %v323_v26 = vmul.f32 0.17677669, %v318_v24  ;;  %329 = vmax.xlane.f32.xlu1 %v328_v25  ;;  %v5802_v27 = vpop.f32.mrb[5].mxu1 }
 0x240   :  { %v327_v28 = vsel %vm6657_vm3, %v323_v26, -1e+30 }
 0x241   :  { %v331_v29 = vsel %vm170_vm2, %v327_v28, -inf }
 0x242   :  { %332 = vmax.xlane.f32.xlu1 %v331_v29 }
 0x253   :  { %350 = vrot.lane.b32.xlu1 %v6639_v13, %s7548_s24 }
 0x257   :  { %426 = vrot.lane.b32.xlu1 %v6637_v12, %s7548_s24 }
 0x25b   :  { %506 = vrot.lane.b32.xlu1 %v6639_v13, %s7546_s2 }
 0x25f   :  { %584 = vrot.lane.b32.xlu1 %v6637_v12, %s7546_s2 }
 0x2cb   :  { %v330_v30 = vpop.xlane.xlu1 %329 }
 0x2cc   :  { %v334_v31 = vsub.f32 %v326_v23, %v330_v30 }
 0x2ce   :  { %v336_v32 = vmul.f32 1.442695, %v334_v31 }
 0x2cf   :  { %v333_v33 = vpop.xlane.xlu1 %332 }
 0x2d0   :  { %6345 = vpow2.f32 %v336_v32  ;;  %v335_v34 = vsub.f32 %v327_v28, %v333_v33 }
 0x2d2   :  { %v338_v35 = vmul.f32 1.442695, %v335_v34 }
 0x2d3   :  { %v351_v36 = vpop.permute.xlu1 %350 }
 0x2d4   :  { %6347 = vpow2.f32 %v338_v35  ;;  %5804 = vmatpush3.msra.mxu1 %v351_v36 }
 0x2d5   :  { %5808 = vmatprep.subr.mxu1 %v6485_v11 }
 0x2d7   :  { %v427_v37 = vpop.permute.xlu1 %426 }
 0x2da   :  { %v6346_v38 = vpop.eup %6345 }
 0x2db   :  { %v507_v39 = vpop.permute.xlu1 %506  ;;  %v340_v40 = vsel %vm170_vm2, %v6346_v38, 0.0 }
 0x2dc   :  { %341 = vadd.xlane.f32.xlu0 %v340_v40  ;;  %5814 = vmatpush3.xpose.msk.msra.mxu0 %vm170_vm2, %v507_v39 }
 0x2dd   :  { %5823 = vmatprep.subr.mxu0 %v6485_v11 }
 0x2de   :  { %v6348_v41 = vpop.eup %6347 }
 0x2df   :  { %v343_v42 = vsel %vm170_vm2, %v6348_v41, 0.0  ;;  %v585_v43 = vpop.permute.xlu1 %584 }
 0x2e0   :  { %344 = vadd.xlane.f32.xlu1 %v343_v42 }
 0x2f1   :  { %582 = vrot.lane.b32.xlu1 %v6637_v12, %s7544_s25 }
 0x2f2   :  { %504 = vrot.lane.b32.xlu0 %v6639_v13, %s7544_s25 }
 0x369   :  { %v342_v44 = vpop.xlane.xlu0 %341 }
 0x36a   :  { %6349 = vrcp.f32 %v342_v44 }
 0x36d   :  { %v345_v45 = vpop.xlane.xlu1 %344  ;;  %v505_v46 = vpop.permute.xlu0 %504 }
 0x36e   :  { %6351 = vrcp.f32 %v345_v45  ;;  %5816 = vmatmul.mubr.msk.f32.vlgmr.msra.gmra.mrb[0].mxu0 %vm170_vm2, %v505_v46 }
 0x36f   :  { %5825 = vmatprep.mubr.msk.f32.mxu0 %vm6486_vm1, %v6485_v11 }
 0x371   :  { %v583_v51 = vpop.permute.xlu1 %582 }
 0x374   :  { %v6350_v47 = vpop.eup %6349 }
 0x375   :  { %v348_v48 = vmul.f32 %v6350_v47, %v6346_v38 }
 0x377   :  { %5806 = vmatmul.mubr.msk.f32.vlgmr.msra.gmra.mrb[6].mxu1 %vm170_vm2, %v348_v48 }
 0x378   :  { %v6352_v49 = vpop.eup %6351  ;;  %5809 = vmatpush3.msra.mxu1 %v427_v37  ;;  %5810 = vmatprep.mubr.msk.f32.mxu1 %vm6486_vm1, %v6485_v11 }
 0x379   :  { %v349_v50 = vmul.f32 %v6352_v49, %v6348_v41  ;;  %5818 = vmatprep.subr.mxu1 %v6485_v11 }
 0x37b   :  { %5811 = vmatmul.mubr.msk.f32.vlgmr.msra.gmra.mrb[8].mxu1 %vm170_vm2, %v349_v50 }
 0x37c   :  { %5820 = vmatprep.mubr.msk.f32.mxu1 %vm6486_vm1, %v6485_v11 }
 0x37f   :  { %5819 = vmatpush3.xpose.msk.msra.mxu1 %vm170_vm2, %v585_v43 }
 0x380   :  { %5828 = vmatprep.subr.mxu1 %v6485_v11 }
 0x382   :  { %5821 = vmatmul.mubr.msk.f32.vlgmr.msra.gmra.mrb[10].mxu1 %vm170_vm2, %v583_v51 }
 0x383   :  { %5830 = vmatprep.mubr.msk.f32.mxu1 %vm6486_vm1, %v6485_v11 }
 0x441   :  { %v578_v52 = vpop.f32.mrb[0].mxu0 }
 0x442   :  { %v660_v53 = vmul.f32 0.17677669, %v578_v52  ;;  %v5817_v54 = vpop.f32.mrb[1].mxu0 }
 0x444   :  { %v662_v55 = vsel %vm6657_vm3, %v660_v53, -1e+30 }
 0x445   :  { %v664_v56 = vsel %vm170_vm2, %v662_v55, -inf }
 0x446   :  { %665 = vmax.xlane.f32.xlu1 %v664_v56 }
 0x44a   :  { %v422_v57 = vpop.f32.mrb[6].mxu1 }
 0x44b   :  { %502 = vst.msk [vmem:[#allocation2] sm:$0xff] %vm170_vm2, %v422_v57  ;;  %v5807_v58 = vpop.f32.mrb[7].mxu1 }
 0x44e   :  { %v498_v59 = vpop.f32.mrb[8].mxu1 }
 0x44f   :  { %503 = vst.msk [vmem:[#allocation2 + $0x8] sm:$0xff] %vm170_vm2, %v498_v59  ;;  %v5812_v60 = vpop.f32.mrb[9].mxu1 }
 0x455   :  { %v656_v61 = vpop.f32.mrb[10].mxu1 }
 0x456   :  { %v661_v62 = vmul.f32 0.17677669, %v656_v61  ;;  %v5822_v63 = vpop.f32.mrb[11].mxu1 }
 0x458   :  { %v663_v0 = vsel %vm6657_vm3, %v661_v62, -1e+30 }
 0x459   :  { %v667_v1 = vsel %vm170_vm2, %v663_v0, -inf }
 0x45a   :  { %668 = vmax.xlane.f32.xlu0 %v667_v1 }
 0x470   :  { %762 = vrot.lane.b32.xlu0 %v6637_v12, %s7542_s3 }
 0x474   :  { %849 = vrot.lane.b32.xlu0 %v6639_v13, %s7538_s26 }
 0x4d3   :  { %v666_v2 = vpop.xlane.xlu1 %665 }
 0x4d4   :  { %v670_v3 = vsub.f32 %v662_v55, %v666_v2 }
 0x4d6   :  { %v672_v4 = vmul.f32 1.442695, %v670_v3 }
 0x4d8   :  { %6353 = vpow2.f32 %v672_v4 }
 0x4e2   :  { %v6354_v5 = vpop.eup %6353 }
 0x4e3   :  { %v676_v6 = vsel %vm170_vm2, %v6354_v5, 0.0 }
 0x4e4   :  { %677 = vadd.xlane.f32.xlu1 %v676_v6 }
 0x4e7   :  { %v669_v7 = vpop.xlane.xlu0 %668 }
 0x4e8   :  { %v671_v9 = vsub.f32 %v663_v0, %v669_v7 }
 0x4ea   :  { %v674_v10 = vmul.f32 1.442695, %v671_v9 }
 0x4eb   :  { %v763_v8 = vpop.permute.xlu0 %762 }
 0x4ec   :  { %5829 = vmatpush3.msra.mxu1 %v763_v8  ;;  %6355 = vpow2.f32 %v674_v10 }
 0x4ed   :  { %5838 = vmatprep.subr.mxu1 %v6485_v11 }
 0x4ef   :  { %v850_v22 = vpop.permute.xlu0 %849 }
 0x4f5   :  { %686 = vrot.lane.b32.xlu1 %v6639_v13, %s7542_s3 }
 0x4f6   :  { %v6356_v14 = vpop.eup %6355 }
 0x4f7   :  { %v679_v15 = vsel %vm170_vm2, %v6356_v14, 0.0 }
 0x4f9   :  { %851 = vrot.lane.b32.xlu1 %v6639_v13, %s7540_s27 }
 0x4fd   :  { %929 = vrot.lane.b32.xlu1 %v6637_v12, %s7540_s27  ;;  %s7575_s27 = smov 104  }
 0x521   :  { %680 = vadd.xlane.f32.xlu1 %v679_v15 }
 0x532   :  { %927 = vrot.lane.b32.xlu1 %v6637_v12, %s7538_s26  ;;  %s7574_s26 = smov 72  }
 0x571   :  { %v678_v16 = vpop.xlane.xlu1 %677 }
 0x572   :  { %6357 = vrcp.f32 %v678_v16 }
 0x575   :  { %v687_v17 = vpop.permute.xlu1 %686 }
 0x576   :  { %5824 = vmatpush3.msra.mxu0 %v687_v17 }
 0x577   :  { %5833 = vmatprep.subr.mxu0 %v6485_v11 }
 0x579   :  { %v852_v21 = vpop.permute.xlu1 %851 }
 0x57c   :  { %v6358_v18 = vpop.eup %6357 }
 0x57d   :  { %v684_v19 = vmul.f32 %v6358_v18, %v6354_v5  ;;  %v930_v23 = vpop.permute.xlu1 %929 }
 0x57f   :  { %5826 = vmatmul.mubr.msk.f32.vlgmr.msra.gmra.mrb[2].mxu0 %vm170_vm2, %v684_v19 }
 0x580   :  { %5834 = vmatpush3.xpose.msk.msra.mxu0 %vm170_vm2, %v852_v21  ;;  %5835 = vmatprep.mubr.msk.f32.mxu0 %vm6486_vm1, %v6485_v11 }
 0x581   :  { %5843 = vmatprep.subr.mxu0 %v6485_v11 }
 0x583   :  { %5836 = vmatmul.mubr.msk.f32.vlgmr.msra.gmra.mrb[4].mxu0 %vm170_vm2, %v850_v22 }
 0x584   :  { %5845 = vmatprep.mubr.msk.f32.mxu0 %vm6486_vm1, %v6485_v11 }
 0x5ae   :  { %v681_v24 = vpop.xlane.xlu1 %680 }
 0x5af   :  { %6359 = vrcp.f32 %v681_v24 }
 0x5b2   :  { %v928_v27 = vpop.permute.xlu1 %927 }
 0x5b9   :  { %v6360_v25 = vpop.eup %6359 }
 0x5ba   :  { %v685_v26 = vmul.f32 %v6360_v25, %v6356_v14 }
 0x5bc   :  { %5831 = vmatmul.mubr.msk.f32.vlgmr.msra.gmra.mrb[12].mxu1 %vm170_vm2, %v685_v26 }
 0x5bd   :  { %5839 = vmatpush3.xpose.msk.msra.mxu1 %vm170_vm2, %v930_v23  ;;  %5840 = vmatprep.mubr.msk.f32.mxu1 %vm6486_vm1, %v6485_v11 }
 0x5be   :  { %5848 = vmatprep.subr.mxu1 %v6485_v11 }
 0x5c0   :  { %5841 = vmatmul.mubr.msk.f32.vlgmr.msra.gmra.mrb[14].mxu1 %vm170_vm2, %v928_v27 }
 0x5c1   :  { %5850 = vmatprep.mubr.msk.f32.mxu1 %vm6486_vm1, %v6485_v11 }
 0x652   :  { %v6739_v28 = vpop.f32.mrb[2].mxu0 }
 0x653   :  { %v5827_v29 = vpop.f32.mrb[3].mxu0 }
 0x656   :  { %v923_v30 = vpop.f32.mrb[4].mxu0 }
 0x657   :  { %v1005_v31 = vmul.f32 0.17677669, %v923_v30  ;;  %v5837_v32 = vpop.f32.mrb[5].mxu0 }
 0x659   :  { %v1007_v33 = vsel %vm6657_vm3, %v1005_v31, -1e+30 }
 0x65a   :  { %v1009_v34 = vsel %vm170_vm2, %v1007_v33, -inf }
 0x65b   :  { %1010 = vmax.xlane.f32.xlu0 %v1009_v34 }
 0x68f   :  { %v6744_v35 = vpop.f32.mrb[12].mxu1 }
 0x690   :  { %v5832_v36 = vpop.f32.mrb[13].mxu1 }
 0x693   :  { %v1001_v37 = vpop.f32.mrb[14].mxu1 }
 0x694   :  { %v1006_v38 = vmul.f32 0.17677669, %v1001_v37  ;;  %v5842_v39 = vpop.f32.mrb[15].mxu1 }
 0x696   :  { %v1008_v40 = vsel %vm6657_vm3, %v1006_v38, -1e+30 }
 0x697   :  { %v1012_v41 = vsel %vm170_vm2, %v1008_v40, -inf }
 0x698   :  { %1013 = vmax.xlane.f32.xlu1 %v1012_v41 }
 0x6a9   :  { %1031 = vrot.lane.b32.xlu1 %v6639_v13, %s7536_s28 }
 0x6ad   :  { %1196 = vrot.lane.b32.xlu1 %v6639_v13, %s7534_s4 }
 0x6b1   :  { %1274 = vrot.lane.b32.xlu1 %v6637_v12, %s7534_s4  ;;  %s7577_s4 = smov 8  }
 0x6b5   :  { %1272 = vrot.lane.b32.xlu1 %v6637_v12, %s7532_s29 }
 0x6e8   :  { %v1011_v42 = vpop.xlane.xlu0 %1010 }
 0x6e9   :  { %v1015_v43 = vsub.f32 %v1007_v33, %v1011_v42 }
 0x6eb   :  { %v1017_v44 = vmul.f32 1.442695, %v1015_v43 }
 0x6ed   :  { %6361 = vpow2.f32 %v1017_v44 }
 0x6f7   :  { %v6362_v45 = vpop.eup %6361 }
 0x6f8   :  { %v1021_v46 = vsel %vm170_vm2, %v6362_v45, 0.0 }
 0x6f9   :  { %1022 = vadd.xlane.f32.xlu0 %v1021_v46 }
 0x70f   :  { %1107 = vrot.lane.b32.xlu0 %v6637_v12, %s7536_s28  ;;  %s7570_s28 = sld [smem:[#allocation10_spill]] }
 0x725   :  { %v1014_v47 = vpop.xlane.xlu1 %1013 }
 0x726   :  { %v1016_v48 = vsub.f32 %v1008_v40, %v1014_v47 }
 0x728   :  { %v1019_v49 = vmul.f32 1.442695, %v1016_v48 }
 0x729   :  { %v1032_v50 = vpop.permute.xlu1 %1031 }
 0x72a   :  { %6363 = vpow2.f32 %v1019_v49  ;;  %5844 = vmatpush3.msra.mxu0 %v1032_v50 }
 0x72b   :  { %5853 = vmatprep.subr.mxu0 %v6485_v11 }
 0x72d   :  { %v1197_v57 = vpop.permute.xlu1 %1196 }
 0x731   :  { %v1275_v61 = vpop.permute.xlu1 %1274 }
 0x734   :  { %v6364_v51 = vpop.eup %6363 }
 0x735   :  { %v1024_v52 = vsel %vm170_vm2, %v6364_v51, 0.0  ;;  %v1273_v63 = vpop.permute.xlu1 %1272 }
 0x736   :  { %1025 = vadd.xlane.f32.xlu0 %v1024_v52  ;;  %v5479_v52 = vld [vmem:[%s7570_s28] ss:$0 sm:$0xff]  ;;  %s7576_s28 = smov 40  }
 0x74c   :  { %1194 = vrot.lane.b32.xlu0 %v6639_v13, %s7532_s29  ;;  %s7552_s29 = smov 24  }
 0x786   :  { %v1023_v53 = vpop.xlane.xlu0 %1022 }
 0x787   :  { %6365 = vrcp.f32 %v1023_v53 }
 0x78a   :  { %v1108_v54 = vpop.permute.xlu0 %1107 }
 0x78b   :  { %5849 = vmatpush3.msra.mxu1 %v1108_v54 }
 0x78c   :  { %5858 = vmatprep.subr.mxu1 %v6485_v11 }
 0x791   :  { %v6366_v55 = vpop.eup %6365 }
 0x792   :  { %v1029_v56 = vmul.f32 %v6366_v55, %v6362_v45 }
 0x794   :  { %5846 = vmatmul.mubr.msk.f32.vlgmr.msra.gmra.mrb[6].mxu0 %vm170_vm2, %v1029_v56 }
 0x795   :  { %5854 = vmatpush3.xpose.msk.msra.mxu0 %vm170_vm2, %v1197_v57  ;;  %5855 = vmatprep.mubr.msk.f32.mxu0 %vm6486_vm1, %v6485_v11 }
 0x796   :  { %5863 = vmatprep.subr.mxu0 %v6485_v11 }
 0x7c3   :  { %v1026_v58 = vpop.xlane.xlu0 %1025 }
 0x7c4   :  { %6367 = vrcp.f32 %v1026_v58 }
 0x7c7   :  { %v1195_v59 = vpop.permute.xlu0 %1194 }
 0x7c8   :  { %5856 = vmatmul.mubr.msk.f32.vlgmr.msra.gmra.mrb[8].mxu0 %vm170_vm2, %v1195_v59 }
 0x7c9   :  { %5865 = vmatprep.mubr.msk.f32.mxu0 %vm6486_vm1, %v6485_v11 }
 0x7ce   :  { %v6368_v60 = vpop.eup %6367 }
 0x7cf   :  { %v1030_v62 = vmul.f32 %v6368_v60, %v6364_v51 }
 0x7d1   :  { %5851 = vmatmul.mubr.msk.f32.vlgmr.msra.gmra.mrb[16].mxu1 %vm170_vm2, %v1030_v62 }
 0x7d2   :  { %5859 = vmatpush3.xpose.msk.msra.mxu1 %vm170_vm2, %v1275_v61  ;;  %5860 = vmatprep.mubr.msk.f32.mxu1 %vm6486_vm1, %v6485_v11 }
 0x7d3   :  { %5868 = vmatprep.subr.mxu1 %v6485_v11 }
 0x7d5   :  { %5861 = vmatmul.mubr.msk.f32.vlgmr.msra.gmra.mrb[18].mxu1 %vm170_vm2, %v1273_v63 }
 0x7d6   :  { %5870 = vmatprep.mubr.msk.f32.mxu1 %vm6486_vm1, %v6485_v11 }
 0x867   :  { %v1103_v0 = vpop.f32.mrb[6].mxu0 }
 0x868   :  { %v5847_v1 = vpop.f32.mrb[7].mxu0 }
 0x89b   :  { %v1268_v2 = vpop.f32.mrb[8].mxu0 }
 0x89c   :  { %v1350_v3 = vmul.f32 0.17677669, %v1268_v2  ;;  %v5857_v4 = vpop.f32.mrb[9].mxu0 }
 0x89e   :  { %v1352_v5 = vsel %vm6657_vm3, %v1350_v3, -1e+30 }
 0x89f   :  { %v1354_v6 = vsel %vm170_vm2, %v1352_v5, -inf }
 0x8a0   :  { %1355 = vmax.xlane.f32.xlu0 %v1354_v6  ;;  %v1674_v6 = vld [vmem:[%s7509_s7 + $0x8] sm:$0xff] }
 0x8a4   :  { %v1179_v7 = vpop.f32.mrb[16].mxu1 }
 0x8a5   :  { %v5852_v8 = vpop.f32.mrb[17].mxu1 }
 0x8a8   :  { %v1346_v9 = vpop.f32.mrb[18].mxu1 }
 0x8a9   :  { %v1351_v10 = vmul.f32 0.17677669, %v1346_v9  ;;  %v5862_v14 = vpop.f32.mrb[19].mxu1  ;;  %v1676_v9 = vld [vmem:[%s7509_s7 + $0x18] sm:$0xff] }
 0x8ab   :  { %v1353_v15 = vsel %vm6657_vm3, %v1351_v10, -1e+30 }
 0x8ac   :  { %v1357_v16 = vsel %vm170_vm2, %v1353_v15, -inf }
 0x8ad   :  { %1358 = vmax.xlane.f32.xlu1 %v1357_v16 }
 0x8be   :  { %1376 = vrot.lane.b32.xlu1 %v6639_v13, %s7530_s30 }
 0x8c2   :  { %840 = vrot.lane.b32.xlu1 %v6739_v28, %s7528_s0 }
 0x8c6   :  { %842 = vrot.lane.b32.xlu1 %v6744_v35, %s7528_s0 }
 0x8ca   :  { %1187 = vrot.lane.b32.xlu1 %v1179_v7, %s7526_s21  ;;  %v1675_v7 = vld [vmem:[%s7509_s7 + $0x10] sm:$0xff] }
 0x8cb   :  { %v6211_v10 = vpack.c.bf16 %v1676_v9, %v1675_v7 }
 0x92d   :  { %v1356_v17 = vpop.xlane.xlu0 %1355 }
 0x92e   :  { %v1360_v18 = vsub.f32 %v1352_v5, %v1356_v17  ;;  %v1673_v5 = vld [vmem:[%s7509_s7] sm:$0xff] }
 0x92f   :  { %v6207_v8 = vpack.c.bf16 %v1674_v6, %v1673_v5 }
 0x930   :  { %v1362_v19 = vmul.f32 1.442695, %v1360_v18 }
 0x932   :  { %6369 = vpow2.f32 %v1362_v19 }
 0x93a   :  { %v1359_v21 = vpop.xlane.xlu1 %1358 }
 0x93b   :  { %v1361_v22 = vsub.f32 %v1353_v15, %v1359_v21 }
 0x93c   :  { %v6370_v23 = vpop.eup %6369 }
 0x93d   :  { %v1364_v24 = vmul.f32 1.442695, %v1361_v22  ;;  %v1366_v13 = vsel %vm170_vm2, %v6370_v23, 0.0  ;;  %v5482_v22 = vld [vmem:[%s7507_s5] ss:$0 sm:$0xff] }
 0x93e   :  { %v1377_v25 = vpop.permute.xlu1 %1376  ;;  %1367 = vadd.xlane.f32.xlu0 %v1366_v13 }
 0x93f   :  { %6371 = vpow2.f32 %v1364_v24  ;;  %5864 = vmatpush3.msra.mxu0 %v1377_v25  ;;  %v5483_v24 = vld [vmem:[%s7508_s6] ss:$0 sm:$0xff] }
 0x942   :  { %v841_v26 = vpop.permute.xlu1 %840 }
 0x943   :  { %847 = vst.msk [vmem:[#allocation2] sm:$0xff] %vm846_vm4, %v841_v26 }
 0x946   :  { %v843_v27 = vpop.permute.xlu1 %842 }
 0x947   :  { %848 = vst.msk [vmem:[#allocation2 + $0x8] sm:$0xff] %vm846_vm4, %v843_v27 }
 0x949   :  { %v6372_v28 = vpop.eup %6371 }
 0x94a   :  { %v1188_v29 = vpop.permute.xlu1 %1187  ;;  %v1369_v30 = vsel %vm170_vm2, %v6372_v28, 0.0 }
 0x94b   :  { %1193 = vst.msk [vmem:[#allocation2 + $0x8] sm:$0xff] %vm1191_vm5, %v1188_v29  ;;  %1370 = vadd.xlane.f32.xlu0 %v1369_v30 }
 0x961   :  { %1452 = vrot.lane.b32.xlu0 %v6637_v12, %s7530_s30  ;;  %s7578_s30 = smov 16  }
 0x965   :  { %1185 = vrot.lane.b32.xlu0 %v1103_v0, %s7526_s21  ;;  %s7569_s21 = sld [smem:[#allocation9_spill]] }
 0x96b   :  { %v80_v12 = vld [vmem:[%s7569_s21] sm:$0xff]  ;;  %v81_v39 = vld [vmem:[%s7569_s21 + $0x8] sm:$0xff]  ;;  %v82_v43 = vld [vmem:[%s7569_s21 + $0x10] sm:$0xff] }
 0x96c   :  { %v6199_v41 = vpack.c.bf16 %v81_v39, %v80_v12  ;;  %v83_v44 = vld [vmem:[%s7569_s21 + $0x18] sm:$0xff]  ;;  %s7571_s21 = smov 80  }
 0x96d   :  { %v6203_v45 = vpack.c.bf16 %v83_v44, %v82_v43 }
 0x96e   :  { %6200 = vmatprep.subr.bf16.mxu0 %v6199_v41 }
 0x9cb   :  { %v1368_v31 = vpop.xlane.xlu0 %1367 }
 0x9cc   :  { %6373 = vrcp.f32 %v1368_v31 }
 0x9d6   :  { %v6374_v32 = vpop.eup %6373 }
 0x9d7   :  { %v1374_v33 = vmul.f32 %v6374_v32, %v6370_v23 }
 0x9d8   :  { %v1371_v34 = vpop.xlane.xlu0 %1370 }
 0x9d9   :  { %6375 = vrcp.f32 %v1371_v34  ;;  %5866 = vmatmul.mubr.msk.f32.vlgmr.msra.gmra.mrb[10].mxu0 %vm170_vm2, %v1374_v33 }
 0x9da   :  { %6202 = vmatpush3.bf16.msra.mxu0 %v6199_v41 }
 0x9db   :  { %6204 = vmatprep.subr.bf16.mxu0 %v6203_v45 }
 0x9dc   :  { %v1453_v35 = vpop.permute.xlu0 %1452 }
 0x9dd   :  { %5869 = vmatpush3.msra.mxu1 %v1453_v35 }
 0x9de   :  { %6206 = vmatpush3.bf16.msra.mxu0 %v6203_v45  ;;  %6208 = vmatprep.subr.bf16.mxu1 %v6207_v8 }
 0x9df   :  { %5895 = vmatprep.subr.mxu0 %v6485_v11 }
 0x9e0   :  { %v1186_v36 = vpop.permute.xlu0 %1185 }
 0x9e1   :  { %1192 = vst.msk [vmem:[#allocation2] sm:$0xff] %vm1191_vm5, %v1186_v36 }
 0x9e3   :  { %v6376_v37 = vpop.eup %6375 }
 0x9e4   :  { %v1375_v38 = vmul.f32 %v6376_v37, %v6372_v28 }
 0x9e6   :  { %5871 = vmatmul.mubr.msk.f32.vlgmr.msra.gmra.mrb[20].mxu1 %vm170_vm2, %v1375_v38 }
 0x9e7   :  { %6210 = vmatpush3.bf16.msra.mxu1 %v6207_v8 }
 0x9e8   :  { %6212 = vmatprep.subr.bf16.mxu1 %v6211_v10 }
 0x9eb   :  { %6214 = vmatpush3.bf16.msra.mxu1 %v6211_v10 }
 0x9ec   :  { %5900 = vmatprep.subr.mxu1 %v6485_v11 }
 0xaac   :  { %v1448_v40 = vpop.f32.mrb[10].mxu0 }
 0xaad   :  { %1530 = vrot.lane.b32.xlu0 %v1448_v40, %s7552_s29  ;;  %v5867_v42 = vpop.f32.mrb[11].mxu0 }
 0xab9   :  { %v1524_v46 = vpop.f32.mrb[20].mxu1 }
 0xaba   :  { %1532 = vrot.lane.b32.xlu1 %v1524_v46, %s7552_s29  ;;  %v5872_v47 = vpop.f32.mrb[21].mxu1 }
 0xb1f   :  { %v1531_v48 = vpop.permute.xlu0 %1530 }
 0xb20   :  { %1537 = vst.msk [vmem:[#allocation2] sm:$0xff] %vm1536_vm6, %v1531_v48 }
 0xb27   :  { %v1539_v49 = vld [vmem:[#allocation2] sm:$0xff] }
 0xb28   :  { %5881 = vmatprep.mubr.msk.f32.mxu0 %vm85_vm0, %v1539_v49 }
 0xb2c   :  { %v1533_v50 = vpop.permute.xlu1 %1532 }
 0xb2d   :  { %1538 = vst.msk [vmem:[#allocation2 + $0x8] sm:$0xff] %vm1536_vm6, %v1533_v50 }
 0xb34   :  { %v1540_v51 = vld [vmem:[#allocation2 + $0x8] sm:$0xff] }
 0xb35   :  { %5882 = vmatmul.mubr.msk.f32.vlgmr.msra.gmra.mrb[12].mxu0 %vm85_vm0, %v1540_v51 }
 0xb36   :  { %5897 = vmatprep.mubr.msk.f32.mxu0 %vm6486_vm1, %v6485_v11 }
 0xc08   :  { %v5883_v53 = vpop.f32.mrb[12].mxu0 }
 0xc09   :  { %v6829_v54 = vadd.f32 %v5883_v53, %v5479_v52  ;;  %v1619_v55 = vpop.f32.mrb[13].mxu0 }
 0xc0a   :  { %v6831_v56 = vadd.f32 %v5479_v52, %v1619_v55 }
 0xc0b   :  { %v1633_v57 = vsel %vm85_vm0, %v6829_v54, 0.0 }
 0xc0c   :  { %1634 = vadd.xlane.f32.xlu1 %v1633_v57  ;;  %v1630_v58 = vsel %vm85_vm0, %v6831_v56, 0.0 }
 0xc0d   :  { %1631 = vadd.xlane.f32.xlu0 %v1630_v58 }
 0xc99   :  { %v1635_v59 = vpop.xlane.xlu1 %1634 }
 0xc9a   :  { %v1638_v60 = vmul.f32 0.03125, %v1635_v59  ;;  %v1632_v61 = vpop.xlane.xlu0 %1631 }
 0xc9b   :  { %v1637_v62 = vmul.f32 0.03125, %v1632_v61 }
 0xc9c   :  { %v1640_v63 = vsub.f32 %v6829_v54, %v1638_v60 }
 0xc9d   :  { %v1639_v0 = vsub.f32 %v6831_v56, %v1637_v62 }
 0xc9e   :  { %v1642_v3 = vmul.f32 %v1640_v63, %v1640_v63 }
 0xc9f   :  { %v1641_v1 = vmul.f32 %v1639_v0, %v1639_v0 }
 0xca0   :  { %v1646_v4 = vsel %vm85_vm0, %v1642_v3, 0.0 }
 0xca1   :  { %v1643_v2 = vsel %vm85_vm0, %v1641_v1, 0.0 }
 0xca2   :  { %1644 = vadd.xlane.f32.xlu0 %v1643_v2 }
 0xca6   :  { %1647 = vadd.xlane.f32.xlu0 %v1646_v4 }
 0xd2f   :  { %v1645_v14 = vpop.xlane.xlu0 %1644 }
 0xd30   :  { %v1649_v15 = vmul.f32 0.03125, %v1645_v14 }
 0xd32   :  { %v1651_v16 = vadd.f32 1e-05, %v1649_v15 }
 0xd33   :  { %v1648_v17 = vpop.xlane.xlu0 %1647 }
 0xd34   :  { %6377 = vrsqrt.f32 %v1651_v16  ;;  %v1650_v18 = vmul.f32 0.03125, %v1648_v17 }
 0xd36   :  { %v1652_v19 = vadd.f32 1e-05, %v1650_v18 }
 0xd38   :  { %6379 = vrsqrt.f32 %v1652_v19 }
 0xd3e   :  { %v6378_v21 = vpop.eup %6377 }
 0xd3f   :  { %v1655_v23 = vmul.f32 %v6378_v21, %v1639_v0 }
 0xd41   :  { %v1663_v13 = vmul.f32 %v5482_v22, %v1655_v23 }
 0xd42   :  { %v6380_v25 = vpop.eup %6379 }
 0xd43   :  { %v1656_v26 = vmul.f32 %v6380_v25, %v1640_v63  ;;  %v1671_v27 = vadd.f32 %v5483_v24, %v1663_v13 }
 0xd45   :  { %v1664_v28 = vmul.f32 %v5482_v22, %v1656_v26  ;;  %5892 = vmatprep.mubr.msk.f32.mxu1 %vm85_vm0, %v1671_v27 }
 0xd47   :  { %v1672_v29 = vadd.f32 %v5483_v24, %v1664_v28 }
 0xd49   :  { %5893 = vmatmul.mubr.msk.f32.vlgmr.msra.gmra.mrb[22].mxu1 %vm85_vm0, %v1672_v29 }
 0xd4a   :  { %5902 = vmatprep.mubr.msk.f32.mxu1 %vm6486_vm1, %v6485_v11 }
 0xe1c   :  { %v6864_v30 = vpop.f32.mrb[22].mxu1 }
 0xe1d   :  { %1841 = vrot.lane.b32.xlu0 %v6864_v30, %s7550_s23  ;;  %v6868_v31 = vpop.f32.mrb[23].mxu1 }
 0xe1e   :  { %1764 = vrot.lane.b32.xlu1 %v6868_v31, %s7550_s23  ;;  %s7585_s23 = sld [smem:[#allocation11_spill]] }
 0xe8f   :  { %v1842_v32 = vpop.permute.xlu0 %1841 }
 0xe90   :  { %5901 = vmatpush3.xpose.msk.msra.mxu1 %vm170_vm2, %v1842_v32  ;;  %v1765_v33 = vpop.permute.xlu1 %1764 }
 0xe91   :  { %5896 = vmatpush3.xpose.msk.msra.mxu0 %vm170_vm2, %v1765_v33  ;;  %5910 = vmatprep.subr.mxu1 %v6485_v11 }
 0xe92   :  { %5905 = vmatprep.subr.mxu0 %v6485_v11 }
 0xe93   :  { %5903 = vmatmul.mubr.msk.f32.vlgmr.msra.gmra.mrb[24].mxu1 %vm170_vm2, %v6864_v30 }
 0xe94   :  { %5898 = vmatmul.mubr.msk.f32.vlgmr.msra.gmra.mrb[14].mxu0 %vm170_vm2, %v6868_v31  ;;  %5912 = vmatprep.mubr.msk.f32.mxu1 %vm6486_vm1, %v6485_v11 }
 0xe95   :  { %5907 = vmatprep.mubr.msk.f32.mxu0 %vm6486_vm1, %v6485_v11 }
 0xf66   :  { %v1913_v34 = vpop.f32.mrb[24].mxu1 }
 0xf67   :  { %v1918_v35 = vmul.f32 0.17677669, %v1913_v34  ;;  %v1836_v36 = vpop.f32.mrb[14].mxu0  ;;  %v5904_v37 = vpop.f32.mrb[25].mxu1 }
 0xf68   :  { %v1917_v38 = vmul.f32 0.17677669, %v1836_v36  ;;  %v5899_v12 = vpop.f32.mrb[15].mxu0 }
 0xf69   :  { %v1920_v39 = vsel %vm6657_vm3, %v1918_v35, -1e+30 }
 0xf6a   :  { %v1924_v40 = vsel %vm170_vm2, %v1920_v39, -inf  ;;  %v1919_v41 = vsel %vm6657_vm3, %v1917_v38, -1e+30 }
 0xf6b   :  { %1925 = vmax.xlane.f32.xlu0 %v1924_v40  ;;  %v1921_v42 = vsel %vm170_vm2, %v1919_v41, -inf }
 0xf6c   :  { %1922 = vmax.xlane.f32.xlu1 %v1921_v42 }
 0xf7d   :  { %1943 = vrot.lane.b32.xlu1 %v6868_v31, %s7548_s24 }
 0xf81   :  { %2099 = vrot.lane.b32.xlu1 %v6868_v31, %s7546_s2  ;;  %2019 = vrot.lane.b32.xlu0 %v6864_v30, %s7548_s24  ;;  %s7586_s24 = sld [smem:[#allocation12_spill]] }
 0xf85   :  { %2177 = vrot.lane.b32.xlu1 %v6864_v30, %s7546_s2  ;;  %s7582_s2 = smov 88  }
 0xff8   :  { %v1926_v43 = vpop.xlane.xlu0 %1925 }
 0xff9   :  { %v1928_v44 = vsub.f32 %v1920_v39, %v1926_v43  ;;  %v1923_v45 = vpop.xlane.xlu1 %1922 }
 0xffa   :  { %v1927_v46 = vsub.f32 %v1919_v41, %v1923_v45 }
 0xffb   :  { %v1931_v47 = vmul.f32 1.442695, %v1928_v44 }
 0xffc   :  { %v1929_v48 = vmul.f32 1.442695, %v1927_v46  ;;  %v2020_v49 = vpop.permute.xlu0 %2019 }
 0xffd   :  { %6381 = vpow2.f32 %v1931_v47  ;;  %v1944_v50 = vpop.permute.xlu1 %1943  ;;  %5911 = vmatpush3.msra.mxu1 %v2020_v49 }
 0xffe   :  { %6383 = vpow2.f32 %v1929_v48  ;;  %5906 = vmatpush3.msra.mxu0 %v1944_v50  ;;  %5920 = vmatprep.subr.mxu1 %v6485_v11 }
 0xfff   :  { %5915 = vmatprep.subr.mxu0 %v6485_v11 }
0x1001   :  { %v2100_v57 = vpop.permute.xlu1 %2099 }
0x1005   :  { %v2178_v58 = vpop.permute.xlu1 %2177 }
0x1007   :  { %v6382_v51 = vpop.eup %6381 }
0x1008   :  { %v6384_v52 = vpop.eup %6383  ;;  %v1936_v53 = vsel %vm170_vm2, %v6382_v51, 0.0 }
0x1009   :  { %1937 = vadd.xlane.f32.xlu0 %v1936_v53  ;;  %v1933_v55 = vsel %vm170_vm2, %v6384_v52, 0.0 }
0x100a   :  { %1934 = vadd.xlane.f32.xlu1 %v1933_v55 }
0x101b   :  { %2175 = vrot.lane.b32.xlu1 %v6864_v30, %s7544_s25 }
0x101f   :  { %2097 = vrot.lane.b32.xlu0 %v6868_v31, %s7544_s25 }
0x1096   :  { %v1938_v59 = vpop.xlane.xlu0 %1937 }
0x1097   :  { %6385 = vrcp.f32 %v1938_v59  ;;  %v1935_v60 = vpop.xlane.xlu1 %1934 }
0x1098   :  { %6387 = vrcp.f32 %v1935_v60 }
0x109a   :  { %v2098_v2 = vpop.permute.xlu0 %2097 }
0x109b   :  { %v2176_v1 = vpop.permute.xlu1 %2175 }
0x10a1   :  { %v6386_v61 = vpop.eup %6385 }
0x10a2   :  { %v6388_v62 = vpop.eup %6387  ;;  %v1942_v63 = vmul.f32 %v6386_v61, %v6382_v51 }
0x10a3   :  { %v1941_v0 = vmul.f32 %v6388_v62, %v6384_v52 }
0x10a4   :  { %5913 = vmatmul.mubr.msk.f32.vlgmr.msra.gmra.mrb[26].mxu1 %vm170_vm2, %v1942_v63 }
0x10a5   :  { %5921 = vmatpush3.xpose.msk.msra.mxu1 %vm170_vm2, %v2178_v58  ;;  %5908 = vmatmul.mubr.msk.f32.vlgmr.msra.gmra.mrb[16].mxu0 %vm170_vm2, %v1941_v0 }
0x10a6   :  { %5916 = vmatpush3.xpose.msk.msra.mxu0 %vm170_vm2, %v2100_v57  ;;  %5922 = vmatprep.mubr.msk.f32.mxu1 %vm6486_vm1, %v6485_v11 }
0x10a7   :  { %5917 = vmatprep.mubr.msk.f32.mxu0 %vm6486_vm1, %v6485_v11  ;;  %5925 = vmatprep.subr.mxu0 %v6485_v11 }
0x10a8   :  { %5923 = vmatmul.mubr.msk.f32.vlgmr.msra.gmra.mrb[28].mxu1 %vm170_vm2, %v2176_v1  ;;  %5930 = vmatprep.subr.mxu1 %v6485_v11 }
0x10a9   :  { %5918 = vmatmul.mubr.msk.f32.vlgmr.msra.gmra.mrb[18].mxu0 %vm170_vm2, %v2098_v2  ;;  %5932 = vmatprep.mubr.msk.f32.mxu1 %vm6486_vm1, %v6485_v11 }
0x10aa   :  { %5927 = vmatprep.mubr.msk.f32.mxu0 %vm6486_vm1, %v6485_v11 }
0x1177   :  { %v2091_v3 = vpop.f32.mrb[26].mxu1 }
0x1178   :  { %2096 = vst.msk [vmem:[#allocation2 + $0x8] sm:$0xff] %vm170_vm2, %v2091_v3  ;;  %v2015_v4 = vpop.f32.mrb[16].mxu0  ;;  %v5914_v5 = vpop.f32.mrb[27].mxu1 }
0x1179   :  { %2095 = vst.msk [vmem:[#allocation2] sm:$0xff] %vm170_vm2, %v2015_v4  ;;  %v5909_v6 = vpop.f32.mrb[17].mxu0 }
0x117b   :  { %v2249_v7 = vpop.f32.mrb[28].mxu1 }
0x117c   :  { %v2254_v8 = vmul.f32 0.17677669, %v2249_v7  ;;  %v2171_v9 = vpop.f32.mrb[18].mxu0  ;;  %v5924_v10 = vpop.f32.mrb[29].mxu1 }
0x117d   :  { %v2253_v14 = vmul.f32 0.17677669, %v2171_v9  ;;  %v5919_v15 = vpop.f32.mrb[19].mxu0 }
0x117e   :  { %v2256_v16 = vsel %vm6657_vm3, %v2254_v8, -1e+30 }
0x117f   :  { %v2260_v17 = vsel %vm170_vm2, %v2256_v16, -inf  ;;  %v2255_v18 = vsel %vm6657_vm3, %v2253_v14, -1e+30 }
0x1180   :  { %2261 = vmax.xlane.f32.xlu1 %v2260_v17  ;;  %v2257_v19 = vsel %vm170_vm2, %v2255_v18, -inf }
0x1181   :  { %2258 = vmax.xlane.f32.xlu0 %v2257_v19 }
0x1191   :  { %2279 = vrot.lane.b32.xlu1 %v6868_v31, %s7542_s3 }
0x1195   :  { %2443 = vrot.lane.b32.xlu1 %v6868_v31, %s7571_s21 }
0x1197   :  { %2355 = vrot.lane.b32.xlu0 %v6864_v30, %s7542_s3  ;;  %s7579_s3 = smov 24  }
0x1199   :  { %2521 = vrot.lane.b32.xlu1 %v6864_v30, %s7571_s21 }
0x119d   :  { %2519 = vrot.lane.b32.xlu1 %v6864_v30, %s7572_s1 }
0x120d   :  { %v2262_v21 = vpop.xlane.xlu1 %2261 }
0x120e   :  { %v2264_v22 = vsub.f32 %v2256_v16, %v2262_v21  ;;  %v2259_v23 = vpop.xlane.xlu0 %2258 }
0x120f   :  { %v2263_v24 = vsub.f32 %v2255_v18, %v2259_v23 }
0x1210   :  { %v2267_v13 = vmul.f32 1.442695, %v2264_v22 }
0x1211   :  { %v2265_v25 = vmul.f32 1.442695, %v2263_v24  ;;  %v2280_v26 = vpop.permute.xlu1 %2279 }
0x1212   :  { %6389 = vpow2.f32 %v2267_v13  ;;  %v2356_v27 = vpop.permute.xlu0 %2355  ;;  %5926 = vmatpush3.msra.mxu0 %v2280_v26 }
0x1213   :  { %5931 = vmatpush3.msra.mxu1 %v2356_v27  ;;  %5935 = vmatprep.subr.mxu0 %v6485_v11  ;;  %6391 = vpow2.f32 %v2265_v25 }
0x1214   :  { %5940 = vmatprep.subr.mxu1 %v6485_v11 }
0x1215   :  { %v2444_v36 = vpop.permute.xlu1 %2443 }
0x1219   :  { %v2522_v38 = vpop.permute.xlu1 %2521 }
0x121c   :  { %v6390_v28 = vpop.eup %6389 }
0x121d   :  { %v2272_v29 = vsel %vm170_vm2, %v6390_v28, 0.0  ;;  %v6392_v32 = vpop.eup %6391  ;;  %v2520_v41 = vpop.permute.xlu1 %2519 }
0x121e   :  { %2273 = vadd.xlane.f32.xlu0 %v2272_v29  ;;  %v2269_v33 = vsel %vm170_vm2, %v6392_v32, 0.0 }
0x1222   :  { %2270 = vadd.xlane.f32.xlu0 %v2269_v33 }
0x1238   :  { %2441 = vrot.lane.b32.xlu0 %v6868_v31, %s7572_s1 }
0x12ab   :  { %v2274_v34 = vpop.xlane.xlu0 %2273 }
0x12ac   :  { %6393 = vrcp.f32 %v2274_v34 }
0x12af   :  { %v2271_v35 = vpop.xlane.xlu0 %2270 }
0x12b0   :  { %6395 = vrcp.f32 %v2271_v35 }
0x12b3   :  { %v2442_v42 = vpop.permute.xlu0 %2441 }
0x12b6   :  { %v6394_v37 = vpop.eup %6393 }
0x12b7   :  { %v2278_v12 = vmul.f32 %v6394_v37, %v6390_v28 }
0x12b9   :  { %5933 = vmatmul.mubr.msk.f32.vlgmr.msra.gmra.mrb[30].mxu1 %vm170_vm2, %v2278_v12 }
0x12ba   :  { %v6396_v39 = vpop.eup %6395  ;;  %5941 = vmatpush3.xpose.msk.msra.mxu1 %vm170_vm2, %v2522_v38  ;;  %5942 = vmatprep.mubr.msk.f32.mxu1 %vm6486_vm1, %v6485_v11 }
0x12bb   :  { %v2277_v40 = vmul.f32 %v6396_v39, %v6392_v32  ;;  %5950 = vmatprep.subr.mxu1 %v6485_v11 }
0x12bd   :  { %5928 = vmatmul.mubr.msk.f32.vlgmr.msra.gmra.mrb[20].mxu0 %vm170_vm2, %v2277_v40  ;;  %5943 = vmatmul.mubr.msk.f32.vlgmr.msra.gmra.mrb[32].mxu1 %vm170_vm2, %v2520_v41 }
0x12be   :  { %5936 = vmatpush3.xpose.msk.msra.mxu0 %vm170_vm2, %v2444_v36  ;;  %5937 = vmatprep.mubr.msk.f32.mxu0 %vm6486_vm1, %v6485_v11 }
0x12bf   :  { %5945 = vmatprep.subr.mxu0 %v6485_v11  ;;  %5952 = vmatprep.mubr.msk.f32.mxu1 %vm6486_vm1, %v6485_v11 }
0x12c1   :  { %5938 = vmatmul.mubr.msk.f32.vlgmr.msra.gmra.mrb[22].mxu0 %vm170_vm2, %v2442_v42 }
0x12c2   :  { %5947 = vmatprep.mubr.msk.f32.mxu0 %vm6486_vm1, %v6485_v11 }
0x138c   :  { %v6962_v43 = vpop.f32.mrb[30].mxu1 }
0x138d   :  { %v5934_v44 = vpop.f32.mrb[31].mxu1 }
0x1390   :  { %v6964_v45 = vpop.f32.mrb[20].mxu0  ;;  %v2593_v46 = vpop.f32.mrb[32].mxu1 }
0x1391   :  { %v2598_v47 = vmul.f32 0.17677669, %v2593_v46  ;;  %v5929_v48 = vpop.f32.mrb[21].mxu0  ;;  %v5944_v49 = vpop.f32.mrb[33].mxu1 }
0x1393   :  { %v2600_v50 = vsel %vm6657_vm3, %v2598_v47, -1e+30 }
0x1394   :  { %v2515_v51 = vpop.f32.mrb[22].mxu0  ;;  %v2604_v52 = vsel %vm170_vm2, %v2600_v50, -inf }
0x1395   :  { %v2597_v53 = vmul.f32 0.17677669, %v2515_v51  ;;  %v5939_v55 = vpop.f32.mrb[23].mxu0  ;;  %2605 = vmax.xlane.f32.xlu1 %v2604_v52 }
0x1397   :  { %v2599_v57 = vsel %vm6657_vm3, %v2597_v53, -1e+30 }
0x1398   :  { %v2601_v58 = vsel %vm170_vm2, %v2599_v57, -inf }
0x1399   :  { %2602 = vmax.xlane.f32.xlu0 %v2601_v58  ;;  %v1678_v58 = vld [vmem:[%s7510_s8 + $0x8] sm:$0xff] }
0x13a6   :  { %2623 = vrot.lane.b32.xlu1 %v6868_v31, %s7573_s22 }
0x13aa   :  { %2787 = vrot.lane.b32.xlu1 %v6868_v31, %s7574_s26 }
0x13ae   :  { %2865 = vrot.lane.b32.xlu1 %v6864_v30, %s7574_s26 }
0x13af   :  { %2699 = vrot.lane.b32.xlu0 %v6864_v30, %s7573_s22 }
0x13b2   :  { %2863 = vrot.lane.b32.xlu1 %v6864_v30, %s7575_s27 }
0x1422   :  { %v2606_v59 = vpop.xlane.xlu1 %2605 }
0x1423   :  { %v2608_v60 = vsub.f32 %v2600_v50, %v2606_v59 }
0x1425   :  { %v2611_v61 = vmul.f32 1.442695, %v2608_v60  ;;  %v1679_v60 = vld [vmem:[%s7510_s8 + $0x10] sm:$0xff] }
0x1426   :  { %v2603_v62 = vpop.xlane.xlu0 %2602  ;;  %v2624_v63 = vpop.permute.xlu1 %2623 }
0x1427   :  { %6397 = vpow2.f32 %v2611_v61  ;;  %v2607_v0 = vsub.f32 %v2599_v57, %v2603_v62  ;;  %5946 = vmatpush3.msra.mxu0 %v2624_v63  ;;  %v1680_v61 = vld [vmem:[%s7510_s8 + $0x18] sm:$0xff] }
0x1428   :  { %5955 = vmatprep.subr.mxu0 %v6485_v11  ;;  %v6219_v62 = vpack.c.bf16 %v1680_v61, %v1679_v60 }
0x1429   :  { %v2609_v1 = vmul.f32 1.442695, %v2607_v0 }
0x142a   :  { %v2700_v2 = vpop.permute.xlu0 %2699  ;;  %v2788_v9 = vpop.permute.xlu1 %2787 }
0x142b   :  { %6399 = vpow2.f32 %v2609_v1  ;;  %5951 = vmatpush3.msra.mxu1 %v2700_v2 }
0x142c   :  { %5960 = vmatprep.subr.mxu1 %v6485_v11 }
0x142e   :  { %v2866_v14 = vpop.permute.xlu1 %2865 }
0x1431   :  { %v6398_v3 = vpop.eup %6397 }
0x1432   :  { %v2616_v4 = vsel %vm170_vm2, %v6398_v3, 0.0  ;;  %v2864_v18 = vpop.permute.xlu1 %2863 }
0x1433   :  { %2617 = vadd.xlane.f32.xlu0 %v2616_v4 }
0x1435   :  { %v6400_v5 = vpop.eup %6399 }
0x1436   :  { %v2613_v6 = vsel %vm170_vm2, %v6400_v5, 0.0 }
0x1437   :  { %2614 = vadd.xlane.f32.xlu0 %v2613_v6 }
0x144d   :  { %2785 = vrot.lane.b32.xlu0 %v6868_v31, %s7575_s27 }
0x14c0   :  { %v2618_v7 = vpop.xlane.xlu0 %2617 }
0x14c1   :  { %6401 = vrcp.f32 %v2618_v7  ;;  %v5510_v7 = vld [vmem:[%s7511_s9] ss:$0 sm:$0xff] }
0x14c4   :  { %v2615_v8 = vpop.xlane.xlu0 %2614 }
0x14c5   :  { %6403 = vrcp.f32 %v2615_v8 }
0x14c8   :  { %v2786_v19 = vpop.permute.xlu0 %2785 }
0x14cb   :  { %v6402_v10 = vpop.eup %6401 }
0x14cc   :  { %v2622_v15 = vmul.f32 %v6402_v10, %v6398_v3 }
0x14ce   :  { %5953 = vmatmul.mubr.msk.f32.vlgmr.msra.gmra.mrb[34].mxu1 %vm170_vm2, %v2622_v15 }
0x14cf   :  { %v6404_v16 = vpop.eup %6403  ;;  %5961 = vmatpush3.xpose.msk.msra.mxu1 %vm170_vm2, %v2866_v14  ;;  %5962 = vmatprep.mubr.msk.f32.mxu1 %vm6486_vm1, %v6485_v11 }
0x14d0   :  { %v2621_v17 = vmul.f32 %v6404_v16, %v6400_v5  ;;  %5970 = vmatprep.subr.mxu1 %v6485_v11 }
0x14d2   :  { %5948 = vmatmul.mubr.msk.f32.vlgmr.msra.gmra.mrb[24].mxu0 %vm170_vm2, %v2621_v17  ;;  %5963 = vmatmul.mubr.msk.f32.vlgmr.msra.gmra.mrb[36].mxu1 %vm170_vm2, %v2864_v18 }
0x14d3   :  { %5956 = vmatpush3.xpose.msk.msra.mxu0 %vm170_vm2, %v2788_v9  ;;  %5957 = vmatprep.mubr.msk.f32.mxu0 %vm6486_vm1, %v6485_v11 }
0x14d4   :  { %5965 = vmatprep.subr.mxu0 %v6485_v11  ;;  %5972 = vmatprep.mubr.msk.f32.mxu1 %vm6486_vm1, %v6485_v11 }
0x14d6   :  { %5958 = vmatmul.mubr.msk.f32.vlgmr.msra.gmra.mrb[26].mxu0 %vm170_vm2, %v2786_v19 }
0x14d7   :  { %5967 = vmatprep.mubr.msk.f32.mxu0 %vm6486_vm1, %v6485_v11 }
0x15a1   :  { %v2771_v21 = vpop.f32.mrb[34].mxu1 }
0x15a2   :  { %v5954_v22 = vpop.f32.mrb[35].mxu1 }
0x15a5   :  { %v2695_v23 = vpop.f32.mrb[24].mxu0  ;;  %v2937_v24 = vpop.f32.mrb[36].mxu1 }
0x15a6   :  { %v2942_v13 = vmul.f32 0.17677669, %v2937_v24  ;;  %v5949_v25 = vpop.f32.mrb[25].mxu0  ;;  %v5964_v26 = vpop.f32.mrb[37].mxu1 }
0x15a8   :  { %v2944_v27 = vsel %vm6657_vm3, %v2942_v13, -1e+30 }
0x15a9   :  { %v2859_v28 = vpop.f32.mrb[26].mxu0  ;;  %v2948_v29 = vsel %vm170_vm2, %v2944_v27, -inf }
0x15aa   :  { %v2941_v32 = vmul.f32 0.17677669, %v2859_v28  ;;  %v5959_v33 = vpop.f32.mrb[27].mxu0  ;;  %2949 = vmax.xlane.f32.xlu1 %v2948_v29  ;;  %v3265_v28 = vld [vmem:[%s7514_s12 + $0x8] sm:$0xff] }
0x15ab   :  { %v3267_v33 = vld [vmem:[%s7514_s12 + $0x18] sm:$0xff] }
0x15ac   :  { %v2943_v34 = vsel %vm6657_vm3, %v2941_v32, -1e+30  ;;  %v3266_v32 = vld [vmem:[%s7514_s12 + $0x10] sm:$0xff] }
0x15ad   :  { %v2945_v35 = vsel %vm170_vm2, %v2943_v34, -inf }
0x15ae   :  { %2946 = vmax.xlane.f32.xlu0 %v2945_v35  ;;  %v3358_v35 = vld [vmem:[%s7516_s14] sm:$0xff] }
0x15bb   :  { %2967 = vrot.lane.b32.xlu1 %v6868_v31, %s7576_s28 }
0x15bf   :  { %2433 = vrot.lane.b32.xlu1 %v6964_v45, %s7577_s4 }
0x15c3   :  { %2435 = vrot.lane.b32.xlu1 %v6962_v43, %s7577_s4 }
0x15c7   :  { %2779 = vrot.lane.b32.xlu1 %v2771_v21, %s7578_s30 }
0x1637   :  { %v2950_v36 = vpop.xlane.xlu1 %2949 }
0x1638   :  { %v2952_v37 = vsub.f32 %v2944_v27, %v2950_v36  ;;  %v3264_v27 = vld [vmem:[%s7514_s12] sm:$0xff]  ;;  %v3359_v36 = vld [vmem:[%s7516_s14 + $0x8] sm:$0xff] }
0x1639   :  { %v6223_v29 = vpack.c.bf16 %v3265_v28, %v3264_v27 }
0x163a   :  { %v2955_v38 = vmul.f32 1.442695, %v2952_v37  ;;  %v3360_v37 = vld [vmem:[%s7516_s14 + $0x10] sm:$0xff] }
0x163b   :  { %v2947_v12 = vpop.xlane.xlu0 %2946  ;;  %v2968_v39 = vpop.permute.xlu1 %2967 }
0x163c   :  { %6405 = vpow2.f32 %v2955_v38  ;;  %v2951_v40 = vsub.f32 %v2943_v34, %v2947_v12  ;;  %5966 = vmatpush3.msra.mxu0 %v2968_v39  ;;  %v6227_v34 = vpack.c.bf16 %v3267_v33, %v3266_v32  ;;  %v6231_v38 = vpack.c.bf16 %v3359_v36, %v3358_v35  ;;  %v3361_v12 = vld [vmem:[%s7516_s14 + $0x18] sm:$0xff] }
0x163d   :  { %v6235_v39 = vpack.c.bf16 %v3361_v12, %v3360_v37  ;;  %v5523_v12 = vld [vmem:[%s7509_s7 + $0x20] sm:$0xff] }
0x163e   :  { %v2953_v41 = vmul.f32 1.442695, %v2951_v40  ;;  %v3362_v40 = vld [vmem:[%s7516_s14 + $0x20] sm:$0xff] }
0x163f   :  { %v2434_v42 = vpop.permute.xlu1 %2433 }
0x1640   :  { %6407 = vpow2.f32 %v2953_v41  ;;  %2439 = vst.msk [vmem:[#allocation2] sm:$0xff] %vm846_vm4, %v2434_v42  ;;  %v3363_v41 = vld [vmem:[%s7516_s14 + $0x28] sm:$0xff] }
0x1641   :  { %v6239_v42 = vpack.c.bf16 %v3363_v41, %v3362_v40  ;;  %v5525_v41 = vld [vmem:[%s7509_s7 + $0x30] sm:$0xff] }
0x1643   :  { %v2436_v31 = vpop.permute.xlu1 %2435 }
0x1644   :  { %2440 = vst.msk [vmem:[#allocation2 + $0x8] sm:$0xff] %vm846_vm4, %v2436_v31  ;;  %v3364_v31 = vld [vmem:[%s7516_s14 + $0x30] sm:$0xff] }
0x1646   :  { %v6406_v44 = vpop.eup %6405 }
0x1647   :  { %v2780_v43 = vpop.permute.xlu1 %2779  ;;  %v2960_v45 = vsel %vm170_vm2, %v6406_v44, 0.0 }
0x1648   :  { %2784 = vst.msk [vmem:[#allocation2 + $0x8] sm:$0xff] %vm1191_vm5, %v2780_v43  ;;  %2961 = vadd.xlane.f32.xlu0 %v2960_v45  ;;  %v3366_v45 = vld [vmem:[%s7516_s14 + $0x40] sm:$0xff] }
0x164a   :  { %v6408_v46 = vpop.eup %6407 }
0x164b   :  { %v2957_v47 = vsel %vm170_vm2, %v6408_v46, 0.0 }
0x164c   :  { %2958 = vadd.xlane.f32.xlu0 %v2957_v47 }
0x1662   :  { %3043 = vrot.lane.b32.xlu0 %v6864_v30, %s7576_s28  ;;  %v1677_v30 = vld [vmem:[%s7510_s8] sm:$0xff] }
0x1663   :  { %v6215_v59 = vpack.c.bf16 %v1678_v58, %v1677_v30 }
0x1665   :  { %6216 = vmatprep.subr.bf16.mxu0 %v6215_v59 }
0x1666   :  { %2777 = vrot.lane.b32.xlu0 %v2695_v23, %s7578_s30 }
0x16d5   :  { %v2962_v48 = vpop.xlane.xlu0 %2961 }
0x16d6   :  { %6409 = vrcp.f32 %v2962_v48  ;;  %v3368_v48 = vld [vmem:[%s7516_s14 + $0x50] sm:$0xff] }
0x16d9   :  { %v2959_v49 = vpop.xlane.xlu0 %2958 }
0x16da   :  { %6411 = vrcp.f32 %v2959_v49  ;;  %v3369_v49 = vld [vmem:[%s7516_s14 + $0x58] sm:$0xff] }
0x16dd   :  { %v3044_v50 = vpop.permute.xlu0 %3043 }
0x16de   :  { %5971 = vmatpush3.msra.mxu1 %v3044_v50  ;;  %v6251_v50 = vpack.c.bf16 %v3369_v49, %v3368_v48 }
0x16df   :  { %6224 = vmatprep.subr.bf16.mxu1 %v6223_v29 }
0x16e0   :  { %v6410_v51 = vpop.eup %6409 }
0x16e1   :  { %v2966_v52 = vmul.f32 %v6410_v51, %v6406_v44  ;;  %v2778_v53 = vpop.permute.xlu0 %2777  ;;  %v3365_v44 = vld [vmem:[%s7516_s14 + $0x38] sm:$0xff]  ;;  %v3370_v51 = vld [vmem:[%s7516_s14 + $0x60] sm:$0xff] }
0x16e2   :  { %2783 = vst.msk [vmem:[#allocation2] sm:$0xff] %vm1191_vm5, %v2778_v53  ;;  %v6243_v43 = vpack.c.bf16 %v3365_v44, %v3364_v31 }
0x16e3   :  { %5973 = vmatmul.mubr.msk.f32.vlgmr.msra.gmra.mrb[38].mxu1 %vm170_vm2, %v2966_v52  ;;  %v3371_v52 = vld [vmem:[%s7516_s14 + $0x68] sm:$0xff] }
0x16e4   :  { %v6412_v55 = vpop.eup %6411  ;;  %6226 = vmatpush3.bf16.msra.mxu1 %v6223_v29  ;;  %v6255_v53 = vpack.c.bf16 %v3371_v52, %v3370_v51 }
0x16e5   :  { %v2965_v57 = vmul.f32 %v6412_v55, %v6408_v46  ;;  %6228 = vmatprep.subr.bf16.mxu1 %v6227_v34  ;;  %v3367_v46 = vld [vmem:[%s7516_s14 + $0x48] sm:$0xff] }
0x16e6   :  { %v6247_v47 = vpack.c.bf16 %v3367_v46, %v3366_v45 }
0x16e7   :  { %5968 = vmatmul.mubr.msk.f32.vlgmr.msra.gmra.mrb[28].mxu0 %vm170_vm2, %v2965_v57 }
0x16e8   :  { %6218 = vmatpush3.bf16.msra.mxu0 %v6215_v59  ;;  %6230 = vmatpush3.bf16.msra.mxu1 %v6227_v34 }
0x16e9   :  { %6220 = vmatprep.subr.bf16.mxu0 %v6219_v62 }
0x16ec   :  { %6222 = vmatpush3.bf16.msra.mxu0 %v6219_v62  ;;  %v5513_v62 = vld [vmem:[%s7512_s10] ss:$0 sm:$0xff] }
0x16ed   :  { %6232 = vmatprep.subr.bf16.mxu0 %v6231_v38 }
0x17b6   :  { %v3115_v63 = vpop.f32.mrb[38].mxu1 }
0x17b7   :  { %3123 = vrot.lane.b32.xlu1 %v3115_v63, %s7579_s3  ;;  %v5974_v0 = vpop.f32.mrb[39].mxu1 }
0x17b8   :  { %v5514_v0 = vld [vmem:[%s7513_s11] ss:$0 sm:$0xff] }
0x17ba   :  { %v3039_v1 = vpop.f32.mrb[28].mxu0 }
0x17bb   :  { %3121 = vrot.lane.b32.xlu0 %v3039_v1, %s7579_s3  ;;  %v5969_v2 = vpop.f32.mrb[29].mxu0 }
0x1829   :  { %v3124_v3 = vpop.permute.xlu1 %3123 }
0x182a   :  { %3128 = vst.msk [vmem:[#allocation2 + $0x8] sm:$0xff] %vm1536_vm6, %v3124_v3 }
0x182d   :  { %v3122_v4 = vpop.permute.xlu0 %3121 }
0x182e   :  { %3127 = vst.msk [vmem:[#allocation2] sm:$0xff] %vm1536_vm6, %v3122_v4 }
0x1831   :  { %v3130_v6 = vld [vmem:[#allocation2 + $0x8] sm:$0xff] }
0x1835   :  { %v3129_v5 = vld [vmem:[#allocation2] sm:$0xff] }
0x1836   :  { %5983 = vmatprep.mubr.msk.f32.mxu0 %vm85_vm0, %v3129_v5 }
0x1837   :  { %5984 = vmatmul.mubr.msk.f32.vlgmr.msra.gmra.mrb[30].mxu0 %vm85_vm0, %v3130_v6 }
0x1838   :  { %6234 = vmatpush3.bf16.msra.mxu0 %v6231_v38 }
0x1839   :  { %6236 = vmatprep.subr.bf16.mxu0 %v6235_v39 }
0x183c   :  { %6238 = vmatpush3.bf16.msra.mxu0 %v6235_v39  ;;  %v5524_v39 = vld [vmem:[%s7509_s7 + $0x28] sm:$0xff] }
0x183d   :  { %6240 = vmatprep.subr.bf16.mxu0 %v6239_v42  ;;  %v6263_v40 = vpack.c.bf16 %v5524_v39, %v5523_v12 }
0x183f   :  { %6264 = vmatprep.subr.bf16.mxu1 %v6263_v40 }
0x1840   :  { %6242 = vmatpush3.bf16.msra.mxu0 %v6239_v42  ;;  %v5526_v42 = vld [vmem:[%s7509_s7 + $0x38] sm:$0xff] }
0x1841   :  { %6244 = vmatprep.subr.bf16.mxu0 %v6243_v43  ;;  %v6267_v31 = vpack.c.bf16 %v5526_v42, %v5525_v41 }
0x1844   :  { %6246 = vmatpush3.bf16.msra.mxu0 %v6243_v43 }
0x1845   :  { %6248 = vmatprep.subr.bf16.mxu0 %v6247_v47 }
0x1848   :  { %6250 = vmatpush3.bf16.msra.mxu0 %v6247_v47 }
0x1849   :  { %6252 = vmatprep.subr.bf16.mxu0 %v6251_v50 }
0x184c   :  { %6254 = vmatpush3.bf16.msra.mxu0 %v6251_v50  ;;  %v5521_v50 = vld [vmem:[%s7507_s5 + $0x1] ss:$0 sm:$0xff]  ;;  %s7580_s5 = smov 96  }
0x184d   :  { %6256 = vmatprep.subr.bf16.mxu0 %v6255_v53 }
0x1850   :  { %6258 = vmatpush3.bf16.msra.mxu0 %v6255_v53 }
0x190a   :  { %v5985_v8 = vpop.f32.mrb[30].mxu0 }
0x190b   :  { %v3215_v9 = vadd.f32 %v5985_v8, %v5510_v7  ;;  %v3209_v10 = vpop.f32.mrb[31].mxu0  ;;  %v3373_v8 = vld [vmem:[%s7516_s14 + $0x78] sm:$0xff] }
0x190c   :  { %v3210_v14 = vadd.f32 %v5510_v7, %v3209_v10  ;;  %v3372_v7 = vld [vmem:[%s7516_s14 + $0x70] sm:$0xff]  ;;  %v5515_v10 = vld [vmem:[%s7515_s13] ss:$0 sm:$0xff] }
0x190d   :  { %v7050_v15 = vadd.f32 %v3215_v9, %v6829_v54  ;;  %v6259_v9 = vpack.c.bf16 %v3373_v8, %v3372_v7 }
0x190e   :  { %v7053_v16 = vadd.f32 %v3210_v14, %v6831_v56 }
0x190f   :  { %v3225_v17 = vsel %vm85_vm0, %v7050_v15, 0.0  ;;  %6260 = vmatprep.subr.bf16.mxu0 %v6259_v9 }
0x1910   :  { %3226 = vadd.xlane.f32.xlu1 %v3225_v17  ;;  %v3222_v18 = vsel %vm85_vm0, %v7053_v16, 0.0  ;;  %6262 = vmatpush3.bf16.msra.mxu0 %v6259_v9 }
0x1911   :  { %3223 = vadd.xlane.f32.xlu0 %v3222_v18  ;;  %6073 = vmatprep.subr.mxu0 %v6485_v11 }
0x199d   :  { %v3227_v19 = vpop.xlane.xlu1 %3226 }
0x199e   :  { %v3229_v21 = vmul.f32 0.03125, %v3227_v19  ;;  %v3224_v22 = vpop.xlane.xlu0 %3223 }
0x199f   :  { %v3228_v23 = vmul.f32 0.03125, %v3224_v22 }
0x19a0   :  { %v7060_v24 = vsub.f32 %v7050_v15, %v3229_v21 }
0x19a1   :  { %v3230_v54 = vsub.f32 %v7053_v16, %v3228_v23  ;;  %v5518_v23 = vld [vmem:[%s7517_s15] ss:$0 sm:$0xff] }
0x19a2   :  { %v3233_v25 = vmul.f32 %v7060_v24, %v7060_v24 }
0x19a3   :  { %v3232_v13 = vmul.f32 %v3230_v54, %v3230_v54 }
0x19a4   :  { %v3237_v26 = vsel %vm85_vm0, %v3233_v25, 0.0 }
0x19a5   :  { %v3234_v56 = vsel %vm85_vm0, %v3232_v13, 0.0 }
0x19a6   :  { %3235 = vadd.xlane.f32.xlu0 %v3234_v56 }
0x19aa   :  { %3238 = vadd.xlane.f32.xlu0 %v3237_v26 }
0x1a33   :  { %v3236_v55 = vpop.xlane.xlu0 %3235 }
0x1a34   :  { %v3240_v57 = vmul.f32 0.03125, %v3236_v55  ;;  %v5522_v55 = vld [vmem:[%s7508_s6 + $0x1] ss:$0 sm:$0xff]  ;;  %s7581_s6 = smov 64  }
0x1a36   :  { %v3242_v30 = vadd.f32 1e-05, %v3240_v57 }
0x1a37   :  { %v3239_v58 = vpop.xlane.xlu0 %3238 }
0x1a38   :  { %6413 = vrsqrt.f32 %v3242_v30  ;;  %v3241_v59 = vmul.f32 0.03125, %v3239_v58 }
0x1a3a   :  { %v3243_v60 = vadd.f32 1e-05, %v3241_v59 }
0x1a3c   :  { %6415 = vrsqrt.f32 %v3243_v60 }
0x1a42   :  { %v6414_v61 = vpop.eup %6413 }
0x1a43   :  { %v3246_v63 = vmul.f32 %v6414_v61, %v3230_v54 }
0x1a45   :  { %v3254_v1 = vmul.f32 %v5513_v62, %v3246_v63 }
0x1a46   :  { %v6416_v2 = vpop.eup %6415 }
0x1a47   :  { %v3247_v3 = vmul.f32 %v6416_v2, %v7060_v24  ;;  %v3262_v4 = vadd.f32 %v5514_v0, %v3254_v1 }
0x1a49   :  { %v3255_v5 = vmul.f32 %v5513_v62, %v3247_v3  ;;  %5994 = vmatprep.mubr.msk.f32.mxu1 %vm85_vm0, %v3262_v4 }
0x1a4b   :  { %v3263_v6 = vadd.f32 %v5514_v0, %v3255_v5 }
0x1a4d   :  { %5995 = vmatmul.mubr.msk.f32.vlgmr.msra.gmra.mrb[40].mxu1 %vm85_vm0, %v3263_v6 }
0x1a4e   :  { %6266 = vmatpush3.bf16.msra.mxu1 %v6263_v40 }
0x1a4f   :  { %6268 = vmatprep.subr.bf16.mxu1 %v6267_v31 }
0x1a52   :  { %6270 = vmatpush3.bf16.msra.mxu1 %v6267_v31 }
0x1a53   :  { %6043 = vmatprep.subr.mxu1 %v6485_v11 }
0x1b20   :  { %v5996_v14 = vpop.f32.mrb[40].mxu1 }
0x1b21   :  { %v3353_v17 = vadd.f32 %v5996_v14, %v5515_v10  ;;  %v3347_v18 = vpop.f32.mrb[41].mxu1 }
0x1b22   :  { %v3348_v19 = vadd.f32 %v5515_v10, %v3347_v18 }
0x1b23   :  { %v3357_v22 = vmax.f32 %v3353_v17, 0.0 }
0x1b24   :  { %v3356_v21 = vmax.f32 %v3348_v19, 0.0 }
0x1b26   :  { %6029 = vmatprep.mubr.f32.mxu0 %v3356_v21 }
0x1b27   :  { %6030 = vmatmul.mubr.f32.vlgmr.msra.gmra.mrb[32].mxu0 %v3357_v22 }
0x1b28   :  { %6075 = vmatprep.mubr.msk.f32.mxu0 %vm6486_vm1, %v6485_v11 }
0x1bfa   :  { %v6031_v24 = vpop.f32.mrb[32].mxu0 }
0x1bfb   :  { %v3453_v54 = vadd.f32 %v6031_v24, %v5518_v23  ;;  %v3447_v13 = vpop.f32.mrb[33].mxu0 }
0x1bfc   :  { %v3448_v56 = vadd.f32 %v5518_v23, %v3447_v13 }
0x1bfd   :  { %v7146_v25 = vadd.f32 %v3453_v54, %v7050_v15 }
0x1bfe   :  { %v7149_v26 = vadd.f32 %v3448_v56, %v7053_v16 }
0x1bff   :  { %v3465_v27 = vsel %vm85_vm0, %v7146_v25, 0.0 }
0x1c00   :  { %3466 = vadd.xlane.f32.xlu0 %v3465_v27  ;;  %v3462_v28 = vsel %vm85_vm0, %v7149_v26, 0.0 }
0x1c01   :  { %3463 = vadd.xlane.f32.xlu1 %v3462_v28 }
0x1c8d   :  { %v3467_v29 = vpop.xlane.xlu0 %3466 }
0x1c8e   :  { %v3469_v32 = vmul.f32 0.03125, %v3467_v29  ;;  %v3464_v33 = vpop.xlane.xlu1 %3463 }
0x1c8f   :  { %v3468_v34 = vmul.f32 0.03125, %v3464_v33 }
0x1c90   :  { %v3471_v35 = vsub.f32 %v7146_v25, %v3469_v32 }
0x1c91   :  { %v3470_v15 = vsub.f32 %v7149_v26, %v3468_v34 }
0x1c92   :  { %v3473_v36 = vmul.f32 %v3471_v35, %v3471_v35 }
0x1c93   :  { %v3472_v37 = vmul.f32 %v3470_v15, %v3470_v15 }
0x1c94   :  { %v3477_v16 = vsel %vm85_vm0, %v3473_v36, 0.0 }
0x1c95   :  { %3478 = vadd.xlane.f32.xlu0 %v3477_v16  ;;  %v3474_v38 = vsel %vm85_vm0, %v3472_v37, 0.0 }
0x1c96   :  { %3475 = vadd.xlane.f32.xlu1 %v3474_v38 }
0x1d22   :  { %v3479_v44 = vpop.xlane.xlu0 %3478 }
0x1d23   :  { %v3481_v43 = vmul.f32 0.03125, %v3479_v44  ;;  %v3476_v45 = vpop.xlane.xlu1 %3475 }
0x1d24   :  { %v3480_v46 = vmul.f32 0.03125, %v3476_v45 }
0x1d25   :  { %v3483_v47 = vadd.f32 1e-05, %v3481_v43 }
0x1d26   :  { %v3482_v48 = vadd.f32 1e-05, %v3480_v46 }
0x1d27   :  { %6417 = vrsqrt.f32 %v3483_v47 }
0x1d28   :  { %6419 = vrsqrt.f32 %v3482_v48 }
0x1d31   :  { %v6418_v49 = vpop.eup %6417 }
0x1d32   :  { %v6420_v51 = vpop.eup %6419  ;;  %v3487_v52 = vmul.f32 %v6418_v49, %v3471_v35 }
0x1d33   :  { %v3486_v53 = vmul.f32 %v6420_v51, %v3470_v15 }
0x1d34   :  { %v3495_v57 = vmul.f32 %v5521_v50, %v3487_v52 }
0x1d35   :  { %v3494_v30 = vmul.f32 %v5521_v50, %v3486_v53 }
0x1d36   :  { %v3503_v59 = vadd.f32 %v5522_v55, %v3495_v57 }
0x1d37   :  { %v3502_v58 = vadd.f32 %v5522_v55, %v3494_v30 }
0x1d39   :  { %6040 = vmatprep.mubr.msk.f32.mxu1 %vm85_vm0, %v3502_v58 }
0x1d3a   :  { %6041 = vmatmul.mubr.msk.f32.vlgmr.msra.gmra.mrb[42].mxu1 %vm85_vm0, %v3503_v59 }
0x1d3b   :  { %6045 = vmatprep.mubr.msk.f32.mxu1 %vm6486_vm1, %v6485_v11 }
0x1e0d   :  { %v7182_v60 = vpop.f32.mrb[42].mxu1 }
0x1e0e   :  { %3675 = vrot.lane.b32.xlu0 %v7182_v60, %s7580_s5  ;;  %v7186_v61 = vpop.f32.mrb[43].mxu1 }
0x1e0f   :  { %3598 = vrot.lane.b32.xlu1 %v7186_v61, %s7580_s5 }
0x1e80   :  { %v3676_v63 = vpop.permute.xlu0 %3675 }
0x1e81   :  { %v3599_v62 = vpop.permute.xlu1 %3598 }
0x1e82   :  { %6044 = vmatpush3.xpose.msk.msra.mxu1 %vm170_vm2, %v3599_v62 }
0x1e83   :  { %6048 = vmatprep.subr.mxu1 %v6485_v11 }
0x1e85   :  { %6046 = vmatmul.mubr.msk.f32.vlgmr.msra.gmra.mrb[44].mxu1 %vm170_vm2, %v7186_v61 }
0x1e86   :  { %6049 = vmatpush3.xpose.msk.msra.mxu1 %vm170_vm2, %v3676_v63  ;;  %6050 = vmatprep.mubr.msk.f32.mxu1 %vm6486_vm1, %v6485_v11 }
0x1e87   :  { %6053 = vmatprep.subr.mxu1 %v6485_v11 }
0x1e89   :  { %6051 = vmatmul.mubr.msk.f32.vlgmr.msra.gmra.mrb[46].mxu1 %vm170_vm2, %v7182_v60 }
0x1e8a   :  { %6055 = vmatprep.mubr.msk.f32.mxu1 %vm6486_vm1, %v6485_v11 }
0x1f58   :  { %v3670_v0 = vpop.f32.mrb[44].mxu1 }
0x1f59   :  { %v3751_v1 = vmul.f32 0.17677669, %v3670_v0  ;;  %v6047_v2 = vpop.f32.mrb[45].mxu1 }
0x1f5b   :  { %v3753_v3 = vsel %vm6657_vm3, %v3751_v1, -1e+30 }
0x1f5c   :  { %v3747_v4 = vpop.f32.mrb[46].mxu1  ;;  %v3755_v5 = vsel %vm170_vm2, %v3753_v3, -inf }
0x1f5d   :  { %v3752_v6 = vmul.f32 0.17677669, %v3747_v4  ;;  %3756 = vmax.xlane.f32.xlu1 %v3755_v5  ;;  %v6052_v7 = vpop.f32.mrb[47].mxu1 }
0x1f5f   :  { %v3754_v8 = vsel %vm6657_vm3, %v3752_v6, -1e+30 }
0x1f60   :  { %v3758_v9 = vsel %vm170_vm2, %v3754_v8, -inf }
0x1f61   :  { %3759 = vmax.xlane.f32.xlu0 %v3758_v9 }
0x1f6e   :  { %3777 = vrot.lane.b32.xlu1 %v7186_v61, %s7581_s6 }
0x1fea   :  { %v3757_v10 = vpop.xlane.xlu1 %3756 }
0x1feb   :  { %v3761_v14 = vsub.f32 %v3753_v3, %v3757_v10 }
0x1fed   :  { %v3763_v17 = vmul.f32 1.442695, %v3761_v14 }
0x1fee   :  { %v3778_v18 = vpop.permute.xlu1 %3777  ;;  %v3760_v19 = vpop.xlane.xlu0 %3759 }
0x1fef   :  { %6421 = vpow2.f32 %v3763_v17  ;;  %v3762_v21 = vsub.f32 %v3754_v8, %v3760_v19  ;;  %6054 = vmatpush3.msra.mxu1 %v3778_v18 }
0x1ff0   :  { %6058 = vmatprep.subr.mxu1 %v6485_v11 }
0x1ff1   :  { %v3765_v22 = vmul.f32 1.442695, %v3762_v21 }
0x1ff3   :  { %6423 = vpow2.f32 %v3765_v22 }
0x1ff9   :  { %v6422_v23 = vpop.eup %6421 }
0x1ffa   :  { %v3767_v24 = vsel %vm170_vm2, %v6422_v23, 0.0 }
0x1ffb   :  { %3768 = vadd.xlane.f32.xlu1 %v3767_v24 }
0x1ffd   :  { %v6424_v54 = vpop.eup %6423 }
0x1ffe   :  { %v3770_v13 = vsel %vm170_vm2, %v6424_v54, 0.0 }
0x1fff   :  { %3771 = vadd.xlane.f32.xlu0 %v3770_v13 }
0x200c   :  { %3933 = vrot.lane.b32.xlu1 %v7186_v61, %s7582_s2 }
0x2010   :  { %3931 = vrot.lane.b32.xlu1 %v7186_v61, %s7583_s16 }
0x2014   :  { %4009 = vrot.lane.b32.xlu1 %v7182_v60, %s7583_s16  ;;  %s6501_s16 = smov [#allocation3]  }
0x2015   :  { %3853 = vrot.lane.b32.xlu0 %v7182_v60, %s7581_s6 }
0x2019   :  { %4011 = vrot.lane.b32.xlu0 %v7182_v60, %s7582_s2  ;;  %s7587_s2 = sld [smem:[#allocation13_spill]] }
0x2088   :  { %v3769_v56 = vpop.xlane.xlu1 %3768 }
0x2089   :  { %6425 = vrcp.f32 %v3769_v56 }
0x208c   :  { %v3772_v27 = vpop.xlane.xlu0 %3771  ;;  %v3934_v34 = vpop.permute.xlu1 %3933 }
0x208d   :  { %6427 = vrcp.f32 %v3772_v27 }
0x2090   :  { %v3854_v32 = vpop.permute.xlu0 %3853  ;;  %v3932_v15 = vpop.permute.xlu1 %3931 }
0x2093   :  { %v6426_v28 = vpop.eup %6425 }
0x2094   :  { %v3775_v29 = vmul.f32 %v6426_v28, %v6422_v23  ;;  %v4012_v36 = vpop.permute.xlu0 %4011  ;;  %v4010_v37 = vpop.permute.xlu1 %4009 }
0x2096   :  { %6056 = vmatmul.mubr.msk.f32.vlgmr.msra.gmra.mrb[48].mxu1 %vm170_vm2, %v3775_v29 }
0x2097   :  { %v6428_v33 = vpop.eup %6427  ;;  %6059 = vmatpush3.msra.mxu1 %v3854_v32  ;;  %6060 = vmatprep.mubr.msk.f32.mxu1 %vm6486_vm1, %v6485_v11 }
0x2098   :  { %v3776_v35 = vmul.f32 %v6428_v33, %v6424_v54  ;;  %6063 = vmatprep.subr.mxu1 %v6485_v11 }
0x209a   :  { %6061 = vmatmul.mubr.msk.f32.vlgmr.msra.gmra.mrb[50].mxu1 %vm170_vm2, %v3776_v35 }
0x209b   :  { %6065 = vmatprep.mubr.msk.f32.mxu1 %vm6486_vm1, %v6485_v11 }
0x209e   :  { %6064 = vmatpush3.xpose.msk.msra.mxu1 %vm170_vm2, %v3934_v34 }
0x209f   :  { %6068 = vmatprep.subr.mxu1 %v6485_v11 }
0x20a1   :  { %6066 = vmatmul.mubr.msk.f32.vlgmr.msra.gmra.mrb[52].mxu1 %vm170_vm2, %v3932_v15 }
0x20a2   :  { %6069 = vmatpush3.xpose.msk.msra.mxu1 %vm170_vm2, %v4012_v36  ;;  %6070 = vmatprep.mubr.msk.f32.mxu1 %vm6486_vm1, %v6485_v11 }
0x20a3   :  { %6078 = vmatprep.subr.mxu1 %v6485_v11 }
0x20a5   :  { %6071 = vmatmul.mubr.msk.f32.vlgmr.msra.gmra.mrb[54].mxu1 %vm170_vm2, %v4010_v37 }
0x20a6   :  { %6080 = vmatprep.mubr.msk.f32.mxu1 %vm6486_vm1, %v6485_v11 }
0x2169   :  { %v3849_v16 = vpop.f32.mrb[48].mxu1 }
0x216a   :  { %3929 = vst.msk [vmem:[#allocation2] sm:$0xff] %vm170_vm2, %v3849_v16  ;;  %v6057_v38 = vpop.f32.mrb[49].mxu1 }
0x216d   :  { %v3925_v12 = vpop.f32.mrb[50].mxu1 }
0x216e   :  { %3930 = vst.msk [vmem:[#allocation2 + $0x8] sm:$0xff] %vm170_vm2, %v3925_v12  ;;  %v6062_v39 = vpop.f32.mrb[51].mxu1 }
0x2174   :  { %v4005_v40 = vpop.f32.mrb[52].mxu1 }
0x2175   :  { %v4087_v41 = vmul.f32 0.17677669, %v4005_v40  ;;  %v6067_v42 = vpop.f32.mrb[53].mxu1 }
0x2177   :  { %v4089_v31 = vsel %vm6657_vm3, %v4087_v41, -1e+30 }
0x2178   :  { %v4083_v44 = vpop.f32.mrb[54].mxu1  ;;  %v4091_v43 = vsel %vm170_vm2, %v4089_v31, -inf }
0x2179   :  { %v4088_v45 = vmul.f32 0.17677669, %v4083_v44  ;;  %4092 = vmax.xlane.f32.xlu0 %v4091_v43  ;;  %v6072_v46 = vpop.f32.mrb[55].mxu1 }
0x217b   :  { %v4090_v47 = vsel %vm6657_vm3, %v4088_v45, -1e+30 }
0x217c   :  { %v4094_v48 = vsel %vm170_vm2, %v4090_v47, -inf }
0x217d   :  { %4095 = vmax.xlane.f32.xlu1 %v4094_v48 }
0x218e   :  { %4113 = vrot.lane.b32.xlu1 %v7186_v61, %s7584_s17 }
0x218f   :  { %4189 = vrot.lane.b32.xlu0 %v7182_v60, %s7584_s17  ;;  %s5442_s17 = sshll.u32 %s6501_s16, 4  ;;  %s5443_s17 = int_to_ptr.vmem [resolvable:$true] %s5442_s17 }
0x2190   :  { %p6466_p1 = scmp.lt.s32.totalorder %s5443_s17, %s5443_s17 }
0x2192   :  { %4277 = vrot.lane.b32.xlu1 %v7186_v61, %s7571_s21 }
0x2196   :  { %4355 = vrot.lane.b32.xlu1 %v7182_v60, %s7571_s21  ;;  %s6461_s21 = scalar_lea.vmem %s5443_s17, 256 }
0x2197   :  { %p6462_p0 = scmp.ne.s32.totalorder %s5443_s17, %s6461_s21  ;;  %p6467_p2 = scmp.lt.s32.totalorder %s6461_s21, %s6461_s21 }
0x2199   :  { %p6468_p3 = por %p6467_p2, %p6466_p1 }
0x219a   :  { %4353 = vrot.lane.b32.xlu1 %v7182_v60, %s7572_s1 }
0x219b   :  { %p6469_p4 = pnand %p6468_p3, %p6462_p0 }
0x2206   :  { %v4093_v49 = vpop.xlane.xlu0 %4092 }
0x2207   :  { %v4097_v50 = vsub.f32 %v4089_v31, %v4093_v49 }
0x2209   :  { %v4099_v51 = vmul.f32 1.442695, %v4097_v50 }
0x220a   :  { %v4190_v52 = vpop.permute.xlu0 %4189  ;;  %v4096_v53 = vpop.xlane.xlu1 %4095 }
0x220b   :  { %6429 = vpow2.f32 %v4099_v51  ;;  %v4098_v55 = vsub.f32 %v4090_v47, %v4096_v53  ;;  %6079 = vmatpush3.msra.mxu1 %v4190_v52 }
0x220c   :  { %6088 = vmatprep.subr.mxu1 %v6485_v11 }
0x220d   :  { %v4101_v57 = vmul.f32 1.442695, %v4098_v55 }
0x220e   :  { %v4114_v30 = vpop.permute.xlu1 %4113 }
0x220f   :  { %6431 = vpow2.f32 %v4101_v57  ;;  %6074 = vmatpush3.msra.mxu0 %v4114_v30 }
0x2210   :  { %6083 = vmatprep.subr.mxu0 %v6485_v11 }
0x2212   :  { %v4278_v2 = vpop.permute.xlu1 %4277 }
0x2215   :  { %v6430_v58 = vpop.eup %6429 }
0x2216   :  { %v4103_v59 = vsel %vm170_vm2, %v6430_v58, 0.0  ;;  %v4356_v6 = vpop.permute.xlu1 %4355 }
0x2217   :  { %4104 = vadd.xlane.f32.xlu0 %v4103_v59 }
0x2219   :  { %v6432_v62 = vpop.eup %6431 }
0x221a   :  { %v4106_v63 = vsel %vm170_vm2, %v6432_v62, 0.0  ;;  %v4354_v9 = vpop.permute.xlu1 %4353 }
0x221b   :  { %4107 = vadd.xlane.f32.xlu0 %v4106_v63 }
0x2231   :  { %4275 = vrot.lane.b32.xlu0 %v7186_v61, %s7572_s1 }
0x22a4   :  { %v4105_v0 = vpop.xlane.xlu0 %4104 }
0x22a5   :  { %6433 = vrcp.f32 %v4105_v0 }
0x22a8   :  { %v4108_v1 = vpop.xlane.xlu0 %4107 }
0x22a9   :  { %6435 = vrcp.f32 %v4108_v1 }
0x22ac   :  { %v4276_v8 = vpop.permute.xlu0 %4275 }
0x22af   :  { %v6434_v3 = vpop.eup %6433 }
0x22b0   :  { %v4111_v4 = vmul.f32 %v6434_v3, %v6430_v58 }
0x22b2   :  { %6076 = vmatmul.mubr.msk.f32.vlgmr.msra.gmra.mrb[34].mxu0 %vm170_vm2, %v4111_v4 }
0x22b3   :  { %v6436_v5 = vpop.eup %6435  ;;  %6084 = vmatpush3.xpose.msk.msra.mxu0 %vm170_vm2, %v4278_v2  ;;  %6085 = vmatprep.mubr.msk.f32.mxu0 %vm6486_vm1, %v6485_v11 }
0x22b4   :  { %v4112_v7 = vmul.f32 %v6436_v5, %v6432_v62  ;;  %6093 = vmatprep.subr.mxu0 %v6485_v11 }
0x22b6   :  { %6081 = vmatmul.mubr.msk.f32.vlgmr.msra.gmra.mrb[56].mxu1 %vm170_vm2, %v4112_v7  ;;  %6086 = vmatmul.mubr.msk.f32.vlgmr.msra.gmra.mrb[36].mxu0 %vm170_vm2, %v4276_v8 }
0x22b7   :  { %6089 = vmatpush3.xpose.msk.msra.mxu1 %vm170_vm2, %v4356_v6  ;;  %6090 = vmatprep.mubr.msk.f32.mxu1 %vm6486_vm1, %v6485_v11 }
0x22b8   :  { %6098 = vmatprep.subr.mxu1 %v6485_v11  ;;  %6095 = vmatprep.mubr.msk.f32.mxu0 %vm6486_vm1, %v6485_v11 }
0x22ba   :  { %6091 = vmatmul.mubr.msk.f32.vlgmr.msra.gmra.mrb[58].mxu1 %vm170_vm2, %v4354_v9 }
0x22bb   :  { %6100 = vmatprep.mubr.msk.f32.mxu1 %vm6486_vm1, %v6485_v11 }
0x2385   :  { %v7280_v10 = vpop.f32.mrb[34].mxu0 }
0x2386   :  { %v6077_v14 = vpop.f32.mrb[35].mxu0 }
0x2389   :  { %v7282_v17 = vpop.f32.mrb[56].mxu1  ;;  %v4349_v18 = vpop.f32.mrb[36].mxu0 }
0x238a   :  { %v4431_v19 = vmul.f32 0.17677669, %v4349_v18  ;;  %v6082_v21 = vpop.f32.mrb[57].mxu1  ;;  %v6087_v22 = vpop.f32.mrb[37].mxu0 }
0x238c   :  { %v4433_v23 = vsel %vm6657_vm3, %v4431_v19, -1e+30 }
0x238d   :  { %v4427_v24 = vpop.f32.mrb[58].mxu1  ;;  %v4435_v54 = vsel %vm170_vm2, %v4433_v23, -inf }
0x238e   :  { %v4432_v13 = vmul.f32 0.17677669, %v4427_v24  ;;  %4436 = vmax.xlane.f32.xlu0 %v4435_v54  ;;  %v6092_v56 = vpop.f32.mrb[59].mxu1 }
0x238f   :  { %v5528_v56 = vld [vmem:[%s7510_s8 + $0x28] sm:$0xff] }
0x2390   :  { %v4434_v27 = vsel %vm6657_vm3, %v4432_v13, -1e+30 }
0x2391   :  { %v4438_v28 = vsel %vm170_vm2, %v4434_v27, -inf }
0x2392   :  { %4439 = vmax.xlane.f32.xlu1 %v4438_v28  ;;  %v5529_v28 = vld [vmem:[%s7510_s8 + $0x30] sm:$0xff] }
0x23a3   :  { %4457 = vrot.lane.b32.xlu1 %v7186_v61, %s7573_s22 }
0x23a4   :  { %4533 = vrot.lane.b32.xlu0 %v7182_v60, %s7573_s22 }
0x23a7   :  { %4621 = vrot.lane.b32.xlu1 %v7186_v61, %s7574_s26 }
0x23ab   :  { %4699 = vrot.lane.b32.xlu1 %v7182_v60, %s7574_s26 }
0x23af   :  { %4697 = vrot.lane.b32.xlu1 %v7182_v60, %s7575_s27 }
0x241b   :  { %v4437_v29 = vpop.xlane.xlu0 %4436 }
0x241c   :  { %v4441_v32 = vsub.f32 %v4433_v23, %v4437_v29  ;;  %v5530_v29 = vld [vmem:[%s7510_s8 + $0x38] sm:$0xff] }
0x241e   :  { %v4443_v33 = vmul.f32 1.442695, %v4441_v32  ;;  %v6275_v32 = vpack.c.bf16 %v5530_v29, %v5529_v28  ;;  %v5563_v28 = vld [vmem:[%s7512_s10 + $0x1] ss:$0 sm:$0xff] }
0x241f   :  { %v4534_v34 = vpop.permute.xlu0 %4533  ;;  %v4440_v35 = vpop.xlane.xlu1 %4439 }
0x2420   :  { %6437 = vpow2.f32 %v4443_v33  ;;  %v4442_v15 = vsub.f32 %v4434_v27, %v4440_v35  ;;  %6099 = vmatpush3.msra.mxu1 %v4534_v34 }
0x2421   :  { %6108 = vmatprep.subr.mxu1 %v6485_v11 }
0x2422   :  { %v4445_v36 = vmul.f32 1.442695, %v4442_v15 }
0x2423   :  { %v4458_v37 = vpop.permute.xlu1 %4457 }
0x2424   :  { %6439 = vpow2.f32 %v4445_v36  ;;  %6094 = vmatpush3.msra.mxu0 %v4458_v37 }
0x2425   :  { %6103 = vmatprep.subr.mxu0 %v6485_v11 }
0x2427   :  { %v4622_v42 = vpop.permute.xlu1 %4621 }
0x242a   :  { %v6438_v16 = vpop.eup %6437 }
0x242b   :  { %v4447_v38 = vsel %vm170_vm2, %v6438_v16, 0.0  ;;  %v4700_v45 = vpop.permute.xlu1 %4699 }
0x242c   :  { %4448 = vadd.xlane.f32.xlu0 %v4447_v38 }
0x242e   :  { %v6440_v12 = vpop.eup %6439 }
0x242f   :  { %v4450_v39 = vsel %vm170_vm2, %v6440_v12, 0.0  ;;  %v4698_v48 = vpop.permute.xlu1 %4697 }
0x2430   :  { %4451 = vadd.xlane.f32.xlu0 %v4450_v39 }
0x2446   :  { %4619 = vrot.lane.b32.xlu0 %v7186_v61, %s7575_s27 }
0x24b9   :  { %v4449_v40 = vpop.xlane.xlu0 %4448 }
0x24ba   :  { %6441 = vrcp.f32 %v4449_v40 }
0x24bd   :  { %v4452_v41 = vpop.xlane.xlu0 %4451 }
0x24be   :  { %6443 = vrcp.f32 %v4452_v41 }
0x24c1   :  { %v4620_v47 = vpop.permute.xlu0 %4619 }
0x24c4   :  { %v6442_v31 = vpop.eup %6441 }
0x24c5   :  { %v4455_v44 = vmul.f32 %v6442_v31, %v6438_v16 }
0x24c7   :  { %6096 = vmatmul.mubr.msk.f32.vlgmr.msra.gmra.mrb[38].mxu0 %vm170_vm2, %v4455_v44 }
0x24c8   :  { %v6444_v43 = vpop.eup %6443  ;;  %6104 = vmatpush3.xpose.msk.msra.mxu0 %vm170_vm2, %v4622_v42  ;;  %6105 = vmatprep.mubr.msk.f32.mxu0 %vm6486_vm1, %v6485_v11 }
0x24c9   :  { %v4456_v46 = vmul.f32 %v6444_v43, %v6440_v12  ;;  %6113 = vmatprep.subr.mxu0 %v6485_v11  ;;  %v5558_v12 = vld [vmem:[%s7511_s9 + $0x1] ss:$0 sm:$0xff] }
0x24cb   :  { %6101 = vmatmul.mubr.msk.f32.vlgmr.msra.gmra.mrb[60].mxu1 %vm170_vm2, %v4456_v46  ;;  %6106 = vmatmul.mubr.msk.f32.vlgmr.msra.gmra.mrb[40].mxu0 %vm170_vm2, %v4620_v47 }
0x24cc   :  { %6109 = vmatpush3.xpose.msk.msra.mxu1 %vm170_vm2, %v4700_v45  ;;  %6110 = vmatprep.mubr.msk.f32.mxu1 %vm6486_vm1, %v6485_v11 }
0x24cd   :  { %6118 = vmatprep.subr.mxu1 %v6485_v11  ;;  %6115 = vmatprep.mubr.msk.f32.mxu0 %vm6486_vm1, %v6485_v11 }
0x24cf   :  { %6111 = vmatmul.mubr.msk.f32.vlgmr.msra.gmra.mrb[62].mxu1 %vm170_vm2, %v4698_v48 }
0x24d0   :  { %6120 = vmatprep.mubr.msk.f32.mxu1 %vm6486_vm1, %v6485_v11 }
0x259a   :  { %v4529_v49 = vpop.f32.mrb[38].mxu0 }
0x259b   :  { %v6097_v50 = vpop.f32.mrb[39].mxu0 }
0x259e   :  { %v4605_v51 = vpop.f32.mrb[60].mxu1  ;;  %v4693_v52 = vpop.f32.mrb[40].mxu0 }
0x259f   :  { %v4775_v53 = vmul.f32 0.17677669, %v4693_v52  ;;  %v6102_v55 = vpop.f32.mrb[61].mxu1  ;;  %v6107_v57 = vpop.f32.mrb[41].mxu0 }
0x25a0   :  { %v5565_v55 = vld [vmem:[%s7514_s12 + $0x20] sm:$0xff]  ;;  %v5566_v57 = vld [vmem:[%s7514_s12 + $0x28] sm:$0xff] }
0x25a1   :  { %v4777_v30 = vsel %vm6657_vm3, %v4775_v53, -1e+30 }
0x25a2   :  { %v4771_v58 = vpop.f32.mrb[62].mxu1  ;;  %v4779_v59 = vsel %vm170_vm2, %v4777_v30, -inf }
0x25a3   :  { %v4776_v62 = vmul.f32 0.17677669, %v4771_v58  ;;  %4780 = vmax.xlane.f32.xlu0 %v4779_v59  ;;  %v6112_v63 = vpop.f32.mrb[63].mxu1  ;;  %v5567_v58 = vld [vmem:[%s7514_s12 + $0x30] sm:$0xff]  ;;  %v5568_v59 = vld [vmem:[%s7514_s12 + $0x38] sm:$0xff] }
0x25a4   :  { %v5573_v63 = vld [vmem:[%s7516_s14 + $0x80] sm:$0xff] }
0x25a5   :  { %v4778_v0 = vsel %vm6657_vm3, %v4776_v62, -1e+30  ;;  %v6283_v62 = vpack.c.bf16 %v5568_v59, %v5567_v58 }
0x25a6   :  { %v4782_v11 = vsel %vm170_vm2, %v4778_v0, -inf }
0x25a7   :  { %4783 = vmax.xlane.f32.xlu1 %v4782_v11  ;;  %v5575_v11 = vld [vmem:[%s7516_s14 + $0x90] sm:$0xff] }
0x25b8   :  { %4801 = vrot.lane.b32.xlu1 %v7186_v61, %s7576_s28 }
0x25bc   :  { %4267 = vrot.lane.b32.xlu1 %v7280_v10, %s7577_s4 }
0x25c0   :  { %4269 = vrot.lane.b32.xlu1 %v7282_v17, %s7577_s4 }
0x25c4   :  { %4613 = vrot.lane.b32.xlu1 %v4605_v51, %s7578_s30 }
0x2630   :  { %v4781_v1 = vpop.xlane.xlu0 %4780 }
0x2631   :  { %v4785_v2 = vsub.f32 %v4777_v30, %v4781_v1  ;;  %v6279_v30 = vpack.c.bf16 %v5566_v57, %v5565_v55 }
0x2633   :  { %v4787_v3 = vmul.f32 1.442695, %v4785_v2  ;;  %v5576_v2 = vld [vmem:[%s7516_s14 + $0x98] sm:$0xff] }
0x2634   :  { %v4784_v4 = vpop.xlane.xlu1 %4783 }
0x2635   :  { %6445 = vpow2.f32 %v4787_v3  ;;  %v4786_v20 = vsub.f32 %v4778_v0, %v4784_v4  ;;  %v5574_v0 = vld [vmem:[%s7516_s14 + $0x88] sm:$0xff]  ;;  %v6291_v3 = vpack.c.bf16 %v5576_v2, %v5575_v11  ;;  %v5577_v4 = vld [vmem:[%s7516_s14 + $0xa0] sm:$0xff] }
0x2636   :  { %v6287_v1 = vpack.c.bf16 %v5574_v0, %v5573_v63 }
0x2637   :  { %v4789_v5 = vmul.f32 1.442695, %v4786_v20  ;;  %v5578_v20 = vld [vmem:[%s7516_s14 + $0xa8] sm:$0xff] }
0x2638   :  { %v4802_v6 = vpop.permute.xlu1 %4801 }
0x2639   :  { %6447 = vpow2.f32 %v4789_v5  ;;  %6114 = vmatpush3.msra.mxu0 %v4802_v6  ;;  %v6295_v5 = vpack.c.bf16 %v5578_v20, %v5577_v4  ;;  %v5579_v6 = vld [vmem:[%s7516_s14 + $0xb0] sm:$0xff]  ;;  %v5345_v4 = vld [vmem:[%s7520_s18 + $0x18] sm:$0xff] }
0x263c   :  { %v4268_v7 = vpop.permute.xlu1 %4267 }
0x263d   :  { %4273 = vst.msk [vmem:[#allocation2] sm:$0xff] %vm846_vm4, %v4268_v7  ;;  %v5580_v7 = vld [vmem:[%s7516_s14 + $0xb8] sm:$0xff] }
0x263f   :  { %v6446_v61 = vpop.eup %6445 }
0x2640   :  { %v4270_v8 = vpop.permute.xlu1 %4269  ;;  %v4791_v9 = vsel %vm170_vm2, %v6446_v61, 0.0 }
0x2641   :  { %4274 = vst.msk [vmem:[#allocation2 + $0x8] sm:$0xff] %vm846_vm4, %v4270_v8  ;;  %4792 = vadd.xlane.f32.xlu0 %v4791_v9  ;;  %v5581_v8 = vld [vmem:[%s7516_s14 + $0xc0] sm:$0xff]  ;;  %v5582_v9 = vld [vmem:[%s7516_s14 + $0xc8] sm:$0xff] }
0x2643   :  { %v6448_v10 = vpop.eup %6447 }
0x2644   :  { %v4614_v14 = vpop.permute.xlu1 %4613  ;;  %v4794_v17 = vsel %vm170_vm2, %v6448_v10, 0.0 }
0x2645   :  { %4618 = vst.msk [vmem:[#allocation2 + $0x8] sm:$0xff] %vm1191_vm5, %v4614_v14  ;;  %4795 = vadd.xlane.f32.xlu0 %v4794_v17  ;;  %v5583_v14 = vld [vmem:[%s7516_s14 + $0xd0] sm:$0xff]  ;;  %v5584_v17 = vld [vmem:[%s7516_s14 + $0xd8] sm:$0xff] }
0x265b   :  { %4877 = vrot.lane.b32.xlu0 %v7182_v60, %s7576_s28  ;;  %v5527_v60 = vld [vmem:[%s7510_s8 + $0x20] sm:$0xff] }
0x265c   :  { %v6271_v27 = vpack.c.bf16 %v5528_v56, %v5527_v60 }
0x265e   :  { %6272 = vmatprep.subr.bf16.mxu0 %v6271_v27 }
0x265f   :  { %4611 = vrot.lane.b32.xlu0 %v4529_v49, %s7578_s30 }
0x26ce   :  { %v4793_v18 = vpop.xlane.xlu0 %4792 }
0x26cf   :  { %6449 = vrcp.f32 %v4793_v18  ;;  %v6307_v18 = vpack.c.bf16 %v5584_v17, %v5583_v14  ;;  %v5591_v14 = vld [vmem:[%s7585_s23] ss:$0 sm:$0xff] }
0x26d2   :  { %v4796_v19 = vpop.xlane.xlu0 %4795 }
0x26d3   :  { %6451 = vrcp.f32 %v4796_v19  ;;  %v5585_v19 = vld [vmem:[%s7516_s14 + $0xe0] sm:$0xff] }
0x26d6   :  { %v4878_v21 = vpop.permute.xlu0 %4877 }
0x26d7   :  { %6119 = vmatpush3.msra.mxu1 %v4878_v21  ;;  %v5586_v21 = vld [vmem:[%s7516_s14 + $0xe8] sm:$0xff] }
0x26d8   :  { %6280 = vmatprep.subr.bf16.mxu1 %v6279_v30 }
0x26d9   :  { %v6450_v22 = vpop.eup %6449 }
0x26da   :  { %v4799_v23 = vmul.f32 %v6450_v22, %v6446_v61  ;;  %v4612_v24 = vpop.permute.xlu0 %4611  ;;  %v6299_v61 = vpack.c.bf16 %v5580_v7, %v5579_v6  ;;  %v6311_v22 = vpack.c.bf16 %v5586_v21, %v5585_v19  ;;  %v5592_v21 = vld [vmem:[%s7586_s24] ss:$0 sm:$0xff] }
0x26db   :  { %4617 = vst.msk [vmem:[#allocation2] sm:$0xff] %vm1191_vm5, %v4612_v24 }
0x26dc   :  { %6116 = vmatmul.mubr.msk.f32.vlgmr.msra.gmra.mrb[42].mxu0 %vm170_vm2, %v4799_v23 }
0x26dd   :  { %v6452_v54 = vpop.eup %6451  ;;  %6274 = vmatpush3.bf16.msra.mxu0 %v6271_v27 }
0x26de   :  { %v4800_v13 = vmul.f32 %v6452_v54, %v6448_v10  ;;  %6276 = vmatprep.subr.bf16.mxu0 %v6275_v32  ;;  %v6303_v10 = vpack.c.bf16 %v5582_v9, %v5581_v8 }
0x26e0   :  { %6121 = vmatmul.mubr.msk.f32.vlgmr.msra.gmra.mrb[64].mxu1 %vm170_vm2, %v4800_v13 }
0x26e1   :  { %6278 = vmatpush3.bf16.msra.mxu0 %v6275_v32  ;;  %6282 = vmatpush3.bf16.msra.mxu1 %v6279_v30  ;;  %v5564_v32 = vld [vmem:[%s7513_s11 + $0x1] ss:$0 sm:$0xff] }
0x26e2   :  { %6284 = vmatprep.subr.bf16.mxu1 %v6283_v62  ;;  %6288 = vmatprep.subr.bf16.mxu0 %v6287_v1 }
0x26e5   :  { %6286 = vmatpush3.bf16.msra.mxu1 %v6283_v62 }
0x27af   :  { %v4873_v33 = vpop.f32.mrb[42].mxu0 }
0x27b0   :  { %4955 = vrot.lane.b32.xlu0 %v4873_v33, %s7579_s3  ;;  %v6117_v34 = vpop.f32.mrb[43].mxu0 }
0x27b3   :  { %v4949_v35 = vpop.f32.mrb[64].mxu1 }
0x27b4   :  { %4957 = vrot.lane.b32.xlu1 %v4949_v35, %s7579_s3  ;;  %v6122_v15 = vpop.f32.mrb[65].mxu1 }
0x2822   :  { %v4956_v36 = vpop.permute.xlu0 %4955 }
0x2823   :  { %4961 = vst.msk [vmem:[#allocation2] sm:$0xff] %vm1536_vm6, %v4956_v36 }
0x2826   :  { %v4958_v37 = vpop.permute.xlu1 %4957 }
0x2827   :  { %4962 = vst.msk [vmem:[#allocation2 + $0x8] sm:$0xff] %vm1536_vm6, %v4958_v37 }
0x282a   :  { %v4963_v16 = vld [vmem:[#allocation2] sm:$0xff] }
0x282b   :  { %6131 = vmatprep.mubr.msk.f32.mxu0 %vm85_vm0, %v4963_v16  ;;  %v5587_v16 = vld [vmem:[%s7516_s14 + $0xf0] sm:$0xff] }
0x282e   :  { %v4964_v38 = vld [vmem:[#allocation2 + $0x8] sm:$0xff] }
0x282f   :  { %6132 = vmatmul.mubr.msk.f32.vlgmr.msra.gmra.mrb[44].mxu0 %vm85_vm0, %v4964_v38  ;;  %v5588_v38 = vld [vmem:[%s7516_s14 + $0xf8] sm:$0xff] }
0x2830   :  { %6290 = vmatpush3.bf16.msra.mxu0 %v6287_v1  ;;  %v5343_v1 = vld [vmem:[%s7520_s18 + $0x8] sm:$0xff] }
0x2831   :  { %6292 = vmatprep.subr.bf16.mxu0 %v6291_v3 }
0x2834   :  { %6294 = vmatpush3.bf16.msra.mxu0 %v6291_v3  ;;  %v5344_v3 = vld [vmem:[%s7520_s18 + $0x10] sm:$0xff] }
0x2835   :  { %6296 = vmatprep.subr.bf16.mxu0 %v6295_v5  ;;  %v6323_v20 = vpack.c.bf16 %v5345_v4, %v5344_v3 }
0x2838   :  { %6298 = vmatpush3.bf16.msra.mxu0 %v6295_v5 }
0x2839   :  { %6300 = vmatprep.subr.bf16.mxu0 %v6299_v61 }
0x283c   :  { %6302 = vmatpush3.bf16.msra.mxu0 %v6299_v61 }
0x283d   :  { %6304 = vmatprep.subr.bf16.mxu0 %v6303_v10 }
0x2840   :  { %6306 = vmatpush3.bf16.msra.mxu0 %v6303_v10 }
0x2841   :  { %6308 = vmatprep.subr.bf16.mxu0 %v6307_v18 }
0x2844   :  { %6310 = vmatpush3.bf16.msra.mxu0 %v6307_v18 }
0x2845   :  { %6312 = vmatprep.subr.bf16.mxu0 %v6311_v22 }
0x2848   :  { %6314 = vmatpush3.bf16.msra.mxu0 %v6311_v22 }
0x2902   :  { %v6133_v39 = vpop.f32.mrb[44].mxu0 }
0x2903   :  { %v5049_v40 = vadd.f32 %v6133_v39, %v5558_v12  ;;  %v5043_v41 = vpop.f32.mrb[45].mxu0  ;;  %v5570_v39 = vld [vmem:[%s7515_s13 + $0x1] ss:$0 sm:$0xff] }
0x2904   :  { %v5044_v42 = vadd.f32 %v5558_v12, %v5043_v41  ;;  %v6315_v12 = vpack.c.bf16 %v5588_v38, %v5587_v16 }
0x2905   :  { %v7368_v31 = vadd.f32 %v5049_v40, %v7146_v25 }
0x2906   :  { %v7371_v44 = vadd.f32 %v5044_v42, %v7149_v26  ;;  %6316 = vmatprep.subr.bf16.mxu0 %v6315_v12 }
0x2907   :  { %v5061_v43 = vsel %vm85_vm0, %v7368_v31, 0.0  ;;  %6318 = vmatpush3.bf16.msra.mxu0 %v6315_v12 }
0x2908   :  { %5062 = vadd.xlane.f32.xlu1 %v5061_v43  ;;  %v5058_v45 = vsel %vm85_vm0, %v7371_v44, 0.0 }
0x2909   :  { %5059 = vadd.xlane.f32.xlu0 %v5058_v45 }
0x2995   :  { %v5063_v46 = vpop.xlane.xlu1 %5062 }
0x2996   :  { %v5065_v47 = vmul.f32 0.03125, %v5063_v46  ;;  %v5060_v48 = vpop.xlane.xlu0 %5059 }
0x2997   :  { %v5064_v49 = vmul.f32 0.03125, %v5060_v48 }
0x2998   :  { %v7378_v50 = vsub.f32 %v7368_v31, %v5065_v47  ;;  %v5590_v47 = vld [vmem:[%s7517_s15 + $0x1] ss:$0 sm:$0xff] }
0x2999   :  { %v5066_v25 = vsub.f32 %v7371_v44, %v5064_v49 }
0x299a   :  { %v5069_v52 = vmul.f32 %v7378_v50, %v7378_v50 }
0x299b   :  { %v5068_v51 = vmul.f32 %v5066_v25, %v5066_v25 }
0x299c   :  { %v5073_v53 = vsel %vm85_vm0, %v5069_v52, 0.0 }
0x299d   :  { %v5070_v26 = vsel %vm85_vm0, %v5068_v51, 0.0 }
0x299e   :  { %5071 = vadd.xlane.f32.xlu0 %v5070_v26 }
0x29a2   :  { %5074 = vadd.xlane.f32.xlu0 %v5073_v53 }
0x2a2b   :  { %v5072_v23 = vpop.xlane.xlu0 %5071 }
0x2a2c   :  { %v5076_v24 = vmul.f32 0.03125, %v5072_v23 }
0x2a2e   :  { %v5078_v54 = vadd.f32 1e-05, %v5076_v24 }
0x2a2f   :  { %v5075_v13 = vpop.xlane.xlu0 %5074 }
0x2a30   :  { %6453 = vrsqrt.f32 %v5078_v54  ;;  %v5077_v60 = vmul.f32 0.03125, %v5075_v13  ;;  %v5593_v13 = vld [vmem:[%s7587_s2] ss:$0 sm:$0xff] }
0x2a32   :  { %v5079_v56 = vadd.f32 1e-05, %v5077_v60 }
0x2a34   :  { %6455 = vrsqrt.f32 %v5079_v56 }
0x2a3a   :  { %v6454_v27 = vpop.eup %6453 }
0x2a3b   :  { %v5082_v29 = vmul.f32 %v6454_v27, %v5066_v25 }
0x2a3d   :  { %v5090_v33 = vmul.f32 %v5563_v28, %v5082_v29 }
0x2a3e   :  { %v6456_v34 = vpop.eup %6455 }
0x2a3f   :  { %v5083_v35 = vmul.f32 %v6456_v34, %v7378_v50  ;;  %v5098_v15 = vadd.f32 %v5564_v32, %v5090_v33 }
0x2a41   :  { %v5091_v36 = vmul.f32 %v5563_v28, %v5083_v35  ;;  %6142 = vmatprep.mubr.msk.f32.mxu1 %vm85_vm0, %v5098_v15 }
0x2a43   :  { %v5099_v37 = vadd.f32 %v5564_v32, %v5091_v36 }
0x2a45   :  { %6143 = vmatmul.mubr.msk.f32.vlgmr.msra.gmra.mrb[66].mxu1 %vm85_vm0, %v5099_v37 }
0x2b18   :  { %v6144_v40 = vpop.f32.mrb[66].mxu1 }
0x2b19   :  { %v5191_v41 = vadd.f32 %v6144_v40, %v5570_v39  ;;  %v5185_v42 = vpop.f32.mrb[67].mxu1 }
0x2b1a   :  { %v5186_v43 = vadd.f32 %v5570_v39, %v5185_v42 }
0x2b1b   :  { %v5195_v46 = vmax.f32 %v5191_v41, 0.0 }
0x2b1c   :  { %v5194_v45 = vmax.f32 %v5186_v43, 0.0 }
0x2b1e   :  { %6177 = vmatprep.mubr.f32.mxu0 %v5194_v45 }
0x2b1f   :  { %6178 = vmatmul.mubr.f32.vlgmr.msra.gmra.mrb[46].mxu0 %v5195_v46 }
0x2bf2   :  { %v6179_v48 = vpop.f32.mrb[46].mxu0 }
0x2bf3   :  { %v5293_v49 = vadd.f32 %v6179_v48, %v5590_v47  ;;  %v5287_v50 = vpop.f32.mrb[47].mxu0 }
0x2bf4   :  { %v5288_v25 = vadd.f32 %v5590_v47, %v5287_v50 }
0x2bf5   :  { %v5297_v51 = vadd.f32 %v5293_v49, %v7368_v31 }
0x2bf6   :  { %v5296_v26 = vadd.f32 %v5288_v25, %v7371_v44  ;;  %v5342_v44 = vld [vmem:[%s7520_s18] sm:$0xff] }
0x2bf7   :  { %v5303_v52 = vsel %vm85_vm0, %v5297_v51, 0.0  ;;  %v6319_v2 = vpack.c.bf16 %v5343_v1, %v5342_v44 }
0x2bf8   :  { %5304 = vadd.xlane.f32.xlu0 %v5303_v52  ;;  %v5300_v53 = vsel %vm85_vm0, %v5296_v26, 0.0 }
0x2bf9   :  { %5301 = vadd.xlane.f32.xlu1 %v5300_v53  ;;  %6320 = vmatprep.subr.bf16.mxu1 %v6319_v2 }
0x2bfa   :  { %6322 = vmatpush3.bf16.msra.mxu1 %v6319_v2 }
0x2bfb   :  { %6324 = vmatprep.subr.bf16.mxu1 %v6323_v20 }
0x2bfe   :  { %6326 = vmatpush3.bf16.msra.mxu1 %v6323_v20 }
0x2c85   :  { %v5305_v55 = vpop.xlane.xlu0 %5304 }
0x2c86   :  { %v5307_v57 = vmul.f32 0.03125, %v5305_v55  ;;  %v5302_v30 = vpop.xlane.xlu1 %5301 }
0x2c87   :  { %v5306_v58 = vmul.f32 0.03125, %v5302_v30 }
0x2c88   :  { %v5309_v59 = vsub.f32 %v5297_v51, %v5307_v57 }
0x2c89   :  { %v5308_v62 = vsub.f32 %v5296_v26, %v5306_v58 }
0x2c8a   :  { %v5311_v63 = vmul.f32 %v5309_v59, %v5309_v59 }
0x2c8b   :  { %v5310_v0 = vmul.f32 %v5308_v62, %v5308_v62 }
0x2c8c   :  { %v5315_v11 = vsel %vm85_vm0, %v5311_v63, 0.0 }
0x2c8d   :  { %5316 = vadd.xlane.f32.xlu0 %v5315_v11  ;;  %v5312_v31 = vsel %vm85_vm0, %v5310_v0, 0.0 }
0x2c8e   :  { %5313 = vadd.xlane.f32.xlu1 %v5312_v31 }
0x2d1a   :  { %v5317_v5 = vpop.xlane.xlu0 %5316 }
0x2d1b   :  { %v5319_v6 = vmul.f32 0.03125, %v5317_v5  ;;  %v5314_v7 = vpop.xlane.xlu1 %5313 }
0x2d1c   :  { %v5318_v61 = vmul.f32 0.03125, %v5314_v7 }
0x2d1d   :  { %v5321_v8 = vadd.f32 1e-05, %v5319_v6 }
0x2d1e   :  { %v5320_v9 = vadd.f32 1e-05, %v5318_v61 }
0x2d1f   :  { %6457 = vrsqrt.f32 %v5321_v8 }
0x2d20   :  { %6459 = vrsqrt.f32 %v5320_v9 }
0x2d29   :  { %v6458_v10 = vpop.eup %6457 }
0x2d2a   :  { %v6460_v17 = vpop.eup %6459  ;;  %v5325_v18 = vmul.f32 %v6458_v10, %v5309_v59 }
0x2d2b   :  { %v5324_v19 = vmul.f32 %v6460_v17, %v5308_v62 }
0x2d2c   :  { %v5333_v22 = vmul.f32 %v5591_v14, %v5325_v18 }
0x2d2d   :  { %v5332_v23 = vmul.f32 %v5591_v14, %v5324_v19 }
0x2d2e   :  { %v5341_v54 = vadd.f32 %v5592_v21, %v5333_v22 }
0x2d2f   :  { %v5340_v24 = vadd.f32 %v5592_v21, %v5332_v23 }
0x2d31   :  { %6188 = vmatprep.mubr.msk.f32.mxu1 %vm85_vm0, %v5340_v24 }
0x2d32   :  { %6189 = vmatmul.mubr.msk.f32.vlgmr.msra.gmra.mrb[68].mxu1 %vm85_vm0, %v5341_v54 }
0x2e05   :  { %v6190_v60 = vpop.f32.mrb[68].mxu1 }
0x2e06   :  { %v5431_v56 = vadd.f32 %v6190_v60, %v5593_v13  ;;  %v5425_v27 = vpop.f32.mrb[69].mxu1 }
0x2e07   :  { %v5426_v28 = vadd.f32 %v5593_v13, %v5425_v27 }
0x2e08   :  { %5436 = vst.msk [vmem:[#allocation3 + $0x8] sm:$0xff] %vm5434_vm7, %v5431_v56 }
0x2e09   :  { %5435 = vst.msk [vmem:[#allocation3] sm:$0xff] %vm5434_vm7, %v5426_v28 }
0x2e0a   :  { %6472 = shalt.err (!%p6469_p4)
}
0x2e0b   :  { %s7588_s12 = sld [smem:[#allocation14_spill]] }
0x2e11   :  { %s6473_s26 = scalar_lea.hbm %s7588_s12, 256 }
0x2e12   :  { %p6474_p5 = scmp.ne.s32.totalorder %s7588_s12, %s6473_s26  ;;  %p6477_p6 = scmp.lt.u32.totalorder %s6473_s26, %s7588_s12 }
0x2e14   :  { %p6479_p7 = pnand %p6477_p6, %p6474_p5 }
0x2e16   :  { %6482 = shalt.err (!%p6479_p7)
}
0x2e17   :  { %s6502_s30 = smov 128  }
0x2e18   :  { %5448 = dma.vmem_to_hbm [thread:$0]  %s5443_s17, 256, %s7588_s12, [#allocation4], %s6502_s30, %s6502_s30, %s7577_s4  }
0x2e19   :  { %6483 = dma.done.wait [#allocation4], 256  }
0x2e1a   :  { %6484 = vsyncadd [#allocation4], 4294967040 }
0x2e1b   :  { %5452 = vsyncpa [#allocation4], 1 }

</bundles_post_ra>
